<compile_context>
chip_gen: v7x
topology: tpu7x:2x2x1
jax: 0.10.0
libtpu: 0.0.40
codegen_flags: <defaults>
</compile_context>

<pallas_src>
import math

import jax
import jax.numpy as jnp
from jax.experimental import pallas as pl
from jax.experimental.pallas import tpu as pltpu

EPS = 1e-5          # torch BatchNorm1d default
POS_PAD = 8         # positions padded from 3 to 8 lanes (lane-dense stores)

_VMEM = pl.BlockSpec(memory_space=pltpu.MemorySpace.VMEM)


def _bn(v, gamma, beta):
    """BatchNorm1d training-mode forward, single data pass over v."""
    mean = jnp.mean(v, axis=0, keepdims=True)
    meansq = jnp.mean(v * v, axis=0, keepdims=True)
    var = jnp.maximum(meansq - mean * mean, 0.0)      # guard cancellation
    scale = gamma * jax.lax.rsqrt(var + EPS)
    return v * scale + (beta - mean * scale)


def _one_hot(iota_arr, idx):
    """Exact one-hot (bf16) from an int32 iota and a broadcastable index."""
    return jnp.where(iota_arr == idx, 1.0, 0.0).astype(jnp.bfloat16)


def _receivers(adjacencies, d):
    return [a for a in adjacencies if a.split("_")[1] == str(d)]


def _input_names(adjacencies, visible_dims, equivariant):
    names = [f"x_{d}" for d in visible_dims]
    if equivariant:
        names.append("pos")
    for a in adjacencies:
        names += [f"{a}:idx_col", f"{a}:idx_row", f"{a}:edge_attr",
                  f"{a}:small", f"{a}:w"]
    for d in visible_dims:
        names += [f"up{d}:small", f"up{d}:w"]
    if equivariant:
        names.append("pos_p")
    return names


def _build_kernel(adjacencies, visible_dims, equivariant):
    names = _input_names(adjacencies, visible_dims, equivariant)
    n_in = len(names)

    def kernel(*refs):
        ins = dict(zip(names, refs[:n_in]))
        outs = refs[n_in:]

        x = {str(d): ins[f"x_{d}"][...] for d in visible_dims}
        x_b = {k: v.astype(jnp.bfloat16) for k, v in x.items()}
        H = next(iter(x.values())).shape[1]

        # Iotas built once per (shape, axis) and reused (no trace-level CSE).
        iota_cache = {}

        def iota(shape, axis):
            key = (shape, axis)
            if key not in iota_cache:
                iota_cache[key] = jax.lax.broadcasted_iota(jnp.int32, shape, axis)
            return iota_cache[key]

        aggr = {}
        # ---- per-adjacency message passing (ETNNMessagerLayer.forward) ----
        for a in adjacencies:
            s_key, r_key = a.split("_")[:2]
            xs_b, xr_b = x_b[s_key], x_b[r_key]
            Ns, Nr = xs_b.shape[0], xr_b.shape[0]

            idx_col = ins[f"{a}:idx_col"][...]             # [E, 2] int32
            idx_row = ins[f"{a}:idx_row"][...]             # [2, E] int32
            ea = ins[f"{a}:edge_attr"][...]                # [E, F] f32
            sp = ins[f"{a}:small"][...]                    # [9, H] packed params
            w = ins[f"{a}:w"][...].astype(jnp.bfloat16)    # [2H+F, H]
            E, F = ea.shape

            # One-hot gather / scatter matrices (bf16 is exact for 0/1).
            # TODO(synk): for large E/N switch to an E-tiled grid with
            # scalar-prefetch / DMA gathers instead of these O(E*N) matmuls.
            oh_s = _one_hot(iota((E, Ns), 1), idx_col[:, 0:1])    # [E, Ns]
            oh_r = _one_hot(iota((E, Nr), 1), idx_col[:, 1:2])    # [E, Nr]
            ohT_r = _one_hot(iota((Nr, E), 0), idx_row[1:2, :])   # [Nr, E]

            sim_send = jnp.dot(oh_s, xs_b, preferred_element_type=jnp.float32)
            sim_rec = jnp.dot(oh_r, xr_b, preferred_element_type=jnp.float32)

            # BatchNorm1d over the (virtual) concat [sim_send|sim_rec|edge_attr]
            # computed block-wise (per-channel stats => exact).
            ns = _bn(sim_send, sp[0:1, :], sp[1:2, :]).astype(jnp.bfloat16)
            nr = _bn(sim_rec, sp[2:3, :], sp[3:4, :]).astype(jnp.bfloat16)
            na = _bn(ea, sp[4:5, :F], sp[5:6, :F]).astype(jnp.bfloat16)

            # message_mlp: Linear(2H+F -> H), last act = Identity (split matmul).
            # TODO(synk): fuse into a single K=(2H+F) MXU push when H grows.
            messages = (jnp.dot(ns, w[0:H, :], preferred_element_type=jnp.float32)
                        + jnp.dot(nr, w[H:2 * H, :], preferred_element_type=jnp.float32)
                        + jnp.dot(na, w[2 * H:, :], preferred_element_type=jnp.float32)
                        + sp[6:7, :])

            # edge_inf_mlp: Linear(H -> 1) + Sigmoid as a VPU mul + lane reduce.
            gate = jax.nn.sigmoid(
                jnp.sum(messages * sp[7:8, :], axis=-1, keepdims=True)
                + sp[8:9, 0:1])

            # scatter_add(messages * gate, index_rec) == ohT_r @ (...)
            aggr[a] = jnp.dot(ohT_r, (messages * gate).astype(jnp.bfloat16),
                              preferred_element_type=jnp.float32)

        # ---- per-rank update MLP (BN -> Linear) + residual SiLU ----
        for oi, d in enumerate(visible_dims):
            dd = str(d)
            blocks = [x[dd]] + [aggr[a] for a in _receivers(adjacencies, d)]
            f = len(blocks)
            usp = ins[f"up{d}:small"][...]                  # [2f+1, H]
            uw = ins[f"up{d}:w"][...].astype(jnp.bfloat16)  # [f*H, H]
            h = usp[2 * f:2 * f + 1, :]                     # Linear bias row
            for k, blk in enumerate(blocks):
                nb = _bn(blk, usp[2 * k:2 * k + 1, :],
                         usp[2 * k + 1:2 * k + 2, :]).astype(jnp.bfloat16)
                h = h + jnp.dot(nb, uw[k * H:(k + 1) * H, :],
                                preferred_element_type=jnp.float32)
            s = x[dd] + h
            outs[oi][...] = s * jax.nn.sigmoid(s)           # F.silu

        # ---- equivariant position update ----
        if equivariant:
            pos = ins["pos"][...]                           # [N0, POS_PAD] f32
            pos_b = pos.astype(jnp.bfloat16)
            idx_col = ins["0_0:idx_col"][...]
            idx_row = ins["0_0:idx_row"][...]
            N0 = pos.shape[0]
            E = idx_col.shape[0]

            # Rebuilt locally (not cached across the message/update phases).
            gi = jax.lax.broadcasted_iota(jnp.int32, (E, N0), 1)
            si = jax.lax.broadcasted_iota(jnp.int32, (N0, E), 0)
            oh_s = _one_hot(gi, idx_col[:, 0:1])            # [E, N0]
            oh_r = _one_hot(gi, idx_col[:, 1:2])            # [E, N0]
            ohT_s = _one_hot(si, idx_row[0:1, :])           # [N0, E]

            pos_diff = (jnp.dot(oh_s, pos_b, preferred_element_type=jnp.float32)
                        - jnp.dot(oh_r, pos_b, preferred_element_type=jnp.float32))
            # pos_update(mes['0_0'][receiver]): the AGGREGATED message gathered
            # at the receiver (matches the reference), Linear(H -> 1) as a
            # lane reduce.
            mes_rec = jnp.dot(oh_r, aggr["0_0"].astype(jnp.bfloat16),
                              preferred_element_type=jnp.float32)     # [E, H]
            pp = ins["pos_p"][...]
            pos_upd = (jnp.sum(mes_rec * pp[0:1, :], axis=-1, keepdims=True)
                       + pp[1:2, 0:1])                                # [E, 1]
            pos_delta = (pos_diff * pos_upd).astype(jnp.bfloat16)     # [E, POS_PAD]
            new_delta = jnp.dot(ohT_s, pos_delta,
                                preferred_element_type=jnp.float32)   # [N0, POS_PAD]
            outs[len(visible_dims)][...] = pos + 0.1 * new_delta

    return kernel, names


def make_etnn_forward(adjacencies, visible_dims, equivariant=True):
    if equivariant:
        assert "0_0" in adjacencies, "equivariant pos update needs a '0_0' adjacency"
    kernel, names = _build_kernel(adjacencies, visible_dims, equivariant)

    def forward(params, x, adj, pos, inv):
        vals = {}
        for d in visible_dims:
            vals[f"x_{d}"] = x[str(d)].astype(jnp.float32)
        if equivariant:
            p = pos.astype(jnp.float32)
            vals["pos"] = jnp.pad(p, ((0, 0), (0, POS_PAD - p.shape[1])))

        for a in adjacencies:
            idx = adj[a].astype(jnp.int32)                  # [2, E]
            vals[f"{a}:idx_row"] = idx
            vals[f"{a}:idx_col"] = idx.T                    # [E, 2]
            vals[f"{a}:edge_attr"] = inv[a].astype(jnp.float32)
            mp = params["message_passing"][a]
            vals[f"{a}:small"] = mp["small"]
            vals[f"{a}:w"] = mp["w"]

        for d in visible_dims:
            up = params["update"][str(d)]
            vals[f"up{d}:small"] = up["small"]
            vals[f"up{d}:w"] = up["w"]

        if equivariant:
            vals["pos_p"] = params["pos_update"]["p"]

        inputs = [vals[n] for n in names]

        out_shape = tuple(jax.ShapeDtypeStruct(x[str(d)].shape, jnp.float32)
                          for d in visible_dims)
        if equivariant:
            out_shape = out_shape + (
                jax.ShapeDtypeStruct((pos.shape[0], POS_PAD), jnp.float32),)

        # --- static cost / VMEM estimates (review: CostEstimate + vmem limit) ---
        H = x[str(visible_dims[0])].shape[1]
        flops, trans, scratch = 0, 0, 0
        for a in adjacencies:
            s_key, r_key = a.split("_")[:2]
            E = adj[a].shape[1]
            F = inv[a].shape[1]
            Ns, Nr = x[s_key].shape[0], x[r_key].shape[0]
            flops += 2 * E * H * (Ns + 2 * Nr) + 2 * E * (2 * H + F) * H
            trans += 2 * E
            scratch += 2 * E * (Ns + 2 * Nr) + 4 * E * (Ns + Nr)   # one-hots + iotas
            scratch += 6 * E * H * 4                                # sims / messages
        for d in visible_dims:
            Nd = x[str(d)].shape[0]
            f = 1 + len(_receivers(adjacencies, d))
            flops += 2 * Nd * f * H * H
            trans += Nd * H
        if equivariant:
            E0, N0 = adj["0_0"].shape[1], pos.shape[0]
            flops += 2 * E0 * N0 * (3 * POS_PAD + H)
            trans += E0
        io_bytes = sum(v.size * v.dtype.itemsize for v in inputs)
        io_bytes += sum(4 * math.prod(s.shape) for s in out_shape)
        vmem_limit = int(min(max(2 * (io_bytes + scratch), 32 * 1024 * 1024),
                             64 * 1024 * 1024))   # <= physical on v5e/v6e/v7x

        outs = pl.pallas_call(
            kernel,
            out_shape=out_shape,
            in_specs=[_VMEM] * len(inputs),
            out_specs=tuple([_VMEM] * len(out_shape)),
            compiler_params=pltpu.CompilerParams(vmem_limit_bytes=vmem_limit),
            cost_estimate=pl.CostEstimate(flops=int(flops),
                                          transcendentals=int(trans),
                                          bytes_accessed=int(io_bytes)),
        )(*inputs)

        x_new = {str(d): outs[i] for i, d in enumerate(visible_dims)}
        pos_new = outs[len(visible_dims)][:, :pos.shape[1]] if equivariant else pos
        return x_new, pos_new

    return jax.jit(forward)


# ----------------------------------------------------------------------------
# Parameter construction (matches the torch module's structure; small params
# are packed into per-adjacency / per-rank slabs so the kernel never receives
# dozens of padded [1, H] tiles).
# ----------------------------------------------------------------------------
def init_etnn_layer(key, adjacencies, visible_dims, num_hidden,
                    num_features_map, equivariant=True):
    H = num_hidden

    def linear(key, fan_in, fan_out):
        k1, k2 = jax.random.split(key)
        bound = 1.0 / float(fan_in) ** 0.5
        w = jax.random.uniform(k1, (fan_in, fan_out), jnp.float32, -bound, bound)
        b = jax.random.uniform(k2, (1, fan_out), jnp.float32, -bound, bound)
        return w, b

    params = {"message_passing": {}, "update": {}}

    for a in adjacencies:
        F = num_features_map[a]
        assert F <= H, "packed-param layout assumes num_inv <= num_hidden"
        key, k1, k2 = jax.random.split(key, 3)
        w, b = linear(k1, 2 * H + F, H)        # Linear(2H+F, H).weight.T
        w_e, b_e = linear(k2, H, 1)            # Linear(H, 1)
        small = jnp.zeros((9, H), jnp.float32)
        small = small.at[0].set(1.0)           # BN gamma (send block)
        small = small.at[2].set(1.0)           # BN gamma (rec block)
        small = small.at[4].set(1.0)           # BN gamma (edge_attr, first F used)
        small = small.at[6].set(b[0])          # message Linear bias
        small = small.at[7].set(w_e[:, 0])     # edge gate weight (lane row)
        small = small.at[8, 0].set(b_e[0, 0])  # edge gate bias
        params["message_passing"][a] = dict(small=small, w=w)

    for d in visible_dims:
        f = 1 + len(_receivers(adjacencies, d))
        key, k1 = jax.random.split(key)
        w, b = linear(k1, f * H, H)            # Linear(f*H, H).weight.T
        small = jnp.zeros((2 * f + 1, H), jnp.float32)
        for k in range(f):
            small = small.at[2 * k].set(1.0)   # BN gamma per block
        small = small.at[2 * f].set(b[0])      # Linear bias
        params["update"][str(d)] = dict(small=small, w=w)

    if equivariant:
        key, k1 = jax.random.split(key)
        # TODO(synk): torch uses trunc_normal_(std=0.02); plain normal here.
        pw = 0.02 * jax.random.normal(k1, (H,), jnp.float32)
        params["pos_update"] = dict(
            p=jnp.zeros((2, H), jnp.float32).at[0].set(pw))
    return params


# ----------------------------------------------------------------------------
# Demo
# ----------------------------------------------------------------------------
if __name__ == "__main__":
    key = jax.random.PRNGKey(0)

    adjacencies = ["0_0", "0_1", "1_1"]
    visible_dims = [0, 1]
    num_hidden = 32
    num_features_map = {"0_0": 4, "0_1": 4, "1_1": 4}

    N0, N1 = 16, 8               # number of 0-cells (nodes) / 1-cells (edges)
    E = {"0_0": 24, "0_1": 20, "1_1": 12}
    N_of = {"0": N0, "1": N1}

    key, *ks = jax.random.split(key, 16)
    x = {"0": jax.random.normal(ks[0], (N0, num_hidden), jnp.float32),
         "1": jax.random.normal(ks[1], (N1, num_hidden), jnp.float32)}
    pos = jax.random.normal(ks[2], (N0, 3), jnp.float32)

    adj = {}
    inv = {}
    for i, a in enumerate(adjacencies):
        s_key, r_key = a.split("_")[:2]
        ks_a = jax.random.split(ks[3 + i], 3)
        adj[a] = jnp.stack([
            jax.random.randint(ks_a[0], (E[a],), 0, N_of[s_key], jnp.int32),
            jax.random.randint(ks_a[1], (E[a],), 0, N_of[r_key], jnp.int32),
        ], axis=0)
        inv[a] = jax.random.normal(ks_a[2], (E[a], num_features_map[a]),
                                   jnp.float32)

    params = init_etnn_layer(ks[10], adjacencies, visible_dims, num_hidden,
                             num_features_map, equivariant=True)

    forward = make_etnn_forward(adjacencies, visible_dims, equivariant=True)
    x_out, pos_out = forward(params, x, adj, pos, inv)

    jax.block_until_ready(x_out["0"])
    jax.block_until_ready(x_out["1"])
    jax.block_until_ready(pos_out)

    assert x_out["0"].shape == (N0, num_hidden)
    assert x_out["1"].shape == (N1, num_hidden)
    assert pos_out.shape == (N0, 3)
    assert all(bool(jnp.all(jnp.isfinite(v))) for v in
               (x_out["0"], x_out["1"], pos_out))
    print("KERNEL_OK")
</pallas_src>

<mosaic_0001>
module attributes {stable_mosaic.version = 11 : i64} {
  func.func @kernel(%arg0: memref<16x32xf32, #tpu.memory_space<vmem>>, %arg1: memref<8x32xf32, #tpu.memory_space<vmem>>, %arg2: memref<16x8xf32, #tpu.memory_space<vmem>>, %arg3: memref<24x2xi32, #tpu.memory_space<vmem>>, %arg4: memref<2x24xi32, #tpu.memory_space<vmem>>, %arg5: memref<24x4xf32, #tpu.memory_space<vmem>>, %arg6: memref<9x32xf32, #tpu.memory_space<vmem>>, %arg7: memref<68x32xf32, #tpu.memory_space<vmem>>, %arg8: memref<20x2xi32, #tpu.memory_space<vmem>>, %arg9: memref<2x20xi32, #tpu.memory_space<vmem>>, %arg10: memref<20x4xf32, #tpu.memory_space<vmem>>, %arg11: memref<9x32xf32, #tpu.memory_space<vmem>>, %arg12: memref<68x32xf32, #tpu.memory_space<vmem>>, %arg13: memref<12x2xi32, #tpu.memory_space<vmem>>, %arg14: memref<2x12xi32, #tpu.memory_space<vmem>>, %arg15: memref<12x4xf32, #tpu.memory_space<vmem>>, %arg16: memref<9x32xf32, #tpu.memory_space<vmem>>, %arg17: memref<68x32xf32, #tpu.memory_space<vmem>>, %arg18: memref<5x32xf32, #tpu.memory_space<vmem>>, %arg19: memref<64x32xf32, #tpu.memory_space<vmem>>, %arg20: memref<7x32xf32, #tpu.memory_space<vmem>>, %arg21: memref<96x32xf32, #tpu.memory_space<vmem>>, %arg22: memref<2x32xf32, #tpu.memory_space<vmem>>, %arg23: memref<16x32xf32, #tpu.memory_space<vmem>>, %arg24: memref<8x32xf32, #tpu.memory_space<vmem>>, %arg25: memref<16x8xf32, #tpu.memory_space<vmem>>) attributes {dimension_semantics = [], scalar_prefetch = 0 : i64, scratch_operands = 0 : i64, tpu.core_type = #tpu.core_type<tc>} {
    %c0 = arith.constant 0 : index
    %c0_0 = arith.constant 0 : index
    %0 = vector.load %arg0[%c0, %c0_0] : memref<16x32xf32, #tpu.memory_space<vmem>>, vector<16x32xf32>
    %c0_1 = arith.constant 0 : index
    %c0_2 = arith.constant 0 : index
    %1 = vector.load %arg1[%c0_1, %c0_2] : memref<8x32xf32, #tpu.memory_space<vmem>>, vector<8x32xf32>
    %2 = arith.truncf %0 : vector<16x32xf32> to vector<16x32xbf16>
    %3 = arith.truncf %1 : vector<8x32xf32> to vector<8x32xbf16>
    %c0_3 = arith.constant 0 : index
    %c0_4 = arith.constant 0 : index
    %4 = vector.load %arg3[%c0_3, %c0_4] : memref<24x2xi32, #tpu.memory_space<vmem>>, vector<24x2xi32>
    %c0_5 = arith.constant 0 : index
    %c0_6 = arith.constant 0 : index
    %5 = vector.load %arg4[%c0_5, %c0_6] : memref<2x24xi32, #tpu.memory_space<vmem>>, vector<2x24xi32>
    %c0_7 = arith.constant 0 : index
    %c0_8 = arith.constant 0 : index
    %6 = vector.load %arg5[%c0_7, %c0_8] : memref<24x4xf32, #tpu.memory_space<vmem>>, vector<24x4xf32>
    %c0_9 = arith.constant 0 : index
    %c0_10 = arith.constant 0 : index
    %7 = vector.load %arg6[%c0_9, %c0_10] : memref<9x32xf32, #tpu.memory_space<vmem>>, vector<9x32xf32>
    %c0_11 = arith.constant 0 : index
    %c0_12 = arith.constant 0 : index
    %8 = vector.load %arg7[%c0_11, %c0_12] : memref<68x32xf32, #tpu.memory_space<vmem>>, vector<68x32xf32>
    %9 = arith.truncf %8 : vector<68x32xf32> to vector<68x32xbf16>
    %10 = tpu.iota {dimensions = array<i32: 1>} : vector<24x16xi32>
    %11 = vector.extract_strided_slice %4 {offsets = [0, 0], sizes = [24, 1], strides = [1, 1]} : vector<24x2xi32> to vector<24x1xi32>
    %12 = vector.broadcast %11 : vector<24x1xi32> to vector<24x16xi32>
    %13 = arith.cmpi eq, %10, %12 : vector<24x16xi32>
    %cst = arith.constant 1.000000e+00 : f32
    %cst_13 = arith.constant 0.000000e+00 : f32
    %14 = vector.broadcast %cst : f32 to vector<24x16xf32>
    %15 = vector.broadcast %cst_13 : f32 to vector<24x16xf32>
    %16 = arith.select %13, %14, %15 : vector<24x16xi1>, vector<24x16xf32>
    %17 = arith.truncf %16 : vector<24x16xf32> to vector<24x16xbf16>
    %18 = vector.extract_strided_slice %4 {offsets = [0, 1], sizes = [24, 1], strides = [1, 1]} : vector<24x2xi32> to vector<24x1xi32>
    %19 = vector.broadcast %18 : vector<24x1xi32> to vector<24x16xi32>
    %20 = arith.cmpi eq, %10, %19 : vector<24x16xi32>
    %cst_14 = arith.constant 1.000000e+00 : f32
    %cst_15 = arith.constant 0.000000e+00 : f32
    %21 = vector.broadcast %cst_14 : f32 to vector<24x16xf32>
    %22 = vector.broadcast %cst_15 : f32 to vector<24x16xf32>
    %23 = arith.select %20, %21, %22 : vector<24x16xi1>, vector<24x16xf32>
    %24 = arith.truncf %23 : vector<24x16xf32> to vector<24x16xbf16>
    %25 = tpu.iota {dimensions = array<i32: 0>} : vector<16x24xi32>
    %26 = vector.extract_strided_slice %5 {offsets = [1, 0], sizes = [1, 24], strides = [1, 1]} : vector<2x24xi32> to vector<1x24xi32>
    %27 = vector.broadcast %26 : vector<1x24xi32> to vector<16x24xi32>
    %28 = arith.cmpi eq, %25, %27 : vector<16x24xi32>
    %cst_16 = arith.constant 1.000000e+00 : f32
    %cst_17 = arith.constant 0.000000e+00 : f32
    %29 = vector.broadcast %cst_16 : f32 to vector<16x24xf32>
    %30 = vector.broadcast %cst_17 : f32 to vector<16x24xf32>
    %31 = arith.select %28, %29, %30 : vector<16x24xi1>, vector<16x24xf32>
    %32 = arith.truncf %31 : vector<16x24xf32> to vector<16x24xbf16>
    %cst_18 = arith.constant dense<0.000000e+00> : vector<24x32xf32>
    %33 = tpu.matmul %17, %2, %cst_18 {dimension_numbers = #tpu.dot_dimension_numbers<[1], [0], [0], [1], [0, 0, 1, 1], [], []>} : vector<24x16xbf16>, vector<16x32xbf16>, vector<24x32xf32> -> vector<24x32xf32>
    %cst_19 = arith.constant dense<0.000000e+00> : vector<24x32xf32>
    %34 = tpu.matmul %24, %2, %cst_19 {dimension_numbers = #tpu.dot_dimension_numbers<[1], [0], [0], [1], [0, 0, 1, 1], [], []>} : vector<24x16xbf16>, vector<16x32xbf16>, vector<24x32xf32> -> vector<24x32xf32>
    %35 = vector.extract_strided_slice %7 {offsets = [0, 0], sizes = [1, 32], strides = [1, 1]} : vector<9x32xf32> to vector<1x32xf32>
    %36 = vector.extract_strided_slice %7 {offsets = [1, 0], sizes = [1, 32], strides = [1, 1]} : vector<9x32xf32> to vector<1x32xf32>
    %cst_20 = arith.constant dense<0.000000e+00> : vector<32xf32>
    %37 = vector.multi_reduction <add>, %33, %cst_20 [0] : vector<24x32xf32> to vector<32xf32>
    %38 = vector.shape_cast %37 : vector<32xf32> to vector<1x32xf32>
    %cst_21 = arith.constant 2.400000e+01 : f32
    %39 = vector.broadcast %cst_21 : f32 to vector<1x32xf32>
    %40 = arith.divf %38, %39 : vector<1x32xf32>
    %41 = arith.mulf %33, %33 : vector<24x32xf32>
    %cst_22 = arith.constant dense<0.000000e+00> : vector<32xf32>
    %42 = vector.multi_reduction <add>, %41, %cst_22 [0] : vector<24x32xf32> to vector<32xf32>
    %43 = vector.shape_cast %42 : vector<32xf32> to vector<1x32xf32>
    %cst_23 = arith.constant 2.400000e+01 : f32
    %44 = vector.broadcast %cst_23 : f32 to vector<1x32xf32>
    %45 = arith.divf %43, %44 : vector<1x32xf32>
    %46 = arith.mulf %40, %40 : vector<1x32xf32>
    %47 = arith.subf %45, %46 : vector<1x32xf32>
    %cst_24 = arith.constant 0.000000e+00 : f32
    %48 = vector.broadcast %cst_24 : f32 to vector<1x32xf32>
    %49 = arith.maximumf %47, %48 : vector<1x32xf32>
    %cst_25 = arith.constant 9.99999974E-6 : f32
    %50 = vector.broadcast %cst_25 : f32 to vector<1x32xf32>
    %51 = arith.addf %49, %50 : vector<1x32xf32>
    %52 = math.rsqrt %51 : vector<1x32xf32>
    %53 = arith.mulf %35, %52 : vector<1x32xf32>
    %54 = vector.broadcast %53 : vector<1x32xf32> to vector<24x32xf32>
    %55 = arith.mulf %33, %54 : vector<24x32xf32>
    %56 = arith.mulf %40, %53 : vector<1x32xf32>
    %57 = arith.subf %36, %56 : vector<1x32xf32>
    %58 = vector.broadcast %57 : vector<1x32xf32> to vector<24x32xf32>
    %59 = arith.addf %55, %58 : vector<24x32xf32>
    %60 = arith.truncf %59 : vector<24x32xf32> to vector<24x32xbf16>
    %61 = vector.extract_strided_slice %7 {offsets = [2, 0], sizes = [1, 32], strides = [1, 1]} : vector<9x32xf32> to vector<1x32xf32>
    %62 = vector.extract_strided_slice %7 {offsets = [3, 0], sizes = [1, 32], strides = [1, 1]} : vector<9x32xf32> to vector<1x32xf32>
    %cst_26 = arith.constant dense<0.000000e+00> : vector<32xf32>
    %63 = vector.multi_reduction <add>, %34, %cst_26 [0] : vector<24x32xf32> to vector<32xf32>
    %64 = vector.shape_cast %63 : vector<32xf32> to vector<1x32xf32>
    %cst_27 = arith.constant 2.400000e+01 : f32
    %65 = vector.broadcast %cst_27 : f32 to vector<1x32xf32>
    %66 = arith.divf %64, %65 : vector<1x32xf32>
    %67 = arith.mulf %34, %34 : vector<24x32xf32>
    %cst_28 = arith.constant dense<0.000000e+00> : vector<32xf32>
    %68 = vector.multi_reduction <add>, %67, %cst_28 [0] : vector<24x32xf32> to vector<32xf32>
    %69 = vector.shape_cast %68 : vector<32xf32> to vector<1x32xf32>
    %cst_29 = arith.constant 2.400000e+01 : f32
    %70 = vector.broadcast %cst_29 : f32 to vector<1x32xf32>
    %71 = arith.divf %69, %70 : vector<1x32xf32>
    %72 = arith.mulf %66, %66 : vector<1x32xf32>
    %73 = arith.subf %71, %72 : vector<1x32xf32>
    %cst_30 = arith.constant 0.000000e+00 : f32
    %74 = vector.broadcast %cst_30 : f32 to vector<1x32xf32>
    %75 = arith.maximumf %73, %74 : vector<1x32xf32>
    %cst_31 = arith.constant 9.99999974E-6 : f32
    %76 = vector.broadcast %cst_31 : f32 to vector<1x32xf32>
    %77 = arith.addf %75, %76 : vector<1x32xf32>
    %78 = math.rsqrt %77 : vector<1x32xf32>
    %79 = arith.mulf %61, %78 : vector<1x32xf32>
    %80 = vector.broadcast %79 : vector<1x32xf32> to vector<24x32xf32>
    %81 = arith.mulf %34, %80 : vector<24x32xf32>
    %82 = arith.mulf %66, %79 : vector<1x32xf32>
    %83 = arith.subf %62, %82 : vector<1x32xf32>
    %84 = vector.broadcast %83 : vector<1x32xf32> to vector<24x32xf32>
    %85 = arith.addf %81, %84 : vector<24x32xf32>
    %86 = arith.truncf %85 : vector<24x32xf32> to vector<24x32xbf16>
    %87 = vector.extract_strided_slice %7 {offsets = [4, 0], sizes = [1, 4], strides = [1, 1]} : vector<9x32xf32> to vector<1x4xf32>
    %88 = vector.extract_strided_slice %7 {offsets = [5, 0], sizes = [1, 4], strides = [1, 1]} : vector<9x32xf32> to vector<1x4xf32>
    %cst_32 = arith.constant dense<0.000000e+00> : vector<4xf32>
    %89 = vector.multi_reduction <add>, %6, %cst_32 [0] : vector<24x4xf32> to vector<4xf32>
    %90 = vector.shape_cast %89 : vector<4xf32> to vector<1x4xf32>
    %cst_33 = arith.constant 2.400000e+01 : f32
    %91 = vector.broadcast %cst_33 : f32 to vector<1x4xf32>
    %92 = arith.divf %90, %91 : vector<1x4xf32>
    %93 = arith.mulf %6, %6 : vector<24x4xf32>
    %cst_34 = arith.constant dense<0.000000e+00> : vector<4xf32>
    %94 = vector.multi_reduction <add>, %93, %cst_34 [0] : vector<24x4xf32> to vector<4xf32>
    %95 = vector.shape_cast %94 : vector<4xf32> to vector<1x4xf32>
    %cst_35 = arith.constant 2.400000e+01 : f32
    %96 = vector.broadcast %cst_35 : f32 to vector<1x4xf32>
    %97 = arith.divf %95, %96 : vector<1x4xf32>
    %98 = arith.mulf %92, %92 : vector<1x4xf32>
    %99 = arith.subf %97, %98 : vector<1x4xf32>
    %cst_36 = arith.constant 0.000000e+00 : f32
    %100 = vector.broadcast %cst_36 : f32 to vector<1x4xf32>
    %101 = arith.maximumf %99, %100 : vector<1x4xf32>
    %cst_37 = arith.constant 9.99999974E-6 : f32
    %102 = vector.broadcast %cst_37 : f32 to vector<1x4xf32>
    %103 = arith.addf %101, %102 : vector<1x4xf32>
    %104 = math.rsqrt %103 : vector<1x4xf32>
    %105 = arith.mulf %87, %104 : vector<1x4xf32>
    %106 = vector.broadcast %105 : vector<1x4xf32> to vector<24x4xf32>
    %107 = arith.mulf %6, %106 : vector<24x4xf32>
    %108 = arith.mulf %92, %105 : vector<1x4xf32>
    %109 = arith.subf %88, %108 : vector<1x4xf32>
    %110 = vector.broadcast %109 : vector<1x4xf32> to vector<24x4xf32>
    %111 = arith.addf %107, %110 : vector<24x4xf32>
    %112 = arith.truncf %111 : vector<24x4xf32> to vector<24x4xbf16>
    %113 = vector.extract_strided_slice %9 {offsets = [0, 0], sizes = [32, 32], strides = [1, 1]} : vector<68x32xbf16> to vector<32x32xbf16>
    %cst_38 = arith.constant dense<0.000000e+00> : vector<24x32xf32>
    %114 = tpu.matmul %60, %113, %cst_38 {dimension_numbers = #tpu.dot_dimension_numbers<[1], [0], [0], [1], [0, 0, 1, 1], [], []>} : vector<24x32xbf16>, vector<32x32xbf16>, vector<24x32xf32> -> vector<24x32xf32>
    %115 = vector.extract_strided_slice %9 {offsets = [32, 0], sizes = [32, 32], strides = [1, 1]} : vector<68x32xbf16> to vector<32x32xbf16>
    %cst_39 = arith.constant dense<0.000000e+00> : vector<24x32xf32>
    %116 = tpu.matmul %86, %115, %cst_39 {dimension_numbers = #tpu.dot_dimension_numbers<[1], [0], [0], [1], [0, 0, 1, 1], [], []>} : vector<24x32xbf16>, vector<32x32xbf16>, vector<24x32xf32> -> vector<24x32xf32>
    %117 = arith.addf %114, %116 : vector<24x32xf32>
    %118 = vector.extract_strided_slice %9 {offsets = [64, 0], sizes = [4, 32], strides = [1, 1]} : vector<68x32xbf16> to vector<4x32xbf16>
    %cst_40 = arith.constant dense<0.000000e+00> : vector<24x32xf32>
    %119 = tpu.matmul %112, %118, %cst_40 {dimension_numbers = #tpu.dot_dimension_numbers<[1], [0], [0], [1], [0, 0, 1, 1], [], []>} : vector<24x4xbf16>, vector<4x32xbf16>, vector<24x32xf32> -> vector<24x32xf32>
    %120 = arith.addf %117, %119 : vector<24x32xf32>
    %121 = vector.extract_strided_slice %7 {offsets = [6, 0], sizes = [1, 32], strides = [1, 1]} : vector<9x32xf32> to vector<1x32xf32>
    %122 = vector.broadcast %121 : vector<1x32xf32> to vector<24x32xf32>
    %123 = arith.addf %120, %122 : vector<24x32xf32>
    %124 = vector.extract_strided_slice %7 {offsets = [7, 0], sizes = [1, 32], strides = [1, 1]} : vector<9x32xf32> to vector<1x32xf32>
    %125 = vector.broadcast %124 : vector<1x32xf32> to vector<24x32xf32>
    %126 = arith.mulf %123, %125 : vector<24x32xf32>
    %cst_41 = arith.constant dense<0.000000e+00> : vector<24xf32>
    %127 = vector.multi_reduction <add>, %126, %cst_41 [1] : vector<24x32xf32> to vector<24xf32>
    %128 = vector.shape_cast %127 : vector<24xf32> to vector<24x1xf32>
    %129 = vector.extract_strided_slice %7 {offsets = [8, 0], sizes = [1, 1], strides = [1, 1]} : vector<9x32xf32> to vector<1x1xf32>
    %130 = vector.broadcast %129 : vector<1x1xf32> to vector<24x1xf32>
    %131 = arith.addf %128, %130 : vector<24x1xf32>
    %132 = arith.negf %131 : vector<24x1xf32>
    %133 = math.exp %132 : vector<24x1xf32>
    %cst_42 = arith.constant 1.000000e+00 : f32
    %134 = vector.broadcast %cst_42 : f32 to vector<24x1xf32>
    %135 = arith.addf %134, %133 : vector<24x1xf32>
    %136 = arith.divf %134, %135 : vector<24x1xf32>
    %137 = vector.broadcast %136 : vector<24x1xf32> to vector<24x32xf32>
    %138 = arith.mulf %123, %137 : vector<24x32xf32>
    %139 = arith.truncf %138 : vector<24x32xf32> to vector<24x32xbf16>
    %cst_43 = arith.constant dense<0.000000e+00> : vector<16x32xf32>
    %140 = tpu.matmul %32, %139, %cst_43 {dimension_numbers = #tpu.dot_dimension_numbers<[1], [0], [0], [1], [0, 0, 1, 1], [], []>} : vector<16x24xbf16>, vector<24x32xbf16>, vector<16x32xf32> -> vector<16x32xf32>
    %c0_44 = arith.constant 0 : index
    %c0_45 = arith.constant 0 : index
    %141 = vector.load %arg8[%c0_44, %c0_45] : memref<20x2xi32, #tpu.memory_space<vmem>>, vector<20x2xi32>
    %c0_46 = arith.constant 0 : index
    %c0_47 = arith.constant 0 : index
    %142 = vector.load %arg9[%c0_46, %c0_47] : memref<2x20xi32, #tpu.memory_space<vmem>>, vector<2x20xi32>
    %c0_48 = arith.constant 0 : index
    %c0_49 = arith.constant 0 : index
    %143 = vector.load %arg10[%c0_48, %c0_49] : memref<20x4xf32, #tpu.memory_space<vmem>>, vector<20x4xf32>
    %c0_50 = arith.constant 0 : index
    %c0_51 = arith.constant 0 : index
    %144 = vector.load %arg11[%c0_50, %c0_51] : memref<9x32xf32, #tpu.memory_space<vmem>>, vector<9x32xf32>
    %c0_52 = arith.constant 0 : index
    %c0_53 = arith.constant 0 : index
    %145 = vector.load %arg12[%c0_52, %c0_53] : memref<68x32xf32, #tpu.memory_space<vmem>>, vector<68x32xf32>
    %146 = arith.truncf %145 : vector<68x32xf32> to vector<68x32xbf16>
    %147 = tpu.iota {dimensions = array<i32: 1>} : vector<20x16xi32>
    %148 = vector.extract_strided_slice %141 {offsets = [0, 0], sizes = [20, 1], strides = [1, 1]} : vector<20x2xi32> to vector<20x1xi32>
    %149 = vector.broadcast %148 : vector<20x1xi32> to vector<20x16xi32>
    %150 = arith.cmpi eq, %147, %149 : vector<20x16xi32>
    %cst_54 = arith.constant 1.000000e+00 : f32
    %cst_55 = arith.constant 0.000000e+00 : f32
    %151 = vector.broadcast %cst_54 : f32 to vector<20x16xf32>
    %152 = vector.broadcast %cst_55 : f32 to vector<20x16xf32>
    %153 = arith.select %150, %151, %152 : vector<20x16xi1>, vector<20x16xf32>
    %154 = arith.truncf %153 : vector<20x16xf32> to vector<20x16xbf16>
    %155 = tpu.iota {dimensions = array<i32: 1>} : vector<20x8xi32>
    %156 = vector.extract_strided_slice %141 {offsets = [0, 1], sizes = [20, 1], strides = [1, 1]} : vector<20x2xi32> to vector<20x1xi32>
    %157 = vector.broadcast %156 : vector<20x1xi32> to vector<20x8xi32>
    %158 = arith.cmpi eq, %155, %157 : vector<20x8xi32>
    %cst_56 = arith.constant 1.000000e+00 : f32
    %cst_57 = arith.constant 0.000000e+00 : f32
    %159 = vector.broadcast %cst_56 : f32 to vector<20x8xf32>
    %160 = vector.broadcast %cst_57 : f32 to vector<20x8xf32>
    %161 = arith.select %158, %159, %160 : vector<20x8xi1>, vector<20x8xf32>
    %162 = arith.truncf %161 : vector<20x8xf32> to vector<20x8xbf16>
    %163 = tpu.iota {dimensions = array<i32: 0>} : vector<8x20xi32>
    %164 = vector.extract_strided_slice %142 {offsets = [1, 0], sizes = [1, 20], strides = [1, 1]} : vector<2x20xi32> to vector<1x20xi32>
    %165 = vector.broadcast %164 : vector<1x20xi32> to vector<8x20xi32>
    %166 = arith.cmpi eq, %163, %165 : vector<8x20xi32>
    %cst_58 = arith.constant 1.000000e+00 : f32
    %cst_59 = arith.constant 0.000000e+00 : f32
    %167 = vector.broadcast %cst_58 : f32 to vector<8x20xf32>
    %168 = vector.broadcast %cst_59 : f32 to vector<8x20xf32>
    %169 = arith.select %166, %167, %168 : vector<8x20xi1>, vector<8x20xf32>
    %170 = arith.truncf %169 : vector<8x20xf32> to vector<8x20xbf16>
    %cst_60 = arith.constant dense<0.000000e+00> : vector<20x32xf32>
    %171 = tpu.matmul %154, %2, %cst_60 {dimension_numbers = #tpu.dot_dimension_numbers<[1], [0], [0], [1], [0, 0, 1, 1], [], []>} : vector<20x16xbf16>, vector<16x32xbf16>, vector<20x32xf32> -> vector<20x32xf32>
    %cst_61 = arith.constant dense<0.000000e+00> : vector<20x32xf32>
    %172 = tpu.matmul %162, %3, %cst_61 {dimension_numbers = #tpu.dot_dimension_numbers<[1], [0], [0], [1], [0, 0, 1, 1], [], []>} : vector<20x8xbf16>, vector<8x32xbf16>, vector<20x32xf32> -> vector<20x32xf32>
    %173 = vector.extract_strided_slice %144 {offsets = [0, 0], sizes = [1, 32], strides = [1, 1]} : vector<9x32xf32> to vector<1x32xf32>
    %174 = vector.extract_strided_slice %144 {offsets = [1, 0], sizes = [1, 32], strides = [1, 1]} : vector<9x32xf32> to vector<1x32xf32>
    %cst_62 = arith.constant dense<0.000000e+00> : vector<32xf32>
    %175 = vector.multi_reduction <add>, %171, %cst_62 [0] : vector<20x32xf32> to vector<32xf32>
    %176 = vector.shape_cast %175 : vector<32xf32> to vector<1x32xf32>
    %cst_63 = arith.constant 2.000000e+01 : f32
    %177 = vector.broadcast %cst_63 : f32 to vector<1x32xf32>
    %178 = arith.divf %176, %177 : vector<1x32xf32>
    %179 = arith.mulf %171, %171 : vector<20x32xf32>
    %cst_64 = arith.constant dense<0.000000e+00> : vector<32xf32>
    %180 = vector.multi_reduction <add>, %179, %cst_64 [0] : vector<20x32xf32> to vector<32xf32>
    %181 = vector.shape_cast %180 : vector<32xf32> to vector<1x32xf32>
    %cst_65 = arith.constant 2.000000e+01 : f32
    %182 = vector.broadcast %cst_65 : f32 to vector<1x32xf32>
    %183 = arith.divf %181, %182 : vector<1x32xf32>
    %184 = arith.mulf %178, %178 : vector<1x32xf32>
    %185 = arith.subf %183, %184 : vector<1x32xf32>
    %cst_66 = arith.constant 0.000000e+00 : f32
    %186 = vector.broadcast %cst_66 : f32 to vector<1x32xf32>
    %187 = arith.maximumf %185, %186 : vector<1x32xf32>
    %cst_67 = arith.constant 9.99999974E-6 : f32
    %188 = vector.broadcast %cst_67 : f32 to vector<1x32xf32>
    %189 = arith.addf %187, %188 : vector<1x32xf32>
    %190 = math.rsqrt %189 : vector<1x32xf32>
    %191 = arith.mulf %173, %190 : vector<1x32xf32>
    %192 = vector.broadcast %191 : vector<1x32xf32> to vector<20x32xf32>
    %193 = arith.mulf %171, %192 : vector<20x32xf32>
    %194 = arith.mulf %178, %191 : vector<1x32xf32>
    %195 = arith.subf %174, %194 : vector<1x32xf32>
    %196 = vector.broadcast %195 : vector<1x32xf32> to vector<20x32xf32>
    %197 = arith.addf %193, %196 : vector<20x32xf32>
    %198 = arith.truncf %197 : vector<20x32xf32> to vector<20x32xbf16>
    %199 = vector.extract_strided_slice %144 {offsets = [2, 0], sizes = [1, 32], strides = [1, 1]} : vector<9x32xf32> to vector<1x32xf32>
    %200 = vector.extract_strided_slice %144 {offsets = [3, 0], sizes = [1, 32], strides = [1, 1]} : vector<9x32xf32> to vector<1x32xf32>
    %cst_68 = arith.constant dense<0.000000e+00> : vector<32xf32>
    %201 = vector.multi_reduction <add>, %172, %cst_68 [0] : vector<20x32xf32> to vector<32xf32>
    %202 = vector.shape_cast %201 : vector<32xf32> to vector<1x32xf32>
    %cst_69 = arith.constant 2.000000e+01 : f32
    %203 = vector.broadcast %cst_69 : f32 to vector<1x32xf32>
    %204 = arith.divf %202, %203 : vector<1x32xf32>
    %205 = arith.mulf %172, %172 : vector<20x32xf32>
    %cst_70 = arith.constant dense<0.000000e+00> : vector<32xf32>
    %206 = vector.multi_reduction <add>, %205, %cst_70 [0] : vector<20x32xf32> to vector<32xf32>
    %207 = vector.shape_cast %206 : vector<32xf32> to vector<1x32xf32>
    %cst_71 = arith.constant 2.000000e+01 : f32
    %208 = vector.broadcast %cst_71 : f32 to vector<1x32xf32>
    %209 = arith.divf %207, %208 : vector<1x32xf32>
    %210 = arith.mulf %204, %204 : vector<1x32xf32>
    %211 = arith.subf %209, %210 : vector<1x32xf32>
    %cst_72 = arith.constant 0.000000e+00 : f32
    %212 = vector.broadcast %cst_72 : f32 to vector<1x32xf32>
    %213 = arith.maximumf %211, %212 : vector<1x32xf32>
    %cst_73 = arith.constant 9.99999974E-6 : f32
    %214 = vector.broadcast %cst_73 : f32 to vector<1x32xf32>
    %215 = arith.addf %213, %214 : vector<1x32xf32>
    %216 = math.rsqrt %215 : vector<1x32xf32>
    %217 = arith.mulf %199, %216 : vector<1x32xf32>
    %218 = vector.broadcast %217 : vector<1x32xf32> to vector<20x32xf32>
    %219 = arith.mulf %172, %218 : vector<20x32xf32>
    %220 = arith.mulf %204, %217 : vector<1x32xf32>
    %221 = arith.subf %200, %220 : vector<1x32xf32>
    %222 = vector.broadcast %221 : vector<1x32xf32> to vector<20x32xf32>
    %223 = arith.addf %219, %222 : vector<20x32xf32>
    %224 = arith.truncf %223 : vector<20x32xf32> to vector<20x32xbf16>
    %225 = vector.extract_strided_slice %144 {offsets = [4, 0], sizes = [1, 4], strides = [1, 1]} : vector<9x32xf32> to vector<1x4xf32>
    %226 = vector.extract_strided_slice %144 {offsets = [5, 0], sizes = [1, 4], strides = [1, 1]} : vector<9x32xf32> to vector<1x4xf32>
    %cst_74 = arith.constant dense<0.000000e+00> : vector<4xf32>
    %227 = vector.multi_reduction <add>, %143, %cst_74 [0] : vector<20x4xf32> to vector<4xf32>
    %228 = vector.shape_cast %227 : vector<4xf32> to vector<1x4xf32>
    %cst_75 = arith.constant 2.000000e+01 : f32
    %229 = vector.broadcast %cst_75 : f32 to vector<1x4xf32>
    %230 = arith.divf %228, %229 : vector<1x4xf32>
    %231 = arith.mulf %143, %143 : vector<20x4xf32>
    %cst_76 = arith.constant dense<0.000000e+00> : vector<4xf32>
    %232 = vector.multi_reduction <add>, %231, %cst_76 [0] : vector<20x4xf32> to vector<4xf32>
    %233 = vector.shape_cast %232 : vector<4xf32> to vector<1x4xf32>
    %cst_77 = arith.constant 2.000000e+01 : f32
    %234 = vector.broadcast %cst_77 : f32 to vector<1x4xf32>
    %235 = arith.divf %233, %234 : vector<1x4xf32>
    %236 = arith.mulf %230, %230 : vector<1x4xf32>
    %237 = arith.subf %235, %236 : vector<1x4xf32>
    %cst_78 = arith.constant 0.000000e+00 : f32
    %238 = vector.broadcast %cst_78 : f32 to vector<1x4xf32>
    %239 = arith.maximumf %237, %238 : vector<1x4xf32>
    %cst_79 = arith.constant 9.99999974E-6 : f32
    %240 = vector.broadcast %cst_79 : f32 to vector<1x4xf32>
    %241 = arith.addf %239, %240 : vector<1x4xf32>
    %242 = math.rsqrt %241 : vector<1x4xf32>
    %243 = arith.mulf %225, %242 : vector<1x4xf32>
    %244 = vector.broadcast %243 : vector<1x4xf32> to vector<20x4xf32>
    %245 = arith.mulf %143, %244 : vector<20x4xf32>
    %246 = arith.mulf %230, %243 : vector<1x4xf32>
    %247 = arith.subf %226, %246 : vector<1x4xf32>
    %248 = vector.broadcast %247 : vector<1x4xf32> to vector<20x4xf32>
    %249 = arith.addf %245, %248 : vector<20x4xf32>
    %250 = arith.truncf %249 : vector<20x4xf32> to vector<20x4xbf16>
    %251 = vector.extract_strided_slice %146 {offsets = [0, 0], sizes = [32, 32], strides = [1, 1]} : vector<68x32xbf16> to vector<32x32xbf16>
    %cst_80 = arith.constant dense<0.000000e+00> : vector<20x32xf32>
    %252 = tpu.matmul %198, %251, %cst_80 {dimension_numbers = #tpu.dot_dimension_numbers<[1], [0], [0], [1], [0, 0, 1, 1], [], []>} : vector<20x32xbf16>, vector<32x32xbf16>, vector<20x32xf32> -> vector<20x32xf32>
    %253 = vector.extract_strided_slice %146 {offsets = [32, 0], sizes = [32, 32], strides = [1, 1]} : vector<68x32xbf16> to vector<32x32xbf16>
    %cst_81 = arith.constant dense<0.000000e+00> : vector<20x32xf32>
    %254 = tpu.matmul %224, %253, %cst_81 {dimension_numbers = #tpu.dot_dimension_numbers<[1], [0], [0], [1], [0, 0, 1, 1], [], []>} : vector<20x32xbf16>, vector<32x32xbf16>, vector<20x32xf32> -> vector<20x32xf32>
    %255 = arith.addf %252, %254 : vector<20x32xf32>
    %256 = vector.extract_strided_slice %146 {offsets = [64, 0], sizes = [4, 32], strides = [1, 1]} : vector<68x32xbf16> to vector<4x32xbf16>
    %cst_82 = arith.constant dense<0.000000e+00> : vector<20x32xf32>
    %257 = tpu.matmul %250, %256, %cst_82 {dimension_numbers = #tpu.dot_dimension_numbers<[1], [0], [0], [1], [0, 0, 1, 1], [], []>} : vector<20x4xbf16>, vector<4x32xbf16>, vector<20x32xf32> -> vector<20x32xf32>
    %258 = arith.addf %255, %257 : vector<20x32xf32>
    %259 = vector.extract_strided_slice %144 {offsets = [6, 0], sizes = [1, 32], strides = [1, 1]} : vector<9x32xf32> to vector<1x32xf32>
    %260 = vector.broadcast %259 : vector<1x32xf32> to vector<20x32xf32>
    %261 = arith.addf %258, %260 : vector<20x32xf32>
    %262 = vector.extract_strided_slice %144 {offsets = [7, 0], sizes = [1, 32], strides = [1, 1]} : vector<9x32xf32> to vector<1x32xf32>
    %263 = vector.broadcast %262 : vector<1x32xf32> to vector<20x32xf32>
    %264 = arith.mulf %261, %263 : vector<20x32xf32>
    %cst_83 = arith.constant dense<0.000000e+00> : vector<20xf32>
    %265 = vector.multi_reduction <add>, %264, %cst_83 [1] : vector<20x32xf32> to vector<20xf32>
    %266 = vector.shape_cast %265 : vector<20xf32> to vector<20x1xf32>
    %267 = vector.extract_strided_slice %144 {offsets = [8, 0], sizes = [1, 1], strides = [1, 1]} : vector<9x32xf32> to vector<1x1xf32>
    %268 = vector.broadcast %267 : vector<1x1xf32> to vector<20x1xf32>
    %269 = arith.addf %266, %268 : vector<20x1xf32>
    %270 = arith.negf %269 : vector<20x1xf32>
    %271 = math.exp %270 : vector<20x1xf32>
    %cst_84 = arith.constant 1.000000e+00 : f32
    %272 = vector.broadcast %cst_84 : f32 to vector<20x1xf32>
    %273 = arith.addf %272, %271 : vector<20x1xf32>
    %274 = arith.divf %272, %273 : vector<20x1xf32>
    %275 = vector.broadcast %274 : vector<20x1xf32> to vector<20x32xf32>
    %276 = arith.mulf %261, %275 : vector<20x32xf32>
    %277 = arith.truncf %276 : vector<20x32xf32> to vector<20x32xbf16>
    %cst_85 = arith.constant dense<0.000000e+00> : vector<8x32xf32>
    %278 = tpu.matmul %170, %277, %cst_85 {dimension_numbers = #tpu.dot_dimension_numbers<[1], [0], [0], [1], [0, 0, 1, 1], [], []>} : vector<8x20xbf16>, vector<20x32xbf16>, vector<8x32xf32> -> vector<8x32xf32>
    %c0_86 = arith.constant 0 : index
    %c0_87 = arith.constant 0 : index
    %279 = vector.load %arg13[%c0_86, %c0_87] : memref<12x2xi32, #tpu.memory_space<vmem>>, vector<12x2xi32>
    %c0_88 = arith.constant 0 : index
    %c0_89 = arith.constant 0 : index
    %280 = vector.load %arg14[%c0_88, %c0_89] : memref<2x12xi32, #tpu.memory_space<vmem>>, vector<2x12xi32>
    %c0_90 = arith.constant 0 : index
    %c0_91 = arith.constant 0 : index
    %281 = vector.load %arg15[%c0_90, %c0_91] : memref<12x4xf32, #tpu.memory_space<vmem>>, vector<12x4xf32>
    %c0_92 = arith.constant 0 : index
    %c0_93 = arith.constant 0 : index
    %282 = vector.load %arg16[%c0_92, %c0_93] : memref<9x32xf32, #tpu.memory_space<vmem>>, vector<9x32xf32>
    %c0_94 = arith.constant 0 : index
    %c0_95 = arith.constant 0 : index
    %283 = vector.load %arg17[%c0_94, %c0_95] : memref<68x32xf32, #tpu.memory_space<vmem>>, vector<68x32xf32>
    %284 = arith.truncf %283 : vector<68x32xf32> to vector<68x32xbf16>
    %285 = tpu.iota {dimensions = array<i32: 1>} : vector<12x8xi32>
    %286 = vector.extract_strided_slice %279 {offsets = [0, 0], sizes = [12, 1], strides = [1, 1]} : vector<12x2xi32> to vector<12x1xi32>
    %287 = vector.broadcast %286 : vector<12x1xi32> to vector<12x8xi32>
    %288 = arith.cmpi eq, %285, %287 : vector<12x8xi32>
    %cst_96 = arith.constant 1.000000e+00 : f32
    %cst_97 = arith.constant 0.000000e+00 : f32
    %289 = vector.broadcast %cst_96 : f32 to vector<12x8xf32>
    %290 = vector.broadcast %cst_97 : f32 to vector<12x8xf32>
    %291 = arith.select %288, %289, %290 : vector<12x8xi1>, vector<12x8xf32>
    %292 = arith.truncf %291 : vector<12x8xf32> to vector<12x8xbf16>
    %293 = vector.extract_strided_slice %279 {offsets = [0, 1], sizes = [12, 1], strides = [1, 1]} : vector<12x2xi32> to vector<12x1xi32>
    %294 = vector.broadcast %293 : vector<12x1xi32> to vector<12x8xi32>
    %295 = arith.cmpi eq, %285, %294 : vector<12x8xi32>
    %cst_98 = arith.constant 1.000000e+00 : f32
    %cst_99 = arith.constant 0.000000e+00 : f32
    %296 = vector.broadcast %cst_98 : f32 to vector<12x8xf32>
    %297 = vector.broadcast %cst_99 : f32 to vector<12x8xf32>
    %298 = arith.select %295, %296, %297 : vector<12x8xi1>, vector<12x8xf32>
    %299 = arith.truncf %298 : vector<12x8xf32> to vector<12x8xbf16>
    %300 = tpu.iota {dimensions = array<i32: 0>} : vector<8x12xi32>
    %301 = vector.extract_strided_slice %280 {offsets = [1, 0], sizes = [1, 12], strides = [1, 1]} : vector<2x12xi32> to vector<1x12xi32>
    %302 = vector.broadcast %301 : vector<1x12xi32> to vector<8x12xi32>
    %303 = arith.cmpi eq, %300, %302 : vector<8x12xi32>
    %cst_100 = arith.constant 1.000000e+00 : f32
    %cst_101 = arith.constant 0.000000e+00 : f32
    %304 = vector.broadcast %cst_100 : f32 to vector<8x12xf32>
    %305 = vector.broadcast %cst_101 : f32 to vector<8x12xf32>
    %306 = arith.select %303, %304, %305 : vector<8x12xi1>, vector<8x12xf32>
    %307 = arith.truncf %306 : vector<8x12xf32> to vector<8x12xbf16>
    %cst_102 = arith.constant dense<0.000000e+00> : vector<12x32xf32>
    %308 = tpu.matmul %292, %3, %cst_102 {dimension_numbers = #tpu.dot_dimension_numbers<[1], [0], [0], [1], [0, 0, 1, 1], [], []>} : vector<12x8xbf16>, vector<8x32xbf16>, vector<12x32xf32> -> vector<12x32xf32>
    %cst_103 = arith.constant dense<0.000000e+00> : vector<12x32xf32>
    %309 = tpu.matmul %299, %3, %cst_103 {dimension_numbers = #tpu.dot_dimension_numbers<[1], [0], [0], [1], [0, 0, 1, 1], [], []>} : vector<12x8xbf16>, vector<8x32xbf16>, vector<12x32xf32> -> vector<12x32xf32>
    %310 = vector.extract_strided_slice %282 {offsets = [0, 0], sizes = [1, 32], strides = [1, 1]} : vector<9x32xf32> to vector<1x32xf32>
    %311 = vector.extract_strided_slice %282 {offsets = [1, 0], sizes = [1, 32], strides = [1, 1]} : vector<9x32xf32> to vector<1x32xf32>
    %cst_104 = arith.constant dense<0.000000e+00> : vector<32xf32>
    %312 = vector.multi_reduction <add>, %308, %cst_104 [0] : vector<12x32xf32> to vector<32xf32>
    %313 = vector.shape_cast %312 : vector<32xf32> to vector<1x32xf32>
    %cst_105 = arith.constant 1.200000e+01 : f32
    %314 = vector.broadcast %cst_105 : f32 to vector<1x32xf32>
    %315 = arith.divf %313, %314 : vector<1x32xf32>
    %316 = arith.mulf %308, %308 : vector<12x32xf32>
    %cst_106 = arith.constant dense<0.000000e+00> : vector<32xf32>
    %317 = vector.multi_reduction <add>, %316, %cst_106 [0] : vector<12x32xf32> to vector<32xf32>
    %318 = vector.shape_cast %317 : vector<32xf32> to vector<1x32xf32>
    %cst_107 = arith.constant 1.200000e+01 : f32
    %319 = vector.broadcast %cst_107 : f32 to vector<1x32xf32>
    %320 = arith.divf %318, %319 : vector<1x32xf32>
    %321 = arith.mulf %315, %315 : vector<1x32xf32>
    %322 = arith.subf %320, %321 : vector<1x32xf32>
    %cst_108 = arith.constant 0.000000e+00 : f32
    %323 = vector.broadcast %cst_108 : f32 to vector<1x32xf32>
    %324 = arith.maximumf %322, %323 : vector<1x32xf32>
    %cst_109 = arith.constant 9.99999974E-6 : f32
    %325 = vector.broadcast %cst_109 : f32 to vector<1x32xf32>
    %326 = arith.addf %324, %325 : vector<1x32xf32>
    %327 = math.rsqrt %326 : vector<1x32xf32>
    %328 = arith.mulf %310, %327 : vector<1x32xf32>
    %329 = vector.broadcast %328 : vector<1x32xf32> to vector<12x32xf32>
    %330 = arith.mulf %308, %329 : vector<12x32xf32>
    %331 = arith.mulf %315, %328 : vector<1x32xf32>
    %332 = arith.subf %311, %331 : vector<1x32xf32>
    %333 = vector.broadcast %332 : vector<1x32xf32> to vector<12x32xf32>
    %334 = arith.addf %330, %333 : vector<12x32xf32>
    %335 = arith.truncf %334 : vector<12x32xf32> to vector<12x32xbf16>
    %336 = vector.extract_strided_slice %282 {offsets = [2, 0], sizes = [1, 32], strides = [1, 1]} : vector<9x32xf32> to vector<1x32xf32>
    %337 = vector.extract_strided_slice %282 {offsets = [3, 0], sizes = [1, 32], strides = [1, 1]} : vector<9x32xf32> to vector<1x32xf32>
    %cst_110 = arith.constant dense<0.000000e+00> : vector<32xf32>
    %338 = vector.multi_reduction <add>, %309, %cst_110 [0] : vector<12x32xf32> to vector<32xf32>
    %339 = vector.shape_cast %338 : vector<32xf32> to vector<1x32xf32>
    %cst_111 = arith.constant 1.200000e+01 : f32
    %340 = vector.broadcast %cst_111 : f32 to vector<1x32xf32>
    %341 = arith.divf %339, %340 : vector<1x32xf32>
    %342 = arith.mulf %309, %309 : vector<12x32xf32>
    %cst_112 = arith.constant dense<0.000000e+00> : vector<32xf32>
    %343 = vector.multi_reduction <add>, %342, %cst_112 [0] : vector<12x32xf32> to vector<32xf32>
    %344 = vector.shape_cast %343 : vector<32xf32> to vector<1x32xf32>
    %cst_113 = arith.constant 1.200000e+01 : f32
    %345 = vector.broadcast %cst_113 : f32 to vector<1x32xf32>
    %346 = arith.divf %344, %345 : vector<1x32xf32>
    %347 = arith.mulf %341, %341 : vector<1x32xf32>
    %348 = arith.subf %346, %347 : vector<1x32xf32>
    %cst_114 = arith.constant 0.000000e+00 : f32
    %349 = vector.broadcast %cst_114 : f32 to vector<1x32xf32>
    %350 = arith.maximumf %348, %349 : vector<1x32xf32>
    %cst_115 = arith.constant 9.99999974E-6 : f32
    %351 = vector.broadcast %cst_115 : f32 to vector<1x32xf32>
    %352 = arith.addf %350, %351 : vector<1x32xf32>
    %353 = math.rsqrt %352 : vector<1x32xf32>
    %354 = arith.mulf %336, %353 : vector<1x32xf32>
    %355 = vector.broadcast %354 : vector<1x32xf32> to vector<12x32xf32>
    %356 = arith.mulf %309, %355 : vector<12x32xf32>
    %357 = arith.mulf %341, %354 : vector<1x32xf32>
    %358 = arith.subf %337, %357 : vector<1x32xf32>
    %359 = vector.broadcast %358 : vector<1x32xf32> to vector<12x32xf32>
    %360 = arith.addf %356, %359 : vector<12x32xf32>
    %361 = arith.truncf %360 : vector<12x32xf32> to vector<12x32xbf16>
    %362 = vector.extract_strided_slice %282 {offsets = [4, 0], sizes = [1, 4], strides = [1, 1]} : vector<9x32xf32> to vector<1x4xf32>
    %363 = vector.extract_strided_slice %282 {offsets = [5, 0], sizes = [1, 4], strides = [1, 1]} : vector<9x32xf32> to vector<1x4xf32>
    %cst_116 = arith.constant dense<0.000000e+00> : vector<4xf32>
    %364 = vector.multi_reduction <add>, %281, %cst_116 [0] : vector<12x4xf32> to vector<4xf32>
    %365 = vector.shape_cast %364 : vector<4xf32> to vector<1x4xf32>
    %cst_117 = arith.constant 1.200000e+01 : f32
    %366 = vector.broadcast %cst_117 : f32 to vector<1x4xf32>
    %367 = arith.divf %365, %366 : vector<1x4xf32>
    %368 = arith.mulf %281, %281 : vector<12x4xf32>
    %cst_118 = arith.constant dense<0.000000e+00> : vector<4xf32>
    %369 = vector.multi_reduction <add>, %368, %cst_118 [0] : vector<12x4xf32> to vector<4xf32>
    %370 = vector.shape_cast %369 : vector<4xf32> to vector<1x4xf32>
    %cst_119 = arith.constant 1.200000e+01 : f32
    %371 = vector.broadcast %cst_119 : f32 to vector<1x4xf32>
    %372 = arith.divf %370, %371 : vector<1x4xf32>
    %373 = arith.mulf %367, %367 : vector<1x4xf32>
    %374 = arith.subf %372, %373 : vector<1x4xf32>
    %cst_120 = arith.constant 0.000000e+00 : f32
    %375 = vector.broadcast %cst_120 : f32 to vector<1x4xf32>
    %376 = arith.maximumf %374, %375 : vector<1x4xf32>
    %cst_121 = arith.constant 9.99999974E-6 : f32
    %377 = vector.broadcast %cst_121 : f32 to vector<1x4xf32>
    %378 = arith.addf %376, %377 : vector<1x4xf32>
    %379 = math.rsqrt %378 : vector<1x4xf32>
    %380 = arith.mulf %362, %379 : vector<1x4xf32>
    %381 = vector.broadcast %380 : vector<1x4xf32> to vector<12x4xf32>
    %382 = arith.mulf %281, %381 : vector<12x4xf32>
    %383 = arith.mulf %367, %380 : vector<1x4xf32>
    %384 = arith.subf %363, %383 : vector<1x4xf32>
    %385 = vector.broadcast %384 : vector<1x4xf32> to vector<12x4xf32>
    %386 = arith.addf %382, %385 : vector<12x4xf32>
    %387 = arith.truncf %386 : vector<12x4xf32> to vector<12x4xbf16>
    %388 = vector.extract_strided_slice %284 {offsets = [0, 0], sizes = [32, 32], strides = [1, 1]} : vector<68x32xbf16> to vector<32x32xbf16>
    %cst_122 = arith.constant dense<0.000000e+00> : vector<12x32xf32>
    %389 = tpu.matmul %335, %388, %cst_122 {dimension_numbers = #tpu.dot_dimension_numbers<[1], [0], [0], [1], [0, 0, 1, 1], [], []>} : vector<12x32xbf16>, vector<32x32xbf16>, vector<12x32xf32> -> vector<12x32xf32>
    %390 = vector.extract_strided_slice %284 {offsets = [32, 0], sizes = [32, 32], strides = [1, 1]} : vector<68x32xbf16> to vector<32x32xbf16>
    %cst_123 = arith.constant dense<0.000000e+00> : vector<12x32xf32>
    %391 = tpu.matmul %361, %390, %cst_123 {dimension_numbers = #tpu.dot_dimension_numbers<[1], [0], [0], [1], [0, 0, 1, 1], [], []>} : vector<12x32xbf16>, vector<32x32xbf16>, vector<12x32xf32> -> vector<12x32xf32>
    %392 = arith.addf %389, %391 : vector<12x32xf32>
    %393 = vector.extract_strided_slice %284 {offsets = [64, 0], sizes = [4, 32], strides = [1, 1]} : vector<68x32xbf16> to vector<4x32xbf16>
    %cst_124 = arith.constant dense<0.000000e+00> : vector<12x32xf32>
    %394 = tpu.matmul %387, %393, %cst_124 {dimension_numbers = #tpu.dot_dimension_numbers<[1], [0], [0], [1], [0, 0, 1, 1], [], []>} : vector<12x4xbf16>, vector<4x32xbf16>, vector<12x32xf32> -> vector<12x32xf32>
    %395 = arith.addf %392, %394 : vector<12x32xf32>
    %396 = vector.extract_strided_slice %282 {offsets = [6, 0], sizes = [1, 32], strides = [1, 1]} : vector<9x32xf32> to vector<1x32xf32>
    %397 = vector.broadcast %396 : vector<1x32xf32> to vector<12x32xf32>
    %398 = arith.addf %395, %397 : vector<12x32xf32>
    %399 = vector.extract_strided_slice %282 {offsets = [7, 0], sizes = [1, 32], strides = [1, 1]} : vector<9x32xf32> to vector<1x32xf32>
    %400 = vector.broadcast %399 : vector<1x32xf32> to vector<12x32xf32>
    %401 = arith.mulf %398, %400 : vector<12x32xf32>
    %cst_125 = arith.constant dense<0.000000e+00> : vector<12xf32>
    %402 = vector.multi_reduction <add>, %401, %cst_125 [1] : vector<12x32xf32> to vector<12xf32>
    %403 = vector.shape_cast %402 : vector<12xf32> to vector<12x1xf32>
    %404 = vector.extract_strided_slice %282 {offsets = [8, 0], sizes = [1, 1], strides = [1, 1]} : vector<9x32xf32> to vector<1x1xf32>
    %405 = vector.broadcast %404 : vector<1x1xf32> to vector<12x1xf32>
    %406 = arith.addf %403, %405 : vector<12x1xf32>
    %407 = arith.negf %406 : vector<12x1xf32>
    %408 = math.exp %407 : vector<12x1xf32>
    %cst_126 = arith.constant 1.000000e+00 : f32
    %409 = vector.broadcast %cst_126 : f32 to vector<12x1xf32>
    %410 = arith.addf %409, %408 : vector<12x1xf32>
    %411 = arith.divf %409, %410 : vector<12x1xf32>
    %412 = vector.broadcast %411 : vector<12x1xf32> to vector<12x32xf32>
    %413 = arith.mulf %398, %412 : vector<12x32xf32>
    %414 = arith.truncf %413 : vector<12x32xf32> to vector<12x32xbf16>
    %cst_127 = arith.constant dense<0.000000e+00> : vector<8x32xf32>
    %415 = tpu.matmul %307, %414, %cst_127 {dimension_numbers = #tpu.dot_dimension_numbers<[1], [0], [0], [1], [0, 0, 1, 1], [], []>} : vector<8x12xbf16>, vector<12x32xbf16>, vector<8x32xf32> -> vector<8x32xf32>
    %c0_128 = arith.constant 0 : index
    %c0_129 = arith.constant 0 : index
    %416 = vector.load %arg18[%c0_128, %c0_129] : memref<5x32xf32, #tpu.memory_space<vmem>>, vector<5x32xf32>
    %c0_130 = arith.constant 0 : index
    %c0_131 = arith.constant 0 : index
    %417 = vector.load %arg19[%c0_130, %c0_131] : memref<64x32xf32, #tpu.memory_space<vmem>>, vector<64x32xf32>
    %418 = arith.truncf %417 : vector<64x32xf32> to vector<64x32xbf16>
    %419 = vector.extract_strided_slice %416 {offsets = [4, 0], sizes = [1, 32], strides = [1, 1]} : vector<5x32xf32> to vector<1x32xf32>
    %420 = vector.extract_strided_slice %416 {offsets = [0, 0], sizes = [1, 32], strides = [1, 1]} : vector<5x32xf32> to vector<1x32xf32>
    %421 = vector.extract_strided_slice %416 {offsets = [1, 0], sizes = [1, 32], strides = [1, 1]} : vector<5x32xf32> to vector<1x32xf32>
    %cst_132 = arith.constant dense<0.000000e+00> : vector<32xf32>
    %422 = vector.multi_reduction <add>, %0, %cst_132 [0] : vector<16x32xf32> to vector<32xf32>
    %423 = vector.shape_cast %422 : vector<32xf32> to vector<1x32xf32>
    %cst_133 = arith.constant 1.600000e+01 : f32
    %424 = vector.broadcast %cst_133 : f32 to vector<1x32xf32>
    %425 = arith.divf %423, %424 : vector<1x32xf32>
    %426 = arith.mulf %0, %0 : vector<16x32xf32>
    %cst_134 = arith.constant dense<0.000000e+00> : vector<32xf32>
    %427 = vector.multi_reduction <add>, %426, %cst_134 [0] : vector<16x32xf32> to vector<32xf32>
    %428 = vector.shape_cast %427 : vector<32xf32> to vector<1x32xf32>
    %cst_135 = arith.constant 1.600000e+01 : f32
    %429 = vector.broadcast %cst_135 : f32 to vector<1x32xf32>
    %430 = arith.divf %428, %429 : vector<1x32xf32>
    %431 = arith.mulf %425, %425 : vector<1x32xf32>
    %432 = arith.subf %430, %431 : vector<1x32xf32>
    %cst_136 = arith.constant 0.000000e+00 : f32
    %433 = vector.broadcast %cst_136 : f32 to vector<1x32xf32>
    %434 = arith.maximumf %432, %433 : vector<1x32xf32>
    %cst_137 = arith.constant 9.99999974E-6 : f32
    %435 = vector.broadcast %cst_137 : f32 to vector<1x32xf32>
    %436 = arith.addf %434, %435 : vector<1x32xf32>
    %437 = math.rsqrt %436 : vector<1x32xf32>
    %438 = arith.mulf %420, %437 : vector<1x32xf32>
    %439 = vector.broadcast %438 : vector<1x32xf32> to vector<16x32xf32>
    %440 = arith.mulf %0, %439 : vector<16x32xf32>
    %441 = arith.mulf %425, %438 : vector<1x32xf32>
    %442 = arith.subf %421, %441 : vector<1x32xf32>
    %443 = vector.broadcast %442 : vector<1x32xf32> to vector<16x32xf32>
    %444 = arith.addf %440, %443 : vector<16x32xf32>
    %445 = arith.truncf %444 : vector<16x32xf32> to vector<16x32xbf16>
    %446 = vector.extract_strided_slice %418 {offsets = [0, 0], sizes = [32, 32], strides = [1, 1]} : vector<64x32xbf16> to vector<32x32xbf16>
    %cst_138 = arith.constant dense<0.000000e+00> : vector<16x32xf32>
    %447 = tpu.matmul %445, %446, %cst_138 {dimension_numbers = #tpu.dot_dimension_numbers<[1], [0], [0], [1], [0, 0, 1, 1], [], []>} : vector<16x32xbf16>, vector<32x32xbf16>, vector<16x32xf32> -> vector<16x32xf32>
    %448 = vector.broadcast %419 : vector<1x32xf32> to vector<16x32xf32>
    %449 = arith.addf %448, %447 : vector<16x32xf32>
    %450 = vector.extract_strided_slice %416 {offsets = [2, 0], sizes = [1, 32], strides = [1, 1]} : vector<5x32xf32> to vector<1x32xf32>
    %451 = vector.extract_strided_slice %416 {offsets = [3, 0], sizes = [1, 32], strides = [1, 1]} : vector<5x32xf32> to vector<1x32xf32>
    %cst_139 = arith.constant dense<0.000000e+00> : vector<32xf32>
    %452 = vector.multi_reduction <add>, %140, %cst_139 [0] : vector<16x32xf32> to vector<32xf32>
    %453 = vector.shape_cast %452 : vector<32xf32> to vector<1x32xf32>
    %cst_140 = arith.constant 1.600000e+01 : f32
    %454 = vector.broadcast %cst_140 : f32 to vector<1x32xf32>
    %455 = arith.divf %453, %454 : vector<1x32xf32>
    %456 = arith.mulf %140, %140 : vector<16x32xf32>
    %cst_141 = arith.constant dense<0.000000e+00> : vector<32xf32>
    %457 = vector.multi_reduction <add>, %456, %cst_141 [0] : vector<16x32xf32> to vector<32xf32>
    %458 = vector.shape_cast %457 : vector<32xf32> to vector<1x32xf32>
    %cst_142 = arith.constant 1.600000e+01 : f32
    %459 = vector.broadcast %cst_142 : f32 to vector<1x32xf32>
    %460 = arith.divf %458, %459 : vector<1x32xf32>
    %461 = arith.mulf %455, %455 : vector<1x32xf32>
    %462 = arith.subf %460, %461 : vector<1x32xf32>
    %cst_143 = arith.constant 0.000000e+00 : f32
    %463 = vector.broadcast %cst_143 : f32 to vector<1x32xf32>
    %464 = arith.maximumf %462, %463 : vector<1x32xf32>
    %cst_144 = arith.constant 9.99999974E-6 : f32
    %465 = vector.broadcast %cst_144 : f32 to vector<1x32xf32>
    %466 = arith.addf %464, %465 : vector<1x32xf32>
    %467 = math.rsqrt %466 : vector<1x32xf32>
    %468 = arith.mulf %450, %467 : vector<1x32xf32>
    %469 = vector.broadcast %468 : vector<1x32xf32> to vector<16x32xf32>
    %470 = arith.mulf %140, %469 : vector<16x32xf32>
    %471 = arith.mulf %455, %468 : vector<1x32xf32>
    %472 = arith.subf %451, %471 : vector<1x32xf32>
    %473 = vector.broadcast %472 : vector<1x32xf32> to vector<16x32xf32>
    %474 = arith.addf %470, %473 : vector<16x32xf32>
    %475 = arith.truncf %474 : vector<16x32xf32> to vector<16x32xbf16>
    %476 = vector.extract_strided_slice %418 {offsets = [32, 0], sizes = [32, 32], strides = [1, 1]} : vector<64x32xbf16> to vector<32x32xbf16>
    %cst_145 = arith.constant dense<0.000000e+00> : vector<16x32xf32>
    %477 = tpu.matmul %475, %476, %cst_145 {dimension_numbers = #tpu.dot_dimension_numbers<[1], [0], [0], [1], [0, 0, 1, 1], [], []>} : vector<16x32xbf16>, vector<32x32xbf16>, vector<16x32xf32> -> vector<16x32xf32>
    %478 = arith.addf %449, %477 : vector<16x32xf32>
    %479 = arith.addf %0, %478 : vector<16x32xf32>
    %480 = arith.negf %479 : vector<16x32xf32>
    %481 = math.exp %480 : vector<16x32xf32>
    %cst_146 = arith.constant 1.000000e+00 : f32
    %482 = vector.broadcast %cst_146 : f32 to vector<16x32xf32>
    %483 = arith.addf %482, %481 : vector<16x32xf32>
    %484 = arith.divf %482, %483 : vector<16x32xf32>
    %485 = arith.mulf %479, %484 : vector<16x32xf32>
    %c0_147 = arith.constant 0 : index
    %c0_148 = arith.constant 0 : index
    %486 = vector.load %arg23[%c0_147, %c0_148] : memref<16x32xf32, #tpu.memory_space<vmem>>, vector<16x32xf32>
    tpu.vector_store %arg23[%c0_147, %c0_148], %485 {strides = array<i32>} : memref<16x32xf32, #tpu.memory_space<vmem>>, vector<16x32xf32>,
    %c0_149 = arith.constant 0 : index
    %c0_150 = arith.constant 0 : index
    %487 = vector.load %arg20[%c0_149, %c0_150] : memref<7x32xf32, #tpu.memory_space<vmem>>, vector<7x32xf32>
    %c0_151 = arith.constant 0 : index
    %c0_152 = arith.constant 0 : index
    %488 = vector.load %arg21[%c0_151, %c0_152] : memref<96x32xf32, #tpu.memory_space<vmem>>, vector<96x32xf32>
    %489 = arith.truncf %488 : vector<96x32xf32> to vector<96x32xbf16>
    %490 = vector.extract_strided_slice %487 {offsets = [6, 0], sizes = [1, 32], strides = [1, 1]} : vector<7x32xf32> to vector<1x32xf32>
    %491 = vector.extract_strided_slice %487 {offsets = [0, 0], sizes = [1, 32], strides = [1, 1]} : vector<7x32xf32> to vector<1x32xf32>
    %492 = vector.extract_strided_slice %487 {offsets = [1, 0], sizes = [1, 32], strides = [1, 1]} : vector<7x32xf32> to vector<1x32xf32>
    %cst_153 = arith.constant dense<0.000000e+00> : vector<32xf32>
    %493 = vector.multi_reduction <add>, %1, %cst_153 [0] : vector<8x32xf32> to vector<32xf32>
    %494 = vector.shape_cast %493 : vector<32xf32> to vector<1x32xf32>
    %cst_154 = arith.constant 8.000000e+00 : f32
    %495 = vector.broadcast %cst_154 : f32 to vector<1x32xf32>
    %496 = arith.divf %494, %495 : vector<1x32xf32>
    %497 = arith.mulf %1, %1 : vector<8x32xf32>
    %cst_155 = arith.constant dense<0.000000e+00> : vector<32xf32>
    %498 = vector.multi_reduction <add>, %497, %cst_155 [0] : vector<8x32xf32> to vector<32xf32>
    %499 = vector.shape_cast %498 : vector<32xf32> to vector<1x32xf32>
    %cst_156 = arith.constant 8.000000e+00 : f32
    %500 = vector.broadcast %cst_156 : f32 to vector<1x32xf32>
    %501 = arith.divf %499, %500 : vector<1x32xf32>
    %502 = arith.mulf %496, %496 : vector<1x32xf32>
    %503 = arith.subf %501, %502 : vector<1x32xf32>
    %cst_157 = arith.constant 0.000000e+00 : f32
    %504 = vector.broadcast %cst_157 : f32 to vector<1x32xf32>
    %505 = arith.maximumf %503, %504 : vector<1x32xf32>
    %cst_158 = arith.constant 9.99999974E-6 : f32
    %506 = vector.broadcast %cst_158 : f32 to vector<1x32xf32>
    %507 = arith.addf %505, %506 : vector<1x32xf32>
    %508 = math.rsqrt %507 : vector<1x32xf32>
    %509 = arith.mulf %491, %508 : vector<1x32xf32>
    %510 = vector.broadcast %509 : vector<1x32xf32> to vector<8x32xf32>
    %511 = arith.mulf %1, %510 : vector<8x32xf32>
    %512 = arith.mulf %496, %509 : vector<1x32xf32>
    %513 = arith.subf %492, %512 : vector<1x32xf32>
    %514 = vector.broadcast %513 : vector<1x32xf32> to vector<8x32xf32>
    %515 = arith.addf %511, %514 : vector<8x32xf32>
    %516 = arith.truncf %515 : vector<8x32xf32> to vector<8x32xbf16>
    %517 = vector.extract_strided_slice %489 {offsets = [0, 0], sizes = [32, 32], strides = [1, 1]} : vector<96x32xbf16> to vector<32x32xbf16>
    %cst_159 = arith.constant dense<0.000000e+00> : vector<8x32xf32>
    %518 = tpu.matmul %516, %517, %cst_159 {dimension_numbers = #tpu.dot_dimension_numbers<[1], [0], [0], [1], [0, 0, 1, 1], [], []>} : vector<8x32xbf16>, vector<32x32xbf16>, vector<8x32xf32> -> vector<8x32xf32>
    %519 = vector.broadcast %490 : vector<1x32xf32> to vector<8x32xf32>
    %520 = arith.addf %519, %518 : vector<8x32xf32>
    %521 = vector.extract_strided_slice %487 {offsets = [2, 0], sizes = [1, 32], strides = [1, 1]} : vector<7x32xf32> to vector<1x32xf32>
    %522 = vector.extract_strided_slice %487 {offsets = [3, 0], sizes = [1, 32], strides = [1, 1]} : vector<7x32xf32> to vector<1x32xf32>
    %cst_160 = arith.constant dense<0.000000e+00> : vector<32xf32>
    %523 = vector.multi_reduction <add>, %278, %cst_160 [0] : vector<8x32xf32> to vector<32xf32>
    %524 = vector.shape_cast %523 : vector<32xf32> to vector<1x32xf32>
    %cst_161 = arith.constant 8.000000e+00 : f32
    %525 = vector.broadcast %cst_161 : f32 to vector<1x32xf32>
    %526 = arith.divf %524, %525 : vector<1x32xf32>
    %527 = arith.mulf %278, %278 : vector<8x32xf32>
    %cst_162 = arith.constant dense<0.000000e+00> : vector<32xf32>
    %528 = vector.multi_reduction <add>, %527, %cst_162 [0] : vector<8x32xf32> to vector<32xf32>
    %529 = vector.shape_cast %528 : vector<32xf32> to vector<1x32xf32>
    %cst_163 = arith.constant 8.000000e+00 : f32
    %530 = vector.broadcast %cst_163 : f32 to vector<1x32xf32>
    %531 = arith.divf %529, %530 : vector<1x32xf32>
    %532 = arith.mulf %526, %526 : vector<1x32xf32>
    %533 = arith.subf %531, %532 : vector<1x32xf32>
    %cst_164 = arith.constant 0.000000e+00 : f32
    %534 = vector.broadcast %cst_164 : f32 to vector<1x32xf32>
    %535 = arith.maximumf %533, %534 : vector<1x32xf32>
    %cst_165 = arith.constant 9.99999974E-6 : f32
    %536 = vector.broadcast %cst_165 : f32 to vector<1x32xf32>
    %537 = arith.addf %535, %536 : vector<1x32xf32>
    %538 = math.rsqrt %537 : vector<1x32xf32>
    %539 = arith.mulf %521, %538 : vector<1x32xf32>
    %540 = vector.broadcast %539 : vector<1x32xf32> to vector<8x32xf32>
    %541 = arith.mulf %278, %540 : vector<8x32xf32>
    %542 = arith.mulf %526, %539 : vector<1x32xf32>
    %543 = arith.subf %522, %542 : vector<1x32xf32>
    %544 = vector.broadcast %543 : vector<1x32xf32> to vector<8x32xf32>
    %545 = arith.addf %541, %544 : vector<8x32xf32>
    %546 = arith.truncf %545 : vector<8x32xf32> to vector<8x32xbf16>
    %547 = vector.extract_strided_slice %489 {offsets = [32, 0], sizes = [32, 32], strides = [1, 1]} : vector<96x32xbf16> to vector<32x32xbf16>
    %cst_166 = arith.constant dense<0.000000e+00> : vector<8x32xf32>
    %548 = tpu.matmul %546, %547, %cst_166 {dimension_numbers = #tpu.dot_dimension_numbers<[1], [0], [0], [1], [0, 0, 1, 1], [], []>} : vector<8x32xbf16>, vector<32x32xbf16>, vector<8x32xf32> -> vector<8x32xf32>
    %549 = arith.addf %520, %548 : vector<8x32xf32>
    %550 = vector.extract_strided_slice %487 {offsets = [4, 0], sizes = [1, 32], strides = [1, 1]} : vector<7x32xf32> to vector<1x32xf32>
    %551 = vector.extract_strided_slice %487 {offsets = [5, 0], sizes = [1, 32], strides = [1, 1]} : vector<7x32xf32> to vector<1x32xf32>
    %cst_167 = arith.constant dense<0.000000e+00> : vector<32xf32>
    %552 = vector.multi_reduction <add>, %415, %cst_167 [0] : vector<8x32xf32> to vector<32xf32>
    %553 = vector.shape_cast %552 : vector<32xf32> to vector<1x32xf32>
    %cst_168 = arith.constant 8.000000e+00 : f32
    %554 = vector.broadcast %cst_168 : f32 to vector<1x32xf32>
    %555 = arith.divf %553, %554 : vector<1x32xf32>
    %556 = arith.mulf %415, %415 : vector<8x32xf32>
    %cst_169 = arith.constant dense<0.000000e+00> : vector<32xf32>
    %557 = vector.multi_reduction <add>, %556, %cst_169 [0] : vector<8x32xf32> to vector<32xf32>
    %558 = vector.shape_cast %557 : vector<32xf32> to vector<1x32xf32>
    %cst_170 = arith.constant 8.000000e+00 : f32
    %559 = vector.broadcast %cst_170 : f32 to vector<1x32xf32>
    %560 = arith.divf %558, %559 : vector<1x32xf32>
    %561 = arith.mulf %555, %555 : vector<1x32xf32>
    %562 = arith.subf %560, %561 : vector<1x32xf32>
    %cst_171 = arith.constant 0.000000e+00 : f32
    %563 = vector.broadcast %cst_171 : f32 to vector<1x32xf32>
    %564 = arith.maximumf %562, %563 : vector<1x32xf32>
    %cst_172 = arith.constant 9.99999974E-6 : f32
    %565 = vector.broadcast %cst_172 : f32 to vector<1x32xf32>
    %566 = arith.addf %564, %565 : vector<1x32xf32>
    %567 = math.rsqrt %566 : vector<1x32xf32>
    %568 = arith.mulf %550, %567 : vector<1x32xf32>
    %569 = vector.broadcast %568 : vector<1x32xf32> to vector<8x32xf32>
    %570 = arith.mulf %415, %569 : vector<8x32xf32>
    %571 = arith.mulf %555, %568 : vector<1x32xf32>
    %572 = arith.subf %551, %571 : vector<1x32xf32>
    %573 = vector.broadcast %572 : vector<1x32xf32> to vector<8x32xf32>
    %574 = arith.addf %570, %573 : vector<8x32xf32>
    %575 = arith.truncf %574 : vector<8x32xf32> to vector<8x32xbf16>
    %576 = vector.extract_strided_slice %489 {offsets = [64, 0], sizes = [32, 32], strides = [1, 1]} : vector<96x32xbf16> to vector<32x32xbf16>
    %cst_173 = arith.constant dense<0.000000e+00> : vector<8x32xf32>
    %577 = tpu.matmul %575, %576, %cst_173 {dimension_numbers = #tpu.dot_dimension_numbers<[1], [0], [0], [1], [0, 0, 1, 1], [], []>} : vector<8x32xbf16>, vector<32x32xbf16>, vector<8x32xf32> -> vector<8x32xf32>
    %578 = arith.addf %549, %577 : vector<8x32xf32>
    %579 = arith.addf %1, %578 : vector<8x32xf32>
    %580 = arith.negf %579 : vector<8x32xf32>
    %581 = math.exp %580 : vector<8x32xf32>
    %cst_174 = arith.constant 1.000000e+00 : f32
    %582 = vector.broadcast %cst_174 : f32 to vector<8x32xf32>
    %583 = arith.addf %582, %581 : vector<8x32xf32>
    %584 = arith.divf %582, %583 : vector<8x32xf32>
    %585 = arith.mulf %579, %584 : vector<8x32xf32>
    %c0_175 = arith.constant 0 : index
    %c0_176 = arith.constant 0 : index
    %586 = vector.load %arg24[%c0_175, %c0_176] : memref<8x32xf32, #tpu.memory_space<vmem>>, vector<8x32xf32>
    tpu.vector_store %arg24[%c0_175, %c0_176], %585 {strides = array<i32>} : memref<8x32xf32, #tpu.memory_space<vmem>>, vector<8x32xf32>,
    %c0_177 = arith.constant 0 : index
    %c0_178 = arith.constant 0 : index
    %587 = vector.load %arg2[%c0_177, %c0_178] : memref<16x8xf32, #tpu.memory_space<vmem>>, vector<16x8xf32>
    %588 = arith.truncf %587 : vector<16x8xf32> to vector<16x8xbf16>
    %c0_179 = arith.constant 0 : index
    %c0_180 = arith.constant 0 : index
    %589 = vector.load %arg3[%c0_179, %c0_180] : memref<24x2xi32, #tpu.memory_space<vmem>>, vector<24x2xi32>
    %c0_181 = arith.constant 0 : index
    %c0_182 = arith.constant 0 : index
    %590 = vector.load %arg4[%c0_181, %c0_182] : memref<2x24xi32, #tpu.memory_space<vmem>>, vector<2x24xi32>
    %591 = tpu.iota {dimensions = array<i32: 1>} : vector<24x16xi32>
    %592 = tpu.iota {dimensions = array<i32: 0>} : vector<16x24xi32>
    %593 = vector.extract_strided_slice %589 {offsets = [0, 0], sizes = [24, 1], strides = [1, 1]} : vector<24x2xi32> to vector<24x1xi32>
    %594 = vector.broadcast %593 : vector<24x1xi32> to vector<24x16xi32>
    %595 = arith.cmpi eq, %591, %594 : vector<24x16xi32>
    %cst_183 = arith.constant 1.000000e+00 : f32
    %cst_184 = arith.constant 0.000000e+00 : f32
    %596 = vector.broadcast %cst_183 : f32 to vector<24x16xf32>
    %597 = vector.broadcast %cst_184 : f32 to vector<24x16xf32>
    %598 = arith.select %595, %596, %597 : vector<24x16xi1>, vector<24x16xf32>
    %599 = arith.truncf %598 : vector<24x16xf32> to vector<24x16xbf16>
    %600 = vector.extract_strided_slice %589 {offsets = [0, 1], sizes = [24, 1], strides = [1, 1]} : vector<24x2xi32> to vector<24x1xi32>
    %601 = vector.broadcast %600 : vector<24x1xi32> to vector<24x16xi32>
    %602 = arith.cmpi eq, %591, %601 : vector<24x16xi32>
    %cst_185 = arith.constant 1.000000e+00 : f32
    %cst_186 = arith.constant 0.000000e+00 : f32
    %603 = vector.broadcast %cst_185 : f32 to vector<24x16xf32>
    %604 = vector.broadcast %cst_186 : f32 to vector<24x16xf32>
    %605 = arith.select %602, %603, %604 : vector<24x16xi1>, vector<24x16xf32>
    %606 = arith.truncf %605 : vector<24x16xf32> to vector<24x16xbf16>
    %607 = vector.extract_strided_slice %590 {offsets = [0, 0], sizes = [1, 24], strides = [1, 1]} : vector<2x24xi32> to vector<1x24xi32>
    %608 = vector.broadcast %607 : vector<1x24xi32> to vector<16x24xi32>
    %609 = arith.cmpi eq, %592, %608 : vector<16x24xi32>
    %cst_187 = arith.constant 1.000000e+00 : f32
    %cst_188 = arith.constant 0.000000e+00 : f32
    %610 = vector.broadcast %cst_187 : f32 to vector<16x24xf32>
    %611 = vector.broadcast %cst_188 : f32 to vector<16x24xf32>
    %612 = arith.select %609, %610, %611 : vector<16x24xi1>, vector<16x24xf32>
    %613 = arith.truncf %612 : vector<16x24xf32> to vector<16x24xbf16>
    %cst_189 = arith.constant dense<0.000000e+00> : vector<24x8xf32>
    %614 = tpu.matmul %599, %588, %cst_189 {dimension_numbers = #tpu.dot_dimension_numbers<[1], [0], [0], [1], [0, 0, 1, 1], [], []>} : vector<24x16xbf16>, vector<16x8xbf16>, vector<24x8xf32> -> vector<24x8xf32>
    %cst_190 = arith.constant dense<0.000000e+00> : vector<24x8xf32>
    %615 = tpu.matmul %606, %588, %cst_190 {dimension_numbers = #tpu.dot_dimension_numbers<[1], [0], [0], [1], [0, 0, 1, 1], [], []>} : vector<24x16xbf16>, vector<16x8xbf16>, vector<24x8xf32> -> vector<24x8xf32>
    %616 = arith.subf %614, %615 : vector<24x8xf32>
    %617 = arith.truncf %140 : vector<16x32xf32> to vector<16x32xbf16>
    %cst_191 = arith.constant dense<0.000000e+00> : vector<24x32xf32>
    %618 = tpu.matmul %606, %617, %cst_191 {dimension_numbers = #tpu.dot_dimension_numbers<[1], [0], [0], [1], [0, 0, 1, 1], [], []>} : vector<24x16xbf16>, vector<16x32xbf16>, vector<24x32xf32> -> vector<24x32xf32>
    %c0_192 = arith.constant 0 : index
    %c0_193 = arith.constant 0 : index
    %619 = vector.load %arg22[%c0_192, %c0_193] : memref<2x32xf32, #tpu.memory_space<vmem>>, vector<2x32xf32>
    %620 = vector.extract_strided_slice %619 {offsets = [0, 0], sizes = [1, 32], strides = [1, 1]} : vector<2x32xf32> to vector<1x32xf32>
    %621 = vector.broadcast %620 : vector<1x32xf32> to vector<24x32xf32>
    %622 = arith.mulf %618, %621 : vector<24x32xf32>
    %cst_194 = arith.constant dense<0.000000e+00> : vector<24xf32>
    %623 = vector.multi_reduction <add>, %622, %cst_194 [1] : vector<24x32xf32> to vector<24xf32>
    %624 = vector.shape_cast %623 : vector<24xf32> to vector<24x1xf32>
    %625 = vector.extract_strided_slice %619 {offsets = [1, 0], sizes = [1, 1], strides = [1, 1]} : vector<2x32xf32> to vector<1x1xf32>
    %626 = vector.broadcast %625 : vector<1x1xf32> to vector<24x1xf32>
    %627 = arith.addf %624, %626 : vector<24x1xf32>
    %628 = vector.broadcast %627 : vector<24x1xf32> to vector<24x8xf32>
    %629 = arith.mulf %616, %628 : vector<24x8xf32>
    %630 = arith.truncf %629 : vector<24x8xf32> to vector<24x8xbf16>
    %cst_195 = arith.constant dense<0.000000e+00> : vector<16x8xf32>
    %631 = tpu.matmul %613, %630, %cst_195 {dimension_numbers = #tpu.dot_dimension_numbers<[1], [0], [0], [1], [0, 0, 1, 1], [], []>} : vector<16x24xbf16>, vector<24x8xbf16>, vector<16x8xf32> -> vector<16x8xf32>
    %cst_196 = arith.constant 1.000000e-01 : f32
    %632 = vector.broadcast %cst_196 : f32 to vector<16x8xf32>
    %633 = arith.mulf %632, %631 : vector<16x8xf32>
    %634 = arith.addf %587, %633 : vector<16x8xf32>
    %c0_197 = arith.constant 0 : index
    %c0_198 = arith.constant 0 : index
    %635 = vector.load %arg25[%c0_197, %c0_198] : memref<16x8xf32, #tpu.memory_space<vmem>>, vector<16x8xf32>
    tpu.vector_store %arg25[%c0_197, %c0_198], %634 {strides = array<i32>} : memref<16x8xf32, #tpu.memory_space<vmem>>, vector<16x8xf32>,
    return
  }
}

</mosaic_0001>

<bundles_post_ra>
// kernel: forward.1
= control target key start
LH: loop header
LB: loop body
LE: loop exit
PB: predicated region body
PF: predicated region fallthrough
CT: control target
= control target key end

     0   :  { %s4249_s0 = inlined_call_operand.vmem [shape: f32[16,32], index: 0, kind: input, shape index: {}]   ;;  %s4250_s1 = inlined_call_operand.vmem [shape: f32[8,32], index: 1, kind: input, shape index: {}]   ;;  %s4251_s2 = inlined_call_operand.vmem [shape: f32[16,8], index: 2, kind: input, shape index: {}]   ;;  %s4252_s3 = inlined_call_operand.vmem [shape: s32[24,2], index: 3, kind: input, shape index: {}]   ;;  %s4253_s4 = inlined_call_operand.vmem [shape: s32[2,24], index: 4, kind: input, shape index: {}]   ;;  %s4254_s5 = inlined_call_operand.vmem [shape: f32[24,4], index: 5, kind: input, shape index: {}]   ;;  %s4255_s6 = inlined_call_operand.vmem [shape: f32[9,32], index: 6, kind: input, shape index: {}]   ;;  %s4256_s7 = inlined_call_operand.vmem [shape: f32[68,32], index: 7, kind: input, shape index: {}]   ;;  %s4257_s8 = inlined_call_operand.vmem [shape: s32[20,2], index: 8, kind: input, shape index: {}]   ;;  %s4258_s9 = inlined_call_operand.vmem [shape: s32[2,20], index: 9, kind: input, shape index: {}]   ;;  %s4259_s10 = inlined_call_operand.vmem [shape: f32[20,4], index: 10, kind: input, shape index: {}]   ;;  %s4260_s11 = inlined_call_operand.vmem [shape: f32[9,32], index: 11, kind: input, shape index: {}]   ;;  %s4261_s12 = inlined_call_operand.vmem [shape: f32[68,32], index: 12, kind: input, shape index: {}]   ;;  %s4262_s13 = inlined_call_operand.vmem [shape: s32[12,2], index: 13, kind: input, shape index: {}]   ;;  %s4263_s14 = inlined_call_operand.vmem [shape: s32[2,12], index: 14, kind: input, shape index: {}]   ;;  %s4264_s15 = inlined_call_operand.vmem [shape: f32[12,4], index: 15, kind: input, shape index: {}]   ;;  %s4265_s16 = inlined_call_operand.vmem [shape: f32[9,32], index: 16, kind: input, shape index: {}]   ;;  %s4266_s17 = inlined_call_operand.vmem [shape: f32[68,32], index: 17, kind: input, shape index: {}]   ;;  %s4267_s18 = inlined_call_operand.vmem [shape: f32[5,32], index: 18, kind: input, shape index: {}]   ;;  %s4268_s19 = inlined_call_operand.vmem [shape: f32[64,32], index: 19, kind: input, shape index: {}]   ;;  %s4269_s20 = inlined_call_operand.vmem [shape: f32[7,32], index: 20, kind: input, shape index: {}]   ;;  %s4270_s21 = inlined_call_operand.vmem [shape: f32[96,32], index: 21, kind: input, shape index: {}]   ;;  %s4271_s22 = inlined_call_operand.vmem [shape: f32[2,32], index: 22, kind: input, shape index: {}]   ;;  %s4272_s23 = inlined_call_operand.hbm [shape: f32[16,32], index: 23, kind: output, shape index: {0}]   ;;  %s4273_s24 = inlined_call_operand.hbm [shape: f32[8,32], index: 24, kind: output, shape index: {1}]   ;;  %s4274_s25 = inlined_call_operand.vmem [shape: f32[16,8], index: 25, kind: output, shape index: {2}]  }
   0x1   :  { %4284 = sst [smem:[#allocation8_spill]] %s4249_s0 }
   0x2   :  { %4285 = sst [smem:[#allocation9_spill]] %s4250_s1 }
   0x3   :  { %4286 = sst [smem:[#allocation10_spill]] %s4251_s2 }
   0x4   :  { %4287 = sst [smem:[#allocation11_spill]] %s4252_s3 }
   0x5   :  { %4288 = sst [smem:[#allocation12_spill]] %s4253_s4 }
   0x6   :  { %4289 = sst [smem:[#allocation13_spill]] %s4254_s5 }
   0x7   :  { %4290 = sst [smem:[#allocation14_spill]] %s4255_s6 }
   0x8   :  { %4291 = sst [smem:[#allocation15_spill]] %s4256_s7 }
   0x9   :  { %4292 = sst [smem:[#allocation16_spill]] %s4257_s8 }
   0xa   :  { %4293 = sst [smem:[#allocation17_spill]] %s4258_s9 }
   0xb   :  { %31 = vsyncpa [#allocation3], 0  ;;  %s4294_s6 = sld [smem:[#allocation11_spill]]  ;;  %v3168_v2 = vmov 1  }
   0xc   :  { %3031 = vset.pattern.permute.xlu1 %v3168_v2  ;;  %3030 = vset.pattern.permute.xlu0 %v3168_v2 }
  0x11   :  { %v87_v0 = vld [vmem:[%s4294_s6 + $0x10] sm:$0xff]  ;;  %v85_v1 = vld [vmem:[%s4294_s6] sm:$0xff] }
  0x12   :  { %32 = vsyncpa [#allocation5], 0  ;;  %134 = vperm.xlu1 %3031, %v87_v0   ;;  %128 = vperm.xlu0 %3030, %v85_v1   ;;  %v86_v3 = vld [vmem:[%s4294_s6 + $0x8] sm:$0xff]  ;;  %s4295_s27 = sld [smem:[#allocation8_spill]]  ;;  %v3169_v7 = vmov 0   ;;  %v108_v8 = vlaneseq  ;;  %v3170_v13 = vmov 0.0  }
  0x13   :  { %vm156_vm3 = vcmask 130048   ;;  %s4296_s0 = sld [smem:[#allocation15_spill]]  ;;  %vm544_vm7 = vcmask 1041408   ;;  %s4297_s1 = sld [smem:[#allocation13_spill]]  ;;  %vm375_vm8 = vcmask 31744   ;;  %vm265_vm9 = vcmask 261120  }
  0x14   :  { %v3332_v9 = vand.u32 127, %v108_v8  ;;  %s4298_s29 = sld [smem:[#allocation14_spill]]  ;;  %s4299_s26 = sld [smem:[#allocation16_spill]]  ;;  %vm3171_vm10 = vmmov 0   ;;  %vm671_vm13 = vcmask 1043456  }
  0x15   :  { %s4300_s5 = sld [smem:[#allocation12_spill]]  ;;  %s4301_s30 = sld [smem:[#allocation9_spill]] }
  0x16   :  { %3032 = vset.pattern.permute.xlu1 %v3169_v7  ;;  %131 = vperm.xlu0 %3030, %v86_v3  }
  0x17   :  { %111 = vperm.xlu1 %3032, %v85_v1  }
  0x18   :  { %v80_v4 = vld [vmem:[%s4295_s27] sm:$0xff]  ;;  %v81_v5 = vld [vmem:[%s4295_s27 + $0x8] sm:$0xff] }
  0x19   :  { %v3323_v6 = vpack.c.bf16 %v81_v5, %v80_v4  ;;  %v98_v27 = vld [vmem:[%s4296_s0 + $0x20] sm:$0xff]  ;;  %v99_v28 = vld [vmem:[%s4296_s0 + $0x28] sm:$0xff]  ;;  %v100_v30 = vld [vmem:[%s4296_s0 + $0x30] sm:$0xff] }
  0x1a   :  { %3033 = vset.pattern.permute.xlu0 %v3169_v7  ;;  %v105_v29 = vpack.c.bf16 %v99_v28, %v98_v27  ;;  %v101_v31 = vld [vmem:[%s4296_s0 + $0x38] sm:$0xff]  ;;  %v94_v33 = vld [vmem:[%s4296_s0] sm:$0xff]  ;;  %v95_v34 = vld [vmem:[%s4296_s0 + $0x8] sm:$0xff] }
  0x1b   :  { %2835 = vmatprep.subr.bf16.mxu1 %v3323_v6  ;;  %2829 = vmatprep.subr.bf16.mxu0 %v3323_v6  ;;  %v106_v32 = vpack.c.bf16 %v101_v31, %v100_v30  ;;  %v103_v35 = vpack.c.bf16 %v95_v34, %v94_v33  ;;  %v96_v36 = vld [vmem:[%s4296_s0 + $0x10] sm:$0xff]  ;;  %v97_v37 = vld [vmem:[%s4296_s0 + $0x18] sm:$0xff]  ;;  %v102_v39 = vld [vmem:[%s4296_s0 + $0x40] sm:$0xf] }
  0x1c   :  { %2836 = vmatpush3.bf16.msra.mxu1 %v3323_v6  ;;  %2830 = vmatpush3.bf16.msra.mxu0 %v3323_v6  ;;  %v104_v38 = vpack.c.bf16 %v97_v37, %v96_v36  ;;  %v3377_v40 = vpack.c.bf16 %v102_v39, %v102_v39  ;;  %v3385_v41 = vld [vmem:[%s4297_s1] sm:$0xff]  ;;  %v3390_v42 = vld [vmem:[%s4297_s1 + $0x8] sm:$0xff]  ;;  %v3403_v47 = vld [vmem:[%s4297_s1 + $0x10] sm:$0xff] }
  0x1d   :  { %117 = vperm.xlu1 %3032, %v87_v0   ;;  %114 = vperm.xlu0 %3033, %v86_v3   ;;  %v376_v43 = vsel %vm375_vm8, %v3385_v41, 0.0  ;;  %v377_v44 = vsel %vm375_vm8, %v3390_v42, 0.0  ;;  %v388_v45 = vmul.f32 %v3385_v41, %v3385_v41  ;;  %v389_v46 = vmul.f32 %v3390_v42, %v3390_v42 }
  0x1e   :  { %2841 = vmatprep.subr.bf16.mxu0 %v105_v29  ;;  %2849 = vmatprep.subr.bf16.mxu1 %v103_v35  ;;  %v378_v48 = vadd.f32 %v377_v44, %v376_v43  ;;  %v379_v49 = vsel %vm375_vm8, %v3403_v47, 0.0  ;;  %v390_v50 = vmul.f32 %v3403_v47, %v3403_v47 }
  0x1f   :  { %v391_v51 = vsel %vm375_vm8, %v388_v45, 0.0  ;;  %v392_v52 = vsel %vm375_vm8, %v389_v46, 0.0 }
  0x20   :  { %v380_v53 = vadd.f32 %v379_v49, %v378_v48  ;;  %v393_v54 = vadd.f32 %v392_v52, %v391_v51  ;;  %v394_v55 = vsel %vm375_vm8, %v390_v50, 0.0 }
  0x22   :  { %v381_v56 = vrot.slane %v380_v53, 4  ;;  %v395_v57 = vadd.f32 %v394_v55, %v393_v54 }
  0x24   :  { %v382_v58 = vadd.f32 %v381_v56, %v380_v53  ;;  %v396_v59 = vrot.slane %v395_v57, 4 }
  0x26   :  { %v383_v60 = vrot.slane %v382_v58, 2  ;;  %v397_v61 = vadd.f32 %v396_v59, %v395_v57 }
  0x28   :  { %v384_v62 = vadd.f32 %v383_v60, %v382_v58  ;;  %v398_v63 = vrot.slane %v397_v61, 2 }
  0x2a   :  { %v385_v0 = vrot.slane %v384_v62, 1  ;;  %v399_v1 = vadd.f32 %v398_v63, %v397_v61 }
  0x2c   :  { %v386_v3 = vadd.f32 %v385_v0, %v384_v62  ;;  %v400_v4 = vrot.slane %v399_v1, 1 }
  0x2e   :  { %v3412_v5 = vmul.f32 0.041666668, %v386_v3 }
  0x91   :  { %v129_v10 = vpop.permute.xlu0 %128  ;;  %v135_v11 = vpop.permute.xlu1 %134 }
  0x92   :  { %vm138_vm0 = vcmp.eq.s32.totalorder %v3332_v9, %v135_v11  ;;  %vm136_vm1 = vcmp.eq.s32.totalorder %v3332_v9, %v129_v10  ;;  %v401_v10 = vadd.f32 %v400_v4, %v399_v1 }
  0x93   :  { %v141_v14 = vsel %vm138_vm0, 1.0, %v3170_v13  ;;  %v139_v16 = vsel %vm136_vm1, 1.0, %v3170_v13  ;;  %vm667_vm0 = vcmask 195584   ;;  %vm834_vm1 = vcmask 64512  }
  0x94   :  { %v143_v19 = vpack.c.bf16 %v141_v14, %v141_v14 }
  0x95   :  { %v132_v12 = vpop.permute.xlu0 %131 }
  0x96   :  { %vm137_vm2 = vcmp.eq.s32.totalorder %v3332_v9, %v132_v12  ;;  %v112_v15 = vpop.permute.xlu1 %111 }
  0x97   :  { %v140_v17 = vsel %vm137_vm2, 1.0, %v3170_v13  ;;  %vm119_vm4 = vcmp.eq.s32.totalorder %v3332_v9, %v112_v15 }
  0x98   :  { %v142_v18 = vpack.c.bf16 %v140_v17, %v139_v16  ;;  %v122_v22 = vsel %vm119_vm4, 1.0, %v3170_v13  ;;  %v402_v16 = vmul.f32 0.041666668, %v401_v10  ;;  %v403_v17 = vmul.f32 %v3412_v5, %v3412_v5 }
  0x9a   :  { %2837 = vmatprep.mubr.msk.bf16.mxu1 %vm156_vm3, %v142_v18 }
  0x9b   :  { %2838 = vmatmul.mubr.msk.bf16.vlgmr.msra.gmra.mrb[0].mxu1 %vm156_vm3, %v143_v19 }
  0x9c   :  { %v118_v20 = vpop.permute.xlu1 %117  ;;  %v115_v21 = vpop.permute.xlu0 %114  ;;  %2850 = vmatpush3.bf16.msra.mxu1 %v103_v35 }
  0x9d   :  { %vm121_vm5 = vcmp.eq.s32.totalorder %v3332_v9, %v118_v20  ;;  %vm120_vm6 = vcmp.eq.s32.totalorder %v3332_v9, %v115_v21  ;;  %2851 = vmatprep.subr.bf16.mxu1 %v104_v38 }
  0x9e   :  { %v124_v23 = vsel %vm121_vm5, 1.0, %v3170_v13  ;;  %v123_v24 = vsel %vm120_vm6, 1.0, %v3170_v13 }
  0x9f   :  { %v126_v25 = vpack.c.bf16 %v124_v23, %v124_v23  ;;  %v125_v26 = vpack.c.bf16 %v123_v24, %v122_v22 }
  0xa0   :  { %2852 = vmatpush3.bf16.msra.mxu1 %v104_v38 }
  0xa1   :  { %2831 = vmatprep.mubr.msk.bf16.mxu0 %vm156_vm3, %v125_v26  ;;  %2863 = vmatprep.subr.bf16.mxu1 %v3170_v13 }
  0xa2   :  { %2832 = vmatmul.mubr.msk.bf16.vlgmr.msra.gmra.mrb[0].mxu0 %vm156_vm3, %v126_v25 }
  0xa3   :  { %2842 = vmatpush3.bf16.msra.mxu0 %v105_v29  ;;  %v404_v29 = vsub.f32 %v402_v16, %v403_v17 }
  0xa4   :  { %2843 = vmatprep.subr.bf16.mxu0 %v106_v32 }
  0xa5   :  { %v405_v46 = vmax.f32 %v404_v29, 0.0 }
  0xa7   :  { %2844 = vmatpush3.bf16.msra.mxu0 %v106_v32  ;;  %v406_v59 = vadd.f32 1e-05, %v405_v46 }
  0xa8   :  { %3019 = vmatprep.subr.msk.bf16.mxu0 %vm544_vm7, %v3377_v40 }
  0xa9   :  { %3044 = vrsqrt.f32 %v406_v59 }
 0x16e   :  { %v3414_v11 = vpop.f32.mrb[0].mxu1 }
 0x16f   :  { %v3416_v12 = vpop.f32.mrb[1].mxu1  ;;  %v335_v19 = vmul.f32 %v3414_v11, %v3414_v11  ;;  %v324_v25 = vsel %vm265_vm9, %v3414_v11, 0.0 }
 0x170   :  { %v333_v14 = vmul.f32 %v3416_v12, %v3416_v12  ;;  %v2840_v15 = vpop.f32.mrb[2].mxu1  ;;  %v321_v20 = vsel %vm265_vm9, %v3416_v12, 0.0 }
 0x171   :  { %v3422_v18 = vpop.f32.mrb[3].mxu1  ;;  %v339_v33 = vsel %vm265_vm9, %v335_v19, 0.0 }
 0x172   :  { %v322_v21 = vsel %vm265_vm9, %v3422_v18, 0.0  ;;  %v334_v22 = vmul.f32 %v3422_v18, %v3422_v18  ;;  %v336_v26 = vsel %vm265_vm9, %v333_v14, 0.0 }
 0x173   :  { %v323_v23 = vadd.f32 %v322_v21, %v321_v20 }
 0x174   :  { %v337_v27 = vsel %vm265_vm9, %v334_v22, 0.0 }
 0x175   :  { %v3432_v24 = vpop.f32.mrb[0].mxu0  ;;  %v325_v30 = vadd.f32 %v324_v25, %v323_v23  ;;  %v338_v31 = vadd.f32 %v337_v27, %v336_v26 }
 0x176   :  { %v3438_v28 = vpop.f32.mrb[1].mxu0  ;;  %v281_v43 = vmul.f32 %v3432_v24, %v3432_v24  ;;  %v269_v50 = vsel %vm265_vm9, %v3432_v24, 0.0 }
 0x177   :  { %v2834_v32 = vpop.f32.mrb[2].mxu0  ;;  %v279_v34 = vmul.f32 %v3438_v28, %v3438_v28  ;;  %v326_v36 = vrot.slane %v325_v30, 4  ;;  %v340_v37 = vadd.f32 %v339_v33, %v338_v31  ;;  %v266_v38 = vsel %vm265_vm9, %v3438_v28, 0.0  ;;  %v3045_v33 = vpop.eup %3044 }
 0x178   :  { %v3443_v35 = vpop.f32.mrb[3].mxu0  ;;  %v285_v57 = vsel %vm265_vm9, %v281_v43, 0.0 }
 0x179   :  { %v267_v39 = vsel %vm265_vm9, %v3443_v35, 0.0  ;;  %v280_v45 = vmul.f32 %v3443_v35, %v3443_v35  ;;  %v327_v48 = vadd.f32 %v326_v36, %v325_v30  ;;  %v341_v49 = vrot.slane %v340_v37, 4 }
 0x17a   :  { %v268_v44 = vadd.f32 %v267_v39, %v266_v38  ;;  %v282_v51 = vsel %vm265_vm9, %v279_v34, 0.0  ;;  %v3461_v38 = vld [vmem:[%s4298_s29] sm:$0xff] }
 0x17b   :  { %v283_v53 = vsel %vm265_vm9, %v280_v45, 0.0  ;;  %v328_v54 = vrot.slane %v327_v48, 2  ;;  %v342_v55 = vadd.f32 %v341_v49, %v340_v37  ;;  %v408_v43 = vmul.f32 %v3045_v33, %v3461_v38 }
 0x17c   :  { %v270_v52 = vadd.f32 %v269_v50, %v268_v44  ;;  %v284_v56 = vadd.f32 %v283_v53, %v282_v51 }
 0x17d   :  { %v329_v60 = vadd.f32 %v328_v54, %v327_v48  ;;  %v343_v61 = vrot.slane %v342_v55, 2  ;;  %v416_v46 = vmul.f32 %v408_v43, %v3412_v5  ;;  %v3466_v48 = vshrl.u32 %v108_v8, 7 }
 0x17e   :  { %v271_v58 = vrot.slane %v270_v52, 4  ;;  %v286_v62 = vadd.f32 %v285_v57, %v284_v56 }
 0x17f   :  { %v330_v0 = vrot.slane %v329_v60, 1  ;;  %v344_v1 = vadd.f32 %v343_v61, %v342_v55  ;;  %v3469_v49 = vsub.s32 4, %v3466_v48  ;;  %v418_v50 = vrot.slane %v416_v46, 7 }
 0x180   :  { %v272_v63 = vadd.f32 %v271_v58, %v270_v52  ;;  %v287_v3 = vrot.slane %v286_v62, 4  ;;  %v3472_v51 = vsub.s32 2, %v3466_v48  ;;  %v3478_v5 = vsub.s32 5, %v3466_v48 }
 0x181   :  { %v331_v10 = vadd.f32 %v330_v0, %v329_v60  ;;  %v345_v14 = vrot.slane %v344_v1, 1  ;;  %v412_v54 = vrot.slane %v408_v43, %v3469_v49  ;;  %v420_v55 = vsub.f32 %v3461_v38, %v418_v50 }
 0x182   :  { %v273_v4 = vrot.slane %v272_v63, 2  ;;  %v288_v15 = vadd.f32 %v287_v3, %v286_v62  ;;  %v3482_v57 = vsub.s32 3, %v3466_v48  ;;  %v3485_v58 = vsub.s32 0, %v3466_v48 }
 0x183   :  { %v332_v17 = vmul.f32 0.041666668, %v331_v10  ;;  %v346_v19 = vadd.f32 %v345_v14, %v344_v1  ;;  %v413_v0 = vmul.f32 %v412_v54, %v3385_v41  ;;  %v414_v1 = vmul.f32 %v412_v54, %v3390_v42 }
 0x184   :  { %v274_v16 = vadd.f32 %v273_v4, %v272_v63  ;;  %v289_v20 = vrot.slane %v288_v15, 2  ;;  %v424_v3 = vrot.slane %v420_v55, %v3478_v5  ;;  %v3517_v43 = vsub.s32 6, %v3466_v48 }
 0x185   :  { %v347_v22 = vmul.f32 0.041666668, %v346_v19  ;;  %v348_v23 = vmul.f32 %v332_v17, %v332_v17  ;;  %v3520_v50 = vsub.s32 7, %v3466_v48 }
 0x186   :  { %v275_v21 = vrot.slane %v274_v16, 1  ;;  %v290_v25 = vadd.f32 %v289_v20, %v288_v15 }
 0x187   :  { %v349_v27 = vsub.f32 %v347_v22, %v348_v23 }
 0x188   :  { %v276_v26 = vadd.f32 %v275_v21, %v274_v16  ;;  %v291_v29 = vrot.slane %v290_v25, 1  ;;  %v426_v16 = vadd.f32 %v424_v3, %v414_v1 }
 0x189   :  { %v350_v31 = vmax.f32 %v349_v27, 0.0 }
 0x18a   :  { %v278_v30 = vmul.f32 0.041666668, %v276_v26  ;;  %v292_v32 = vadd.f32 %v291_v29, %v290_v25  ;;  %v415_v25 = vmul.f32 %v412_v54, %v3403_v47 }
 0x18b   :  { %v351_v36 = vadd.f32 1e-05, %v350_v31  ;;  %v546_v31 = vsel %vm544_vm7, %v3377_v40, 0 }
 0x18c   :  { %v294_v34 = vmul.f32 %v278_v30, %v278_v30  ;;  %v293_v37 = vmul.f32 0.041666668, %v292_v32 }
 0x18d   :  { %3046 = vrsqrt.f32 %v351_v36 }
 0x18e   :  { %v295_v39 = vsub.f32 %v293_v37, %v294_v34 }
 0x190   :  { %v296_v44 = vmax.f32 %v295_v39, 0.0 }
 0x192   :  { %v297_v45 = vadd.f32 1e-05, %v296_v44 }
 0x194   :  { %3048 = vrsqrt.f32 %v297_v45 }
 0x197   :  { %v3047_v52 = vpop.eup %3046 }
 0x198   :  { %v353_v53 = vmul.f32 %v3047_v52, %v3461_v38 }
 0x19a   :  { %v357_v8 = vrot.slane %v353_v53, %v3472_v51  ;;  %v361_v56 = vmul.f32 %v353_v53, %v332_v17 }
 0x19c   :  { %v359_v59 = vmul.f32 %v357_v8, %v3422_v18  ;;  %v360_v60 = vmul.f32 %v3414_v11, %v357_v8  ;;  %v363_v61 = vrot.slane %v361_v56, 7  ;;  %v358_v62 = vmul.f32 %v357_v8, %v3416_v12 }
 0x19d   :  { %v3498_v11 = vsub.s32 1, %v3466_v48  ;;  %v425_v12 = vadd.f32 %v424_v3, %v413_v0 }
 0x19e   :  { %v3049_v63 = vpop.eup %3048  ;;  %v365_v4 = vsub.f32 %v3461_v38, %v363_v61 }
 0x19f   :  { %v299_v10 = vmul.f32 %v3049_v63, %v3461_v38  ;;  %v428_v29 = vpack.c.bf16 %v426_v16, %v425_v12 }
 0x1a0   :  { %v369_v14 = vrot.slane %v365_v4, %v3482_v57 }
 0x1a1   :  { %v303_v18 = vrot.slane %v299_v10, %v3485_v58  ;;  %v307_v15 = vmul.f32 %v299_v10, %v278_v30 }
 0x1a2   :  { %v371_v17 = vadd.f32 %v369_v14, %v359_v59  ;;  %v370_v20 = vadd.f32 %v369_v14, %v358_v62  ;;  %v372_v21 = vadd.f32 %v369_v14, %v360_v60  ;;  %v609_v62 = vrot.slane %v3461_v38, %v3520_v50 }
 0x1a3   :  { %v305_v41 = vmul.f32 %v303_v18, %v3443_v35  ;;  %v306_v42 = vmul.f32 %v3432_v24, %v303_v18  ;;  %v309_v19 = vrot.slane %v307_v15, 7  ;;  %v304_v22 = vmul.f32 %v303_v18, %v3438_v28 }
 0x1a4   :  { %v373_v26 = vpack.c.bf16 %v371_v17, %v370_v20  ;;  %v374_v27 = vpack.c.bf16 %v372_v21, %v372_v21  ;;  %v427_v28 = vadd.f32 %v424_v3, %v415_v25 }
 0x1a5   :  { %v311_v23 = vsub.f32 %v3461_v38, %v309_v19 }
 0x1a6   :  { %2845 = vmatprep.mubr.msk.bf16.mxu0 %vm265_vm9, %v373_v26  ;;  %v429_v34 = vpack.c.bf16 %v427_v28, %v427_v28  ;;  %v717_v28 = vld [vmem:[%s4299_s26 + $0x8] sm:$0xff] }
 0x1a7   :  { %v315_v30 = vrot.slane %v311_v23, %v3498_v11  ;;  %2846 = vmatmul.mubr.msk.bf16.vlgmr.msra.gmra.mrb[4].mxu0 %vm265_vm9, %v374_v27 }
 0x1a8   :  { %2858 = vmatpush3.bf16.msra.mxu0 %v546_v31  ;;  %2859 = vmatprep.mubr.msk.bf16.mxu0 %vm375_vm8, %v428_v29 }
 0x1a9   :  { %v317_v24 = vadd.f32 %v315_v30, %v305_v41  ;;  %v316_v35 = vadd.f32 %v315_v30, %v304_v22  ;;  %v318_v32 = vadd.f32 %v315_v30, %v306_v42  ;;  %2871 = vmatprep.subr.bf16.mxu0 %v3323_v6 }
 0x1ab   :  { %v319_v47 = vpack.c.bf16 %v317_v24, %v316_v35  ;;  %v320_v33 = vpack.c.bf16 %v318_v32, %v318_v32 }
 0x1ad   :  { %2853 = vmatprep.mubr.msk.bf16.mxu1 %vm265_vm9, %v319_v47 }
 0x1ae   :  { %2854 = vmatmul.mubr.msk.bf16.vlgmr.msra.gmra.mrb[4].mxu1 %vm265_vm9, %v320_v33  ;;  %v716_v33 = vld [vmem:[%s4299_s26] sm:$0xff] }
 0x1af   :  { %2860 = vmatmul.mubr.msk.bf16.vlgmr.msra.gmra.mrb[8].mxu0 %vm375_vm8, %v429_v34  ;;  %v718_v34 = vld [vmem:[%s4299_s26 + $0x10] sm:$0xf]  ;;  %2867 = vmatprep.mubr.msk.bf16.mxu1 %vm3171_vm10, %v3170_v13 }
 0x1b0   :  { %2872 = vmatpush3.bf16.msra.mxu0 %v3323_v6  ;;  %v602_v6 = vrot.slane %v3461_v38, %v3517_v43  ;;  %v2704_v38 = vld [vmem:[%s4298_s29 + $0x8] ss:$0 sm:$0xff] }
 0x27a   :  { %v2847_v40 = vpop.f32.mrb[4].mxu0 }
 0x27b   :  { %v470_v36 = vpop.f32.mrb[5].mxu0 }
 0x27c   :  { %v2848_v37 = vpop.f32.mrb[6].mxu0 }
 0x27d   :  { %v473_v39 = vpop.f32.mrb[7].mxu0  ;;  %v3554_v37 = vadd.s32 8, %v3466_v48 }
 0x281   :  { %v2855_v44 = vpop.f32.mrb[4].mxu1 }
 0x282   :  { %v533_v45 = vadd.f32 %v2855_v44, %v2847_v40  ;;  %v524_v46 = vpop.f32.mrb[5].mxu1  ;;  %v2861_v55 = vpop.f32.mrb[8].mxu0  ;;  %v88_v40 = vld [vmem:[%s4300_s5] sm:$0x3] }
 0x283   :  { %v525_v52 = vadd.f32 %v524_v46, %v470_v36  ;;  %v2856_v53 = vpop.f32.mrb[6].mxu1  ;;  %v582_v59 = vpop.f32.mrb[9].mxu0 }
 0x284   :  { %v527_v54 = vpop.f32.mrb[7].mxu1  ;;  %v598_v56 = vadd.f32 %v2861_v55, %v533_v45  ;;  %v2862_v61 = vpop.f32.mrb[10].mxu0 }
 0x285   :  { %v528_v8 = vadd.f32 %v527_v54, %v473_v39  ;;  %v596_v60 = vadd.f32 %v582_v59, %v525_v52  ;;  %v585_v63 = vpop.f32.mrb[11].mxu0  ;;  %v150_v39 = vrot.slane %v88_v40, %v3498_v11  ;;  %v82_v54 = vld [vmem:[%s4301_s30] sm:$0xff] }
 0x286   :  { %v3526_v3 = vadd.f32 %v602_v6, %v598_v56 }
 0x287   :  { %v603_v0 = vadd.f32 %v602_v6, %v596_v60  ;;  %v597_v1 = vadd.f32 %v585_v63, %v528_v8  ;;  %vm151_vm11 = vcmp.eq.s32.totalorder %v3466_v48, %v150_v39  ;;  %vm152_vm12 = vcmp.eq.s32.totalorder %v3554_v37, %v150_v39 }
 0x288   :  { %v612_v12 = vmul.f32 %v609_v62, %v3526_v3  ;;  %v153_v8 = vsel %vm151_vm11, 1.0, %v3170_v13  ;;  %v154_v56 = vsel %vm152_vm12, 1.0, %v3170_v13  ;;  %v84_v60 = vpack.c.bf16 %v82_v54, %v82_v54 }
 0x289   :  { %v604_v4 = vadd.f32 %v602_v6, %v597_v1  ;;  %v610_v10 = vmul.f32 %v609_v62, %v603_v0  ;;  %vm1005_vm11 = vcmask 27648   ;;  %vm895_vm12 = vcmask 257024  }
 0x28a   :  { %v619_v16 = vsel %vm265_vm9, %v612_v12, 0.0 }
 0x28b   :  { %v613_v14 = vsel %vm265_vm9, %v610_v10, 0.0  ;;  %v611_v18 = vmul.f32 %v609_v62, %v604_v4 }
 0x28c   :  { %614 = vadd.xlane.f32.xlu1 %v613_v14 }
 0x28d   :  { %v616_v15 = vsel %vm265_vm9, %v611_v18, 0.0 }
 0x28e   :  { %617 = vadd.xlane.f32.xlu0 %v616_v15 }
 0x292   :  { %620 = vadd.xlane.f32.xlu0 %v619_v16 }
 0x319   :  { %v615_v17 = vpop.xlane.xlu1 %614 }
 0x31a   :  { %v626_v41 = vadd.f32 %v2704_v38, %v615_v17 }
 0x31b   :  { %v618_v42 = vpop.xlane.xlu0 %617 }
 0x31c   :  { %v2705_v19 = vmul.f32 -1.442695, %v626_v41  ;;  %v627_v20 = vadd.f32 %v2704_v38, %v618_v42 }
 0x31e   :  { %3050 = vpow2.f32 %v2705_v19  ;;  %v2706_v21 = vmul.f32 -1.442695, %v627_v20  ;;  %v729_v20 = vld [vmem:[%s4261_s12 + $0x20] sm:$0xff] }
 0x31f   :  { %v621_v22 = vpop.xlane.xlu0 %620 }
 0x320   :  { %3052 = vpow2.f32 %v2706_v21  ;;  %v628_v23 = vadd.f32 %v2704_v38, %v621_v22  ;;  %v730_v21 = vld [vmem:[%s4261_s12 + $0x28] sm:$0xff] }
 0x321   :  { %v736_v22 = vpack.c.bf16 %v730_v21, %v729_v20 }
 0x322   :  { %v2707_v25 = vmul.f32 -1.442695, %v628_v23  ;;  %v731_v23 = vld [vmem:[%s4261_s12 + $0x30] sm:$0xff] }
 0x323   :  { %2883 = vmatprep.subr.bf16.mxu0 %v736_v22 }
 0x324   :  { %3054 = vpow2.f32 %v2707_v25  ;;  %v732_v25 = vld [vmem:[%s4261_s12 + $0x38] sm:$0xff] }
 0x328   :  { %v3051_v26 = vpop.eup %3050 }
 0x329   :  { %v638_v27 = vadd.f32 1.0, %v3051_v26  ;;  %v737_v26 = vpack.c.bf16 %v732_v25, %v731_v23 }
 0x32a   :  { %v3053_v29 = vpop.eup %3052 }
 0x32b   :  { %3056 = vrcp.f32 %v638_v27  ;;  %v639_v30 = vadd.f32 1.0, %v3053_v29  ;;  %v725_v27 = vld [vmem:[%s4261_s12] sm:$0xff]  ;;  %v726_v29 = vld [vmem:[%s4261_s12 + $0x8] sm:$0xff] }
 0x32d   :  { %3058 = vrcp.f32 %v639_v30  ;;  %v734_v30 = vpack.c.bf16 %v726_v29, %v725_v27 }
 0x32e   :  { %v3055_v31 = vpop.eup %3054 }
 0x32f   :  { %v640_v24 = vadd.f32 1.0, %v3055_v31  ;;  %v727_v31 = vld [vmem:[%s4261_s12 + $0x10] sm:$0xff] }
 0x331   :  { %3060 = vrcp.f32 %v640_v24  ;;  %v728_v24 = vld [vmem:[%s4261_s12 + $0x18] sm:$0xff] }
 0x335   :  { %v3057_v35 = vpop.eup %3056 }
 0x336   :  { %649 = vperm.xlu1 %3032, %v3057_v35   ;;  %v735_v35 = vpack.c.bf16 %v728_v24, %v727_v31 }
 0x337   :  { %v3059_v32 = vpop.eup %3058 }
 0x338   :  { %654 = vperm.xlu0 %3033, %v3059_v32   ;;  %v733_v32 = vld [vmem:[%s4261_s12 + $0x40] sm:$0xf]  ;;  %s4302_s12 = sld [smem:[#allocation17_spill]] }
 0x33b   :  { %v3061_v47 = vpop.eup %3060 }
 0x33c   :  { %659 = vperm.xlu1 %3032, %v3061_v47   ;;  %3035 = vset.pattern.permute.xlu0 %v3168_v2  ;;  %v3624_v47 = vld [vmem:[%s4259_s10] sm:$0xff] }
 0x33d   :  { %760 = vperm.xlu0 %3035, %v717_v28  }
 0x340   :  { %3034 = vset.pattern.permute.xlu1 %v3168_v2 }
 0x341   :  { %757 = vperm.xlu1 %3034, %v716_v33   ;;  %3037 = vset.pattern.permute.xlu0 %v3169_v7 }
 0x342   :  { %743 = vperm.xlu0 %3037, %v717_v28   ;;  %v3616_v28 = vpack.c.bf16 %v733_v32, %v733_v32 }
 0x345   :  { %763 = vperm.xlu1 %3034, %v718_v34  }
 0x349   :  { %3036 = vset.pattern.permute.xlu1 %v3169_v7 }
 0x34a   :  { %740 = vperm.xlu1 %3036, %v716_v33   ;;  %v3629_v33 = vld [vmem:[%s4259_s10 + $0x8] sm:$0xff] }
 0x34b   :  { %v1003_v40 = vsel %vm375_vm8, %v3629_v33, 0.0  ;;  %v1016_v39 = vmul.f32 %v3629_v33, %v3629_v33 }
 0x34d   :  { %v1019_v54 = vsel %vm375_vm8, %v1016_v39, 0.0 }
 0x34e   :  { %746 = vperm.xlu1 %3036, %v718_v34   ;;  %v1002_v34 = vsel %vm375_vm8, %v3624_v47, 0.0 }
 0x3b5   :  { %v650_v36 = vpop.permute.xlu1 %649 }
 0x3b6   :  { %v662_v45 = vmul.f32 %v650_v36, %v603_v0  ;;  %v155_v0 = vpack.c.bf16 %v154_v56, %v153_v8  ;;  %v1015_v36 = vmul.f32 %v3624_v47, %v3624_v47 }
 0x3b7   :  { %v655_v44 = vpop.permute.xlu0 %654 }
 0x3b8   :  { %v663_v46 = vmul.f32 %v655_v44, %v604_v4  ;;  %v3642_v44 = vld [vmem:[%s4259_s10 + $0x10] sm:$0xf] }
 0x3ba   :  { %v665_v52 = vpack.c.bf16 %v663_v46, %v662_v45  ;;  %v1004_v45 = vadd.f32 %v1003_v40, %v1002_v34  ;;  %v1006_v46 = vsel %vm1005_vm11, %v3642_v44, 0.0 }
 0x3bb   :  { %v660_v53 = vpop.permute.xlu1 %659 }
 0x3bc   :  { %v664_v55 = vmul.f32 %v660_v53, %v3526_v3  ;;  %2864 = vmatpush3.bf16.msra.mxu1 %v665_v52  ;;  %v761_v6 = vpop.permute.xlu0 %760  ;;  %v3573_v3 = vsel %vm671_vm13, %v84_v60, 0  ;;  %v1017_v52 = vmul.f32 %v3642_v44, %v3642_v44  ;;  %v1018_v53 = vsel %vm375_vm8, %v1015_v36, 0.0 }
 0x3bd   :  { %vm766_vm14 = vcmp.eq.s32.totalorder %v3332_v9, %v761_v6  ;;  %2865 = vmatprep.subr.bf16.mxu1 %v3170_v13  ;;  %v1020_v6 = vadd.f32 %v1019_v54, %v1018_v53 }
 0x3be   :  { %v666_v59 = vpack.c.bf16 %v664_v55, %v664_v55  ;;  %v769_v62 = vsel %vm766_vm14, 1.0, %v3170_v13  ;;  %v1007_v55 = vadd.f32 %v1006_v46, %v1004_v45  ;;  %v1021_v8 = vsel %vm1005_vm11, %v1017_v52, 0.0 }
 0x3c0   :  { %v673_v61 = vsel %vm671_vm13, %v666_v59, 0  ;;  %v758_v63 = vpop.permute.xlu1 %757  ;;  %v1008_v56 = vrot.slane %v1007_v55, 4  ;;  %v1022_v59 = vadd.f32 %v1021_v8, %v1020_v6 }
 0x3c1   :  { %vm765_vm15 = vcmp.eq.s32.totalorder %v3332_v9, %v758_v63  ;;  %2866 = vmatpush3.bf16.msra.mxu1 %v673_v61  ;;  %v744_v10 = vpop.permute.xlu0 %743 }
 0x3c2   :  { %v768_v1 = vsel %vm765_vm15, 1.0, %v3170_v13  ;;  %3020 = vmatprep.subr.msk.bf16.mxu1 %vm671_vm13, %v84_v60  ;;  %vm749_vm4 = vcmp.eq.s32.totalorder %v3332_v9, %v744_v10  ;;  %v1009_v60 = vadd.f32 %v1008_v56, %v1007_v55  ;;  %v1023_v61 = vrot.slane %v1022_v59, 4 }
 0x3c3   :  { %v771_v4 = vpack.c.bf16 %v769_v62, %v768_v1  ;;  %v752_v15 = vsel %vm749_vm4, 1.0, %v3170_v13  ;;  %vm1293_vm15 = vcmask 162816  }
 0x3c4   :  { %2868 = vmatmul.mubr.msk.bf16.vlgmr.msra.gmra.mrb[8].mxu1 %vm667_vm0, %v155_v0  ;;  %v764_v14 = vpop.permute.xlu1 %763  ;;  %v1010_v62 = vrot.slane %v1009_v60, 2  ;;  %v1024_v63 = vadd.f32 %v1023_v61, %v1022_v59 }
 0x3c5   :  { %vm767_vm2 = vcmp.eq.s32.totalorder %v3332_v9, %v764_v14  ;;  %2879 = vmatprep.mubr.msk.bf16.mxu1 %vm834_vm1, %v771_v4  ;;  %2878 = vmatpush3.bf16.msra.mxu1 %v3573_v3 }
 0x3c6   :  { %v770_v18 = vsel %vm767_vm2, 1.0, %v3170_v13  ;;  %2891 = vmatprep.subr.bf16.mxu1 %v734_v30  ;;  %v1011_v0 = vadd.f32 %v1010_v62, %v1009_v60  ;;  %v1025_v1 = vrot.slane %v1024_v63, 2 }
 0x3c7   :  { %v772_v16 = vpack.c.bf16 %v770_v18, %v770_v18 }
 0x3c8   :  { %v1012_v4 = vrot.slane %v1011_v0, 1  ;;  %v1026_v10 = vadd.f32 %v1025_v1, %v1024_v63 }
 0x3c9   :  { %v741_v12 = vpop.permute.xlu1 %740 }
 0x3ca   :  { %vm748_vm5 = vcmp.eq.s32.totalorder %v3332_v9, %v741_v12  ;;  %v1013_v14 = vadd.f32 %v1012_v4, %v1011_v0  ;;  %v1027_v18 = vrot.slane %v1026_v10, 1 }
 0x3cb   :  { %v751_v38 = vsel %vm748_vm5, 1.0, %v3170_v13 }
 0x3cc   :  { %v754_v17 = vpack.c.bf16 %v752_v15, %v751_v38  ;;  %2880 = vmatmul.mubr.msk.bf16.vlgmr.msra.gmra.mrb[12].mxu1 %vm834_vm1, %v772_v16 }
 0x3cd   :  { %v747_v41 = vpop.permute.xlu1 %746  ;;  %2892 = vmatpush3.bf16.msra.mxu1 %v734_v30 }
 0x3ce   :  { %vm750_vm6 = vcmp.eq.s32.totalorder %v3332_v9, %v747_v41  ;;  %2873 = vmatprep.mubr.msk.bf16.mxu0 %vm156_vm3, %v754_v17  ;;  %2893 = vmatprep.subr.bf16.mxu1 %v735_v35  ;;  %v3657_v17 = vmul.f32 0.05, %v1013_v14  ;;  %v1028_v41 = vadd.f32 %v1027_v18, %v1026_v10 }
 0x3cf   :  { %v753_v42 = vsel %vm750_vm6, 1.0, %v3170_v13 }
 0x3d0   :  { %v755_v19 = vpack.c.bf16 %v753_v42, %v753_v42  ;;  %v1029_v30 = vmul.f32 0.05, %v1028_v41  ;;  %v1030_v31 = vmul.f32 %v3657_v17, %v3657_v17 }
 0x3d1   :  { %2894 = vmatpush3.bf16.msra.mxu1 %v735_v35 }
 0x3d2   :  { %2874 = vmatmul.mubr.msk.bf16.vlgmr.msra.gmra.mrb[12].mxu0 %vm156_vm3, %v755_v19  ;;  %2905 = vmatprep.subr.bf16.mxu1 %v3170_v13  ;;  %v1031_v52 = vsub.f32 %v1029_v30, %v1030_v31 }
 0x3d3   :  { %2884 = vmatpush3.bf16.msra.mxu0 %v736_v22 }
 0x3d4   :  { %2885 = vmatprep.subr.bf16.mxu0 %v737_v26  ;;  %v1032_v41 = vmax.f32 %v1031_v52, 0.0 }
 0x3d7   :  { %2886 = vmatpush3.bf16.msra.mxu0 %v737_v26 }
 0x3d8   :  { %3021 = vmatprep.subr.msk.bf16.mxu0 %vm544_vm7, %v3616_v28 }
 0x497   :  { %v3651_v15 = vpop.f32.mrb[8].mxu1 }
 0x498   :  { %v1971_v12 = vmul.f32 %v3651_v15, %v3651_v15  ;;  %v2869_v16 = vpop.f32.mrb[9].mxu1  ;;  %v1961_v42 = vsel %vm265_vm9, %v3651_v15, 0.0 }
 0x499   :  { %v3655_v38 = vpop.f32.mrb[10].mxu1 }
 0x49a   :  { %v1962_v19 = vsel %vm265_vm9, %v3655_v38, 0.0  ;;  %v1972_v20 = vmul.f32 %v3655_v38, %v3655_v38  ;;  %v2870_v21 = vpop.f32.mrb[11].mxu1  ;;  %v3667_v22 = vpack.c.bf16 %v3655_v38, %v3651_v15  ;;  %v1973_v25 = vsel %vm265_vm9, %v1971_v12, 0.0 }
 0x49b   :  { %v1963_v23 = vadd.f32 %v1962_v19, %v1961_v42 }
 0x49c   :  { %v1974_v26 = vsel %vm265_vm9, %v1972_v20, 0.0 }
 0x49d   :  { %v1964_v27 = vrot.slane %v1963_v23, 4  ;;  %v1975_v29 = vadd.f32 %v1974_v26, %v1973_v25 }
 0x49f   :  { %v1965_v24 = vadd.f32 %v1964_v27, %v1963_v23  ;;  %v1976_v35 = vrot.slane %v1975_v29, 4  ;;  %v3673_v32 = vpop.f32.mrb[12].mxu1 }
 0x4a0   :  { %v3675_v34 = vpop.f32.mrb[13].mxu1  ;;  %v962_v8 = vmul.f32 %v3673_v32, %v3673_v32  ;;  %v951_v62 = vsel %vm895_vm12, %v3673_v32, 0.0 }
 0x4a1   :  { %v1966_v40 = vrot.slane %v1965_v24, 2  ;;  %v1977_v36 = vadd.f32 %v1976_v35, %v1975_v29  ;;  %v2882_v39 = vpop.f32.mrb[14].mxu1  ;;  %v960_v45 = vmul.f32 %v3675_v34, %v3675_v34  ;;  %v948_v55 = vsel %vm265_vm9, %v3675_v34, 0.0 }
 0x4a2   :  { %v3679_v46 = vpop.f32.mrb[15].mxu1  ;;  %v966_v42 = vsel %vm895_vm12, %v962_v8, 0.0 }
 0x4a3   :  { %v1967_v53 = vadd.f32 %v1966_v40, %v1965_v24  ;;  %v1978_v54 = vrot.slane %v1977_v36, 2  ;;  %v949_v6 = vsel %vm265_vm9, %v3679_v46, 0.0  ;;  %v961_v59 = vmul.f32 %v3679_v46, %v3679_v46 }
 0x4a4   :  { %v950_v56 = vadd.f32 %v949_v6, %v948_v55  ;;  %v963_v0 = vsel %vm265_vm9, %v960_v45, 0.0 }
 0x4a5   :  { %v1968_v60 = vrot.slane %v1967_v53, 1  ;;  %v1979_v61 = vadd.f32 %v1978_v54, %v1977_v36  ;;  %v3691_v63 = vpop.f32.mrb[12].mxu0  ;;  %v964_v4 = vsel %vm265_vm9, %v961_v59, 0.0 }
 0x4a6   :  { %v952_v1 = vadd.f32 %v951_v62, %v950_v56  ;;  %v3695_v10 = vpop.f32.mrb[13].mxu0  ;;  %v965_v12 = vadd.f32 %v964_v4, %v963_v0  ;;  %v908_v31 = vmul.f32 %v3691_v63, %v3691_v63  ;;  %v896_v45 = vsel %vm895_vm12, %v3691_v63, 0.0 }
 0x4a7   :  { %v1969_v14 = vadd.f32 %v1968_v60, %v1967_v53  ;;  %v1980_v18 = vrot.slane %v1979_v61, 1  ;;  %v2876_v16 = vpop.f32.mrb[14].mxu0  ;;  %v892_v20 = vsel %vm265_vm9, %v3695_v10, 0.0  ;;  %v906_v21 = vmul.f32 %v3695_v10, %v3695_v10 }
 0x4a8   :  { %v953_v19 = vrot.slane %v952_v1, 4  ;;  %v3702_v23 = vpop.f32.mrb[15].mxu0  ;;  %v967_v27 = vadd.f32 %v966_v42, %v965_v12  ;;  %v912_v60 = vsel %vm895_vm12, %v908_v31, 0.0  ;;  %v1033_v62 = vadd.f32 1e-05, %v1032_v41 }
 0x4a9   :  { %v3704_v25 = vmul.f32 0.0625, %v1969_v14  ;;  %v1981_v26 = vadd.f32 %v1980_v18, %v1979_v61  ;;  %v893_v29 = vsel %vm265_vm9, %v3702_v23, 0.0  ;;  %v907_v35 = vmul.f32 %v3702_v23, %v3702_v23 }
 0x4aa   :  { %v954_v30 = vadd.f32 %v953_v19, %v952_v1  ;;  %v894_v24 = vadd.f32 %v893_v29, %v892_v20  ;;  %v968_v39 = vrot.slane %v967_v27, 4  ;;  %v909_v53 = vsel %vm265_vm9, %v906_v21, 0.0 }
 0x4ab   :  { %v1982_v40 = vmul.f32 0.0625, %v1981_v26  ;;  %v1983_v36 = vmul.f32 %v3704_v25, %v3704_v25  ;;  %v910_v55 = vsel %vm265_vm9, %v907_v35, 0.0  ;;  %3062 = vrsqrt.f32 %v1033_v62  ;;  %v3728_v62 = vld [vmem:[%s4260_s11] sm:$0xff] }
 0x4ac   :  { %v955_v52 = vrot.slane %v954_v30, 2  ;;  %v897_v54 = vadd.f32 %v896_v45, %v894_v24  ;;  %v969_v8 = vadd.f32 %v968_v39, %v967_v27  ;;  %v911_v56 = vadd.f32 %v910_v55, %v909_v53  ;;  %v3722_v53 = vld [vmem:[%s4267_s18] sm:$0x1f] }
 0x4ad   :  { %v1984_v6 = vsub.f32 %v1982_v40, %v1983_v36 }
 0x4ae   :  { %v956_v59 = vadd.f32 %v955_v52, %v954_v30  ;;  %v898_v61 = vrot.slane %v897_v54, 4  ;;  %v970_v1 = vrot.slane %v969_v8, 2  ;;  %v913_v4 = vadd.f32 %v912_v60, %v911_v56 }
 0x4af   :  { %v1985_v0 = vmax.f32 %v1984_v6, 0.0 }
 0x4b0   :  { %v957_v14 = vrot.slane %v956_v59, 1  ;;  %v899_v18 = vadd.f32 %v898_v61, %v897_v54  ;;  %v971_v16 = vadd.f32 %v970_v1, %v969_v8  ;;  %v914_v42 = vrot.slane %v913_v4, 4 }
 0x4b1   :  { %v1986_v12 = vadd.f32 1e-05, %v1985_v0 }
 0x4b2   :  { %v958_v19 = vadd.f32 %v957_v14, %v956_v59  ;;  %v900_v20 = vrot.slane %v899_v18, 2  ;;  %v972_v21 = vrot.slane %v971_v16, 1  ;;  %v915_v26 = vadd.f32 %v914_v42, %v913_v4 }
 0x4b3   :  { %3064 = vrsqrt.f32 %v1986_v12 }
 0x4b4   :  { %v959_v27 = vmul.f32 0.05, %v958_v19  ;;  %v901_v29 = vadd.f32 %v900_v20, %v899_v18  ;;  %v973_v30 = vadd.f32 %v972_v21, %v971_v16  ;;  %v916_v31 = vrot.slane %v915_v26, 2 }
 0x4b5   :  { %v3063_v6 = vpop.eup %3062 }
 0x4b6   :  { %v975_v24 = vmul.f32 %v959_v27, %v959_v27  ;;  %v902_v41 = vrot.slane %v901_v29, 1  ;;  %v974_v35 = vmul.f32 0.05, %v973_v30  ;;  %v917_v40 = vadd.f32 %v916_v31, %v915_v26 }
 0x4b7   :  { %v1035_v1 = vmul.f32 %v3063_v6, %v3728_v62 }
 0x4b8   :  { %v903_v36 = vadd.f32 %v902_v41, %v901_v29  ;;  %v976_v39 = vsub.f32 %v974_v35, %v975_v24  ;;  %v918_v45 = vrot.slane %v917_v40, 1 }
 0x4b9   :  { %v1043_v20 = vmul.f32 %v1035_v1, %v3657_v17  ;;  %v1039_v24 = vrot.slane %v1035_v1, %v3469_v49 }
 0x4ba   :  { %v905_v52 = vmul.f32 0.05, %v903_v36  ;;  %v977_v54 = vmax.f32 %v976_v39, 0.0  ;;  %v919_v55 = vadd.f32 %v918_v45, %v917_v40 }
 0x4bb   :  { %v1045_v29 = vrot.slane %v1043_v20, 7  ;;  %v1041_v6 = vmul.f32 %v1039_v24, %v3629_v33  ;;  %v1172_v20 = vsel %vm544_vm7, %v3616_v28, 0 }
 0x4bc   :  { %v921_v8 = vmul.f32 %v905_v52, %v905_v52  ;;  %v978_v59 = vadd.f32 1e-05, %v977_v54  ;;  %v920_v60 = vmul.f32 0.05, %v919_v55  ;;  %v1040_v55 = vmul.f32 %v1039_v24, %v3624_v47 }
 0x4bd   :  { %v3065_v56 = vpop.eup %3064  ;;  %v1047_v17 = vsub.f32 %v3728_v62, %v1045_v29 }
 0x4be   :  { %v1988_v61 = vmul.f32 %v3065_v56, %v3722_v53  ;;  %3066 = vrsqrt.f32 %v978_v59  ;;  %v922_v0 = vsub.f32 %v920_v60, %v921_v8 }
 0x4bf   :  { %v1051_v8 = vrot.slane %v1047_v17, %v3478_v5 }
 0x4c0   :  { %v1992_v4 = vrot.slane %v1988_v61, %v3472_v51  ;;  %v1995_v14 = vmul.f32 %v1988_v61, %v3704_v25  ;;  %v923_v18 = vmax.f32 %v922_v0, 0.0 }
 0x4c1   :  { %v1053_v61 = vadd.f32 %v1051_v8, %v1041_v6 }
 0x4c2   :  { %v1993_v12 = vmul.f32 %v1992_v4, %v3651_v15  ;;  %v1994_v16 = vmul.f32 %v1992_v4, %v3655_v38  ;;  %v1997_v42 = vrot.slane %v1995_v14, 7  ;;  %v924_v19 = vadd.f32 1e-05, %v923_v18 }
 0x4c4   :  { %v1999_v21 = vsub.f32 %v3722_v53, %v1997_v42  ;;  %3068 = vrsqrt.f32 %v924_v19 }
 0x4c6   :  { %v2003_v26 = vrot.slane %v1999_v21, %v3482_v57 }
 0x4c8   :  { %v3738_v30 = vadd.f32 %v2003_v26, %v1993_v12  ;;  %v3740_v31 = vadd.f32 %v2003_v26, %v1994_v16  ;;  %v3067_v25 = vpop.eup %3066  ;;  %v1042_v12 = vmul.f32 %v1039_v24, %v3642_v44 }
 0x4c9   :  { %v980_v38 = vmul.f32 %v3067_v25, %v3728_v62 }
 0x4ca   :  { %v2006_v15 = vpack.c.bf16 %v3740_v31, %v3738_v30 }
 0x4cb   :  { %v984_v41 = vrot.slane %v980_v38, %v3472_v51  ;;  %v988_v35 = vmul.f32 %v980_v38, %v959_v27 }
 0x4cd   :  { %v986_v40 = vmul.f32 %v984_v41, %v3679_v46  ;;  %v987_v36 = vmul.f32 %v3673_v32, %v984_v41  ;;  %v990_v39 = vrot.slane %v988_v35, 7  ;;  %v985_v45 = vmul.f32 %v984_v41, %v3675_v34 }
 0x4ce   :  { %v3069_v54 = vpop.eup %3068  ;;  %v1052_v32 = vadd.f32 %v1051_v8, %v1040_v55 }
 0x4cf   :  { %v992_v56 = vsub.f32 %v3728_v62, %v990_v39  ;;  %v926_v59 = vmul.f32 %v3069_v54, %v3728_v62 }
 0x4d0   :  { %v1055_v19 = vpack.c.bf16 %v1053_v61, %v1052_v32 }
 0x4d1   :  { %v996_v27 = vrot.slane %v992_v56, %v3482_v57  ;;  %v930_v46 = vrot.slane %v926_v59, %v3485_v58  ;;  %v934_v60 = vmul.f32 %v926_v59, %v905_v52 }
 0x4d3   :  { %v998_v0 = vadd.f32 %v996_v27, %v986_v40  ;;  %v932_v34 = vmul.f32 %v930_v46, %v3702_v23  ;;  %v933_v47 = vmul.f32 %v3691_v63, %v930_v46  ;;  %v936_v1 = vrot.slane %v934_v60, 7 }
 0x4d4   :  { %v997_v33 = vadd.f32 %v996_v27, %v985_v45  ;;  %v999_v4 = vadd.f32 %v996_v27, %v987_v36  ;;  %v931_v14 = vmul.f32 %v930_v46, %v3695_v10  ;;  %v1054_v10 = vadd.f32 %v1051_v8, %v1042_v12 }
 0x4d5   :  { %v938_v18 = vsub.f32 %v3728_v62, %v936_v1  ;;  %v1228_v45 = vrot.slane %v3728_v62, %v3517_v43  ;;  %v1235_v27 = vrot.slane %v3728_v62, %v3520_v50  ;;  %v2719_v62 = vld [vmem:[%s4260_s11 + $0x8] ss:$0 sm:$0xff] }
 0x4d6   :  { %v1000_v16 = vpack.c.bf16 %v998_v0, %v997_v33  ;;  %v1001_v42 = vpack.c.bf16 %v999_v4, %v999_v4  ;;  %v1056_v29 = vpack.c.bf16 %v1054_v10, %v1054_v10 }
 0x4d7   :  { %v942_v52 = vrot.slane %v938_v18, %v3498_v11 }
 0x4d8   :  { %2887 = vmatprep.mubr.msk.bf16.mxu0 %vm265_vm9, %v1000_v16 }
 0x4d9   :  { %v944_v63 = vadd.f32 %v942_v52, %v932_v34  ;;  %2888 = vmatmul.mubr.msk.bf16.vlgmr.msra.gmra.mrb[16].mxu0 %vm265_vm9, %v1001_v42  ;;  %v943_v23 = vadd.f32 %v942_v52, %v931_v14  ;;  %v945_v21 = vadd.f32 %v942_v52, %v933_v47 }
 0x4da   :  { %2900 = vmatpush3.bf16.msra.mxu0 %v1172_v20  ;;  %2901 = vmatprep.mubr.msk.bf16.mxu0 %vm375_vm8, %v1055_v19 }
 0x4db   :  { %v946_v44 = vpack.c.bf16 %v944_v63, %v943_v23  ;;  %v947_v26 = vpack.c.bf16 %v945_v21, %v945_v21  ;;  %2913 = vmatprep.subr.bf16.mxu0 %v3170_v13 }
 0x4dd   :  { %2895 = vmatprep.mubr.msk.bf16.mxu1 %vm265_vm9, %v946_v44 }
 0x4de   :  { %2896 = vmatmul.mubr.msk.bf16.vlgmr.msra.gmra.mrb[16].mxu1 %vm265_vm9, %v947_v26 }
 0x4df   :  { %2909 = vmatprep.mubr.msk.bf16.mxu1 %vm3171_vm10, %v3170_v13 }
 0x4e1   :  { %2902 = vmatmul.mubr.msk.bf16.vlgmr.msra.gmra.mrb[20].mxu0 %vm375_vm8, %v1056_v29 }
 0x4e2   :  { %2914 = vmatpush3.bf16.msra.mxu0 %v3573_v3  ;;  %2915 = vmatprep.mubr.msk.bf16.mxu0 %vm3171_vm10, %v3170_v13 }
 0x4e3   :  { %2925 = vmatprep.subr.bf16.mxu0 %v3170_v13 }
 0x5ac   :  { %v2889_v28 = vpop.f32.mrb[16].mxu0 }
 0x5ad   :  { %v1097_v25 = vpop.f32.mrb[17].mxu0 }
 0x5ae   :  { %v2890_v38 = vpop.f32.mrb[18].mxu0 }
 0x5af   :  { %v1100_v24 = vpop.f32.mrb[19].mxu0 }
 0x5b1   :  { %v2897_v17 = vpop.f32.mrb[16].mxu1 }
 0x5b2   :  { %v1160_v41 = vadd.f32 %v2897_v17, %v2889_v28  ;;  %v1151_v35 = vpop.f32.mrb[17].mxu1 }
 0x5b3   :  { %v1152_v40 = vadd.f32 %v1151_v35, %v1097_v25  ;;  %v2898_v36 = vpop.f32.mrb[18].mxu1  ;;  %v719_v35 = vld [vmem:[%s4302_s12] sm:$0x3] }
 0x5b4   :  { %v2903_v39 = vpop.f32.mrb[20].mxu0  ;;  %v1154_v54 = vpop.f32.mrb[19].mxu1  ;;  %v776_v36 = vrot.slane %v719_v35, %v3498_v11 }
 0x5b5   :  { %v1224_v55 = vadd.f32 %v2903_v39, %v1160_v41  ;;  %v1155_v6 = vadd.f32 %v1154_v54, %v1100_v24  ;;  %v1208_v8 = vpop.f32.mrb[21].mxu0  ;;  %v1341_v24 = vld [vmem:[%s4262_s13 + $0x8] sm:$0xf]  ;;  %v1340_v41 = vld [vmem:[%s4262_s13] sm:$0xff] }
 0x5b6   :  { %v1222_v56 = vadd.f32 %v1208_v8, %v1152_v40  ;;  %v2904_v59 = vpop.f32.mrb[22].mxu0  ;;  %vm777_vm14 = vcmp.eq.s32.totalorder %v3466_v48, %v776_v36 }
 0x5b7   :  { %v1211_v46 = vpop.f32.mrb[23].mxu0  ;;  %v1231_v61 = vadd.f32 %v1228_v45, %v1224_v55 }
 0x5b8   :  { %v1229_v60 = vadd.f32 %v1228_v45, %v1222_v56  ;;  %v1223_v32 = vadd.f32 %v1211_v46, %v1155_v6  ;;  %v778_v56 = vsel %vm777_vm14, 1.0, %v3170_v13 }
 0x5b9   :  { %v1238_v4 = vmul.f32 %v1235_v27, %v1231_v61 }
 0x5ba   :  { %v1230_v0 = vadd.f32 %v1228_v45, %v1223_v32  ;;  %v1236_v34 = vmul.f32 %v1235_v27, %v1229_v60  ;;  %v779_v32 = vpack.c.bf16 %v778_v56, %v778_v56 }
 0x5bb   :  { %v1245_v14 = vsel %vm895_vm12, %v1238_v4, 0.0 }
 0x5bc   :  { %v1239_v47 = vsel %vm265_vm9, %v1236_v34, 0.0  ;;  %v1237_v1 = vmul.f32 %v1235_v27, %v1230_v0 }
 0x5bd   :  { %1240 = vadd.xlane.f32.xlu1 %v1239_v47 }
 0x5be   :  { %v1242_v33 = vsel %vm265_vm9, %v1237_v1, 0.0 }
 0x5bf   :  { %1243 = vadd.xlane.f32.xlu0 %v1242_v33 }
 0x5c3   :  { %1246 = vadd.xlane.f32.xlu0 %v1245_v14  ;;  %v1351_v14 = vld [vmem:[%s4266_s17 + $0x20] sm:$0xff] }
 0x64a   :  { %v1241_v18 = vpop.xlane.xlu1 %1240 }
 0x64b   :  { %v1252_v12 = vadd.f32 %v2719_v62, %v1241_v18 }
 0x64c   :  { %v1244_v16 = vpop.xlane.xlu0 %1243 }
 0x64d   :  { %v2720_v42 = vmul.f32 -1.442695, %v1252_v12  ;;  %v1253_v19 = vadd.f32 %v2719_v62, %v1244_v16  ;;  %v1347_v12 = vld [vmem:[%s4266_s17] sm:$0xff]  ;;  %v1348_v16 = vld [vmem:[%s4266_s17 + $0x8] sm:$0xff] }
 0x64f   :  { %3070 = vpow2.f32 %v2720_v42  ;;  %v2721_v52 = vmul.f32 -1.442695, %v1253_v19  ;;  %v1356_v42 = vpack.c.bf16 %v1348_v16, %v1347_v12  ;;  %v1353_v19 = vld [vmem:[%s4266_s17 + $0x30] sm:$0xff] }
 0x650   :  { %v1247_v20 = vpop.xlane.xlu0 %1246 }
 0x651   :  { %3072 = vpow2.f32 %v2721_v52  ;;  %v1254_v63 = vadd.f32 %v2719_v62, %v1247_v20  ;;  %v1352_v62 = vld [vmem:[%s4266_s17 + $0x28] sm:$0xff]  ;;  %v1354_v52 = vld [vmem:[%s4266_s17 + $0x38] sm:$0xff] }
 0x652   :  { %v1358_v18 = vpack.c.bf16 %v1352_v62, %v1351_v14  ;;  %v1359_v20 = vpack.c.bf16 %v1354_v52, %v1353_v19 }
 0x653   :  { %v2722_v23 = vmul.f32 -1.442695, %v1254_v63  ;;  %v1349_v63 = vld [vmem:[%s4266_s17 + $0x10] sm:$0xff] }
 0x655   :  { %3074 = vpow2.f32 %v2722_v23  ;;  %v1350_v23 = vld [vmem:[%s4266_s17 + $0x18] sm:$0xff] }
 0x659   :  { %v3071_v21 = vpop.eup %3070 }
 0x65a   :  { %v1264_v10 = vadd.f32 1.0, %v3071_v21  ;;  %v1357_v21 = vpack.c.bf16 %v1350_v23, %v1349_v63 }
 0x65b   :  { %v3073_v44 = vpop.eup %3072 }
 0x65c   :  { %3076 = vrcp.f32 %v1264_v10  ;;  %v1265_v26 = vadd.f32 1.0, %v3073_v44  ;;  %v3857_v10 = vld [vmem:[%s4264_s15] sm:$0xff]  ;;  %v3862_v44 = vld [vmem:[%s4264_s15 + $0x8] sm:$0xf] }
 0x65e   :  { %3078 = vrcp.f32 %v1265_v26  ;;  %v1571_v26 = vsel %vm375_vm8, %v3857_v10, 0.0 }
 0x65f   :  { %v3075_v29 = vpop.eup %3074 }
 0x660   :  { %v1266_v28 = vadd.f32 1.0, %v3075_v29  ;;  %v1572_v29 = vsel %vm1005_vm11, %v3862_v44, 0.0 }
 0x662   :  { %3080 = vrcp.f32 %v1266_v28  ;;  %v1581_v28 = vmul.f32 %v3857_v10, %v3857_v10 }
 0x666   :  { %v3077_v25 = vpop.eup %3076 }
 0x667   :  { %1275 = vperm.xlu1 %3036, %v3077_v25   ;;  %v1582_v25 = vmul.f32 %v3862_v44, %v3862_v44 }
 0x668   :  { %v3079_v38 = vpop.eup %3078 }
 0x669   :  { %1280 = vperm.xlu0 %3037, %v3079_v38   ;;  %v1573_v38 = vadd.f32 %v1572_v29, %v1571_v26 }
 0x66c   :  { %v3081_v17 = vpop.eup %3080 }
 0x66d   :  { %1285 = vperm.xlu1 %3036, %v3081_v17   ;;  %3039 = vset.pattern.permute.xlu0 %v3168_v2  ;;  %v1584_v17 = vsel %vm1005_vm11, %v1582_v25, 0.0  ;;  %vm1803_vm11 = vcmask 97280  }
 0x66e   :  { %1376 = vperm.xlu0 %3039, %v1341_v24  }
 0x671   :  { %3038 = vset.pattern.permute.xlu1 %v3168_v2 }
 0x672   :  { %1373 = vperm.xlu1 %3038, %v1340_v41   ;;  %3041 = vset.pattern.permute.xlu0 %v3169_v7 }
 0x676   :  { %3040 = vset.pattern.permute.xlu1 %v3169_v7 }
 0x677   :  { %1362 = vperm.xlu1 %3040, %v1340_v41   ;;  %v1574_v41 = vrot.slane %v1573_v38, 4 }
 0x67b   :  { %1365 = vperm.xlu1 %3040, %v1341_v24   ;;  %v1583_v24 = vsel %vm375_vm8, %v1581_v28, 0.0 }
 0x67c   :  { %v1585_v35 = vadd.f32 %v1584_v17, %v1583_v24 }
 0x67e   :  { %v1586_v36 = vrot.slane %v1585_v35, 4 }
 0x6e6   :  { %v1276_v40 = vpop.permute.xlu1 %1275 }
 0x6e7   :  { %v1288_v45 = vmul.f32 %v1276_v40, %v1229_v60  ;;  %v1575_v40 = vadd.f32 %v1574_v41, %v1573_v38 }
 0x6e8   :  { %v1281_v39 = vpop.permute.xlu0 %1280 }
 0x6e9   :  { %v1289_v54 = vmul.f32 %v1281_v39, %v1230_v0  ;;  %v1576_v39 = vrot.slane %v1575_v40, 2 }
 0x6eb   :  { %v1291_v55 = vpack.c.bf16 %v1289_v54, %v1288_v45  ;;  %v1587_v45 = vadd.f32 %v1586_v36, %v1585_v35  ;;  %v1577_v54 = vadd.f32 %v1576_v39, %v1575_v40 }
 0x6ec   :  { %v1286_v6 = vpop.permute.xlu1 %1285 }
 0x6ed   :  { %v1290_v8 = vmul.f32 %v1286_v6, %v1231_v61  ;;  %2906 = vmatpush3.bf16.msra.mxu1 %v1291_v55  ;;  %v1377_v34 = vpop.permute.xlu0 %1376  ;;  %v1588_v55 = vrot.slane %v1587_v45, 2  ;;  %v1578_v56 = vrot.slane %v1577_v54, 1 }
 0x6ee   :  { %2907 = vmatprep.subr.bf16.mxu1 %v3170_v13  ;;  %vm1379_vm4 = vcmp.eq.s32.totalorder %v3332_v9, %v1377_v34 }
 0x6ef   :  { %v1292_v59 = vpack.c.bf16 %v1290_v8, %v1290_v8  ;;  %v1381_v0 = vsel %vm1379_vm4, 1.0, %v3170_v13 }
 0x6f1   :  { %v1298_v27 = vsel %vm544_vm7, %v1292_v59, 0  ;;  %v1374_v46 = vpop.permute.xlu1 %1373  ;;  %v1589_v59 = vadd.f32 %v1588_v55, %v1587_v45 }
 0x6f2   :  { %2908 = vmatpush3.bf16.msra.mxu1 %v1298_v27  ;;  %vm1378_vm2 = vcmp.eq.s32.totalorder %v3332_v9, %v1374_v46 }
 0x6f3   :  { %2919 = vmatprep.subr.bf16.mxu1 %v3170_v13  ;;  %v1380_v61 = vsel %vm1378_vm2, 1.0, %v3170_v13  ;;  %v1590_v34 = vrot.slane %v1589_v59, 1 }
 0x6f4   :  { %v1382_v33 = vpack.c.bf16 %v1381_v0, %v1380_v61 }
 0x6f5   :  { %2910 = vmatmul.mubr.msk.bf16.vlgmr.msra.gmra.mrb[20].mxu1 %vm1293_vm15, %v779_v32  ;;  %v1579_v32 = vadd.f32 %v1578_v56, %v1577_v54 }
 0x6f6   :  { %v1363_v60 = vpop.permute.xlu1 %1362  ;;  %2920 = vmatpush3.bf16.msra.mxu1 %v3573_v3  ;;  %2921 = vmatprep.mubr.msk.bf16.mxu1 %vm3171_vm10, %v3170_v13 }
 0x6f7   :  { %vm1367_vm5 = vcmp.eq.s32.totalorder %v3332_v9, %v1363_v60  ;;  %2933 = vmatprep.subr.bf16.mxu1 %v3170_v13  ;;  %v3878_v0 = vmul.f32 0.083333336, %v1579_v32 }
 0x6f8   :  { %v1369_v47 = vsel %vm1367_vm5, 1.0, %v3170_v13 }
 0x6fa   :  { %v1366_v1 = vpop.permute.xlu1 %1365 }
 0x6fb   :  { %vm1368_vm6 = vcmp.eq.s32.totalorder %v3332_v9, %v1366_v1 }
 0x6fc   :  { %v1370_v4 = vsel %vm1368_vm6, 1.0, %v3170_v13 }
 0x6fd   :  { %v1371_v3 = vpack.c.bf16 %v1370_v4, %v1369_v47  ;;  %2922 = vmatmul.mubr.msk.bf16.vlgmr.msra.gmra.mrb[24].mxu1 %vm834_vm1, %v1382_v33  ;;  %v1591_v47 = vadd.f32 %v1590_v34, %v1589_v59 }
 0x6fe   :  { %2937 = vmatprep.mubr.msk.bf16.mxu1 %vm3171_vm10, %v3170_v13  ;;  %2934 = vmatpush3.bf16.msra.mxu1 %v1356_v42 }
 0x6ff   :  { %2916 = vmatmul.mubr.msk.bf16.vlgmr.msra.gmra.mrb[24].mxu0 %vm834_vm1, %v1371_v3  ;;  %2935 = vmatprep.subr.bf16.mxu1 %v3170_v13  ;;  %v1592_v23 = vmul.f32 0.083333336, %v1591_v47 }
 0x700   :  { %2929 = vmatprep.mubr.msk.bf16.mxu0 %vm3171_vm10, %v3170_v13  ;;  %2926 = vmatpush3.bf16.msra.mxu0 %v1358_v18 }
 0x701   :  { %2927 = vmatprep.subr.bf16.mxu0 %v3170_v13 }
 0x702   :  { %2936 = vmatpush3.bf16.msra.mxu1 %v1357_v21  ;;  %v1593_v21 = vmul.f32 %v3878_v0, %v3878_v0 }
 0x703   :  { %2947 = vmatprep.subr.bf16.mxu1 %v3170_v13 }
 0x704   :  { %2928 = vmatpush3.bf16.msra.mxu0 %v1359_v20  ;;  %v1594_v45 = vsub.f32 %v1592_v23, %v1593_v21 }
 0x705   :  { %2941 = vmatprep.subr.bf16.mxu0 %v3170_v13 }
 0x706   :  { %v1595_v34 = vmax.f32 %v1594_v45, 0.0 }
 0x7c8   :  { %v3874_v6 = vpop.f32.mrb[20].mxu1 }
 0x7c9   :  { %v2911_v8 = vpop.f32.mrb[21].mxu1 }
 0x7ca   :  { %v1337_v27 = vpop.f32.mrb[22].mxu1 }
 0x7cb   :  { %v2912_v46 = vpop.f32.mrb[23].mxu1 }
 0x7d0   :  { %v3876_v60 = vpop.f32.mrb[24].mxu1 }
 0x7d1   :  { %v2923_v61 = vpop.f32.mrb[25].mxu1  ;;  %v1535_v1 = vmul.f32 %v3876_v60, %v3876_v60  ;;  %v1525_v3 = vsel %vm265_vm9, %v3876_v60, 0.0 }
 0x7d2   :  { %v3882_v33 = vpop.f32.mrb[24].mxu0  ;;  %v3884_v4 = vpop.f32.mrb[26].mxu1 }
 0x7d3   :  { %v1489_v14 = vmul.f32 %v3882_v33, %v3882_v33  ;;  %v1526_v62 = vsel %vm895_vm12, %v3884_v4, 0.0  ;;  %v2917_v18 = vpop.f32.mrb[25].mxu0  ;;  %v2924_v12 = vpop.f32.mrb[27].mxu1  ;;  %v1536_v42 = vmul.f32 %v3884_v4, %v3884_v4  ;;  %v1537_v26 = vsel %vm265_vm9, %v1535_v1, 0.0 }
 0x7d4   :  { %v1527_v16 = vadd.f32 %v1526_v62, %v1525_v3  ;;  %v3894_v19 = vpop.f32.mrb[26].mxu0  ;;  %v1478_v29 = vsel %vm265_vm9, %v3882_v33, 0.0 }
 0x7d5   :  { %v1479_v52 = vsel %vm895_vm12, %v3894_v19, 0.0  ;;  %v1490_v20 = vmul.f32 %v3894_v19, %v3894_v19  ;;  %v2918_v63 = vpop.f32.mrb[27].mxu0  ;;  %v1538_v25 = vsel %vm895_vm12, %v1536_v42, 0.0  ;;  %v1491_v38 = vsel %vm265_vm9, %v1489_v14, 0.0 }
 0x7d6   :  { %v1528_v28 = vrot.slane %v1527_v16, 4  ;;  %v1539_v24 = vadd.f32 %v1538_v25, %v1537_v26  ;;  %v1480_v17 = vadd.f32 %v1479_v52, %v1478_v29 }
 0x7d7   :  { %v1492_v41 = vsel %vm895_vm12, %v1490_v20, 0.0 }
 0x7d8   :  { %v1529_v35 = vadd.f32 %v1528_v28, %v1527_v16  ;;  %v1493_v40 = vadd.f32 %v1492_v41, %v1491_v38  ;;  %v1540_v36 = vrot.slane %v1539_v24, 4  ;;  %v1481_v39 = vrot.slane %v1480_v17, 4 }
 0x7d9   :  { %v1596_v16 = vadd.f32 1e-05, %v1595_v34 }
 0x7da   :  { %v1530_v54 = vrot.slane %v1529_v35, 2  ;;  %v1494_v55 = vrot.slane %v1493_v40, 4  ;;  %v1541_v8 = vadd.f32 %v1540_v36, %v1539_v24  ;;  %v1482_v56 = vadd.f32 %v1481_v39, %v1480_v17  ;;  %v1345_v39 = vld [vmem:[%s4265_s16] sm:$0xff] }
 0x7db   :  { %3082 = vrsqrt.f32 %v1596_v16 }
 0x7dc   :  { %v1531_v59 = vadd.f32 %v1530_v54, %v1529_v35  ;;  %v1495_v27 = vadd.f32 %v1494_v55, %v1493_v40  ;;  %v1542_v46 = vrot.slane %v1541_v8, 2  ;;  %v1483_v32 = vrot.slane %v1482_v56, 2 }
 0x7de   :  { %v1532_v61 = vrot.slane %v1531_v59, 1  ;;  %v1496_v47 = vrot.slane %v1495_v27, 2  ;;  %v1543_v1 = vadd.f32 %v1542_v46, %v1541_v8  ;;  %v1484_v3 = vadd.f32 %v1483_v32, %v1482_v56 }
 0x7e0   :  { %v1533_v14 = vadd.f32 %v1532_v61, %v1531_v59  ;;  %v1497_v62 = vadd.f32 %v1496_v47, %v1495_v27  ;;  %v1544_v18 = vrot.slane %v1543_v1, 1  ;;  %v1485_v12 = vrot.slane %v1484_v3, 1 }
 0x7e2   :  { %v1534_v42 = vmul.f32 0.083333336, %v1533_v14  ;;  %v1498_v52 = vrot.slane %v1497_v62, 1  ;;  %v1545_v20 = vadd.f32 %v1544_v18, %v1543_v1  ;;  %v1486_v63 = vadd.f32 %v1485_v12, %v1484_v3 }
 0x7e4   :  { %v1547_v23 = vmul.f32 %v1534_v42, %v1534_v42  ;;  %v1499_v21 = vadd.f32 %v1498_v52, %v1497_v62  ;;  %v1546_v26 = vmul.f32 0.083333336, %v1545_v20  ;;  %v1488_v29 = vmul.f32 0.083333336, %v1486_v63 }
 0x7e5   :  { %v3083_v36 = vpop.eup %3082 }
 0x7e6   :  { %v1500_v28 = vmul.f32 0.083333336, %v1499_v21  ;;  %v1548_v25 = vsub.f32 %v1546_v26, %v1547_v23  ;;  %v1501_v38 = vmul.f32 %v1488_v29, %v1488_v29  ;;  %v1598_v45 = vmul.f32 %v3083_v36, %v1345_v39 }
 0x7e8   :  { %v1549_v24 = vmax.f32 %v1548_v25, 0.0  ;;  %v1502_v17 = vsub.f32 %v1500_v28, %v1501_v38  ;;  %v1605_v54 = vmul.f32 %v1598_v45, %v3878_v0  ;;  %v1355_v0 = vld [vmem:[%s4266_s17 + $0x40] sm:$0xf]  ;;  %v1602_v14 = vrot.slane %v1598_v45, %v3469_v49  ;;  %s3173_s17 = smov [#allocation4]  }
 0x7e9   :  { %s2678_s11 = sshll.u32 %s3173_s17, 4  ;;  %s2679_s11 = int_to_ptr.vmem [resolvable:$true] %s2678_s11 }
 0x7ea   :  { %v1550_v41 = vadd.f32 1e-05, %v1549_v24  ;;  %v1503_v35 = vmax.f32 %v1502_v17, 0.0  ;;  %v1607_v32 = vrot.slane %v1605_v54, 7  ;;  %v1603_v20 = vmul.f32 %v1602_v14, %v3857_v10 }
 0x7eb   :  { %v1604_v21 = vmul.f32 %v1602_v14, %v3862_v44 }
 0x7ec   :  { %3084 = vrsqrt.f32 %v1550_v41  ;;  %v1504_v40 = vadd.f32 1e-05, %v1503_v35  ;;  %v1609_v16 = vsub.f32 %v1345_v39, %v1607_v32 }
 0x7ee   :  { %3086 = vrsqrt.f32 %v1504_v40  ;;  %v1613_v26 = vrot.slane %v1609_v16, %v3478_v5  ;;  %v3958_v16 = vld [vmem:[%s4295_s27] sm:$0xff] }
 0x7f0   :  { %v1614_v38 = vadd.f32 %v1613_v26, %v1603_v20  ;;  %v1615_v24 = vadd.f32 %v1613_v26, %v1604_v21  ;;  %v1864_v26 = vsel %vm265_vm9, %v3958_v16, 0.0 }
 0x7f2   :  { %v1616_v10 = vpack.c.bf16 %v1615_v24, %v1614_v38 }
 0x7f6   :  { %v3085_v55 = vpop.eup %3084 }
 0x7f7   :  { %v1552_v8 = vmul.f32 %v3085_v55, %v1345_v39 }
 0x7f8   :  { %v3087_v56 = vpop.eup %3086 }
 0x7f9   :  { %v1556_v59 = vrot.slane %v1552_v8, %v3472_v51  ;;  %v1559_v27 = vmul.f32 %v1552_v8, %v1534_v42  ;;  %v1506_v46 = vmul.f32 %v3087_v56, %v1345_v39 }
 0x7fb   :  { %v1557_v34 = vmul.f32 %v1556_v59, %v3876_v60  ;;  %v1558_v61 = vmul.f32 %v1556_v59, %v3884_v4  ;;  %v1561_v47 = vrot.slane %v1559_v27, 7  ;;  %v1510_v1 = vrot.slane %v1506_v46, %v3485_v58 }
 0x7fc   :  { %v1513_v3 = vmul.f32 %v1506_v46, %v1488_v29  ;;  %v1360_v4 = vpack.c.bf16 %v1355_v0, %v1355_v0  ;;  %v1757_v59 = vrot.slane %v1345_v39, %v3517_v43 }
 0x7fd   :  { %v1563_v62 = vsub.f32 %v1345_v39, %v1561_v47  ;;  %v1511_v18 = vmul.f32 %v1510_v1, %v3882_v33  ;;  %v1512_v12 = vmul.f32 %v1510_v1, %v3894_v19 }
 0x7fe   :  { %v1515_v42 = vrot.slane %v1513_v3, 7  ;;  %v1709_v33 = vsel %vm544_vm7, %v1360_v4, 0 }
 0x7ff   :  { %v1567_v60 = vrot.slane %v1563_v62, %v3482_v57 }
 0x800   :  { %v1517_v52 = vsub.f32 %v1345_v39, %v1515_v42  ;;  %v1875_v42 = vmul.f32 %v3958_v16, %v3958_v16 }
 0x801   :  { %v1568_v63 = vadd.f32 %v1567_v60, %v1557_v34  ;;  %v1569_v23 = vadd.f32 %v1567_v60, %v1558_v61  ;;  %v1763_v34 = vrot.slane %v1345_v39, %v3520_v50  ;;  %v3951_v50 = vld [vmem:[%s4301_s30] sm:$0xff]  ;;  %v3965_v60 = vld [vmem:[%s4295_s27 + $0x8] sm:$0xff]  ;;  %s4303_s27 = sld [smem:[#allocation10_spill]] }
 0x802   :  { %v1521_v29 = vrot.slane %v1517_v52, %v3498_v11  ;;  %v2099_v39 = vmul.f32 %v3951_v50, %v3951_v50  ;;  %v1876_v4 = vmul.f32 %v3965_v60, %v3965_v60  ;;  %v1877_v20 = vsel %vm265_vm9, %v1875_v42, 0.0 }
 0x803   :  { %v1570_v28 = vpack.c.bf16 %v1569_v23, %v1568_v63  ;;  %v2090_v23 = vsel %vm265_vm9, %v3951_v50, 0.0 }
 0x804   :  { %v1522_v19 = vadd.f32 %v1521_v29, %v1511_v18  ;;  %v1523_v25 = vadd.f32 %v1521_v29, %v1512_v12  ;;  %v2100_v52 = vsel %vm265_vm9, %v2099_v39, 0.0  ;;  %v1878_v63 = vsel %vm265_vm9, %v1876_v4, 0.0 }
 0x805   :  { %2930 = vmatmul.mubr.msk.bf16.vlgmr.msra.gmra.mrb[28].mxu0 %vm265_vm9, %v1570_v28  ;;  %v2101_v21 = vrot.slane %v2100_v52, 4  ;;  %v1865_v29 = vsel %vm265_vm9, %v3965_v60, 0.0  ;;  %v1879_v28 = vadd.f32 %v1878_v63, %v1877_v20 }
 0x806   :  { %v1524_v17 = vpack.c.bf16 %v1523_v25, %v1522_v19  ;;  %2942 = vmatpush3.bf16.msra.mxu0 %v1709_v33  ;;  %2943 = vmatprep.mubr.msk.bf16.mxu0 %vm3171_vm10, %v3170_v13  ;;  %v1866_v33 = vadd.f32 %v1865_v29, %v1864_v26  ;;  %v2091_v19 = vrot.slane %v2090_v23, 4  ;;  %v2729_v25 = vld [vmem:[%s4265_s16 + $0x8] ss:$0 sm:$0xff] }
 0x807   :  { %2953 = vmatprep.subr.bf16.mxu0 %v3170_v13  ;;  %v2102_v24 = vadd.f32 %v2101_v21, %v2100_v52 }
 0x808   :  { %2938 = vmatmul.mubr.msk.bf16.vlgmr.msra.gmra.mrb[28].mxu1 %vm265_vm9, %v1524_v17  ;;  %v1867_v38 = vrot.slane %v1866_v33, 4 }
 0x809   :  { %2949 = vmatprep.mubr.msk.bf16.mxu1 %vm3171_vm10, %v3170_v13 }
 0x80d   :  { %2944 = vmatmul.mubr.msk.bf16.vlgmr.msra.gmra.mrb[32].mxu0 %vm375_vm8, %v1616_v10  ;;  %vm1807_vm8 = vcmask 1045504  }
 0x80e   :  { %2957 = vmatprep.mubr.msk.bf16.mxu0 %vm3171_vm10, %v3170_v13 }
 0x8d8   :  { %v1654_v44 = vpop.f32.mrb[28].mxu0 }
 0x8d9   :  { %v2931_v41 = vpop.f32.mrb[29].mxu0 }
 0x8da   :  { %v1657_v35 = vpop.f32.mrb[30].mxu0  ;;  %v1880_v41 = vrot.slane %v1879_v28, 4 }
 0x8db   :  { %v1698_v40 = vpop.f32.mrb[28].mxu1  ;;  %v2932_v36 = vpop.f32.mrb[31].mxu0 }
 0x8dc   :  { %v1699_v45 = vadd.f32 %v1698_v40, %v1654_v44  ;;  %v2939_v54 = vpop.f32.mrb[29].mxu1  ;;  %v1868_v44 = vadd.f32 %v1867_v38, %v1866_v33 }
 0x8dd   :  { %v1701_v55 = vpop.f32.mrb[30].mxu1 }
 0x8de   :  { %v1702_v8 = vadd.f32 %v1701_v55, %v1657_v35  ;;  %v2940_v56 = vpop.f32.mrb[31].mxu1  ;;  %v2092_v35 = vadd.f32 %v2091_v19, %v2090_v23  ;;  %v1869_v54 = vrot.slane %v1868_v44, 2  ;;  %v1881_v55 = vadd.f32 %v1880_v41, %v1879_v28 }
 0x8e0   :  { %v1745_v27 = vpop.f32.mrb[32].mxu0 }
 0x8e1   :  { %v1752_v46 = vadd.f32 %v1745_v27, %v1699_v45  ;;  %v2945_v32 = vpop.f32.mrb[33].mxu0  ;;  %v1882_v27 = vrot.slane %v1881_v55, 2 }
 0x8e2   :  { %v1748_v61 = vpop.f32.mrb[34].mxu0 }
 0x8e3   :  { %v3940_v47 = vadd.f32 %v1757_v59, %v1752_v46  ;;  %v1753_v1 = vadd.f32 %v1748_v61, %v1702_v8  ;;  %v2946_v3 = vpop.f32.mrb[35].mxu0  ;;  %v2103_v8 = vrot.slane %v2102_v24, 2  ;;  %v2093_v46 = vrot.slane %v2092_v35, 2 }
 0x8e5   :  { %v3942_v0 = vadd.f32 %v1757_v59, %v1753_v1  ;;  %v1764_v14 = vmul.f32 %v1763_v34, %v3940_v47  ;;  %v1870_v59 = vadd.f32 %v1869_v54, %v1868_v44  ;;  %v2104_v61 = vadd.f32 %v2103_v8, %v2102_v24  ;;  %v2357_v54 = vld [vmem:[%s4294_s6 + $0x8] sm:$0xff] }
 0x8e6   :  { %v1853_v8 = vld [vmem:[%s4268_s19 + $0x8] sm:$0xff] }
 0x8e7   :  { %v1766_v62 = vsel %vm265_vm9, %v1764_v14, 0.0  ;;  %v1765_v18 = vmul.f32 %v1763_v34, %v3942_v0  ;;  %v1871_v32 = vrot.slane %v1870_v59, 1  ;;  %v1883_v34 = vadd.f32 %v1882_v27, %v1881_v55  ;;  %v1852_v55 = vld [vmem:[%s4268_s19] sm:$0xff] }
 0x8e8   :  { %1767 = vadd.xlane.f32.xlu0 %v1766_v62  ;;  %v2094_v14 = vadd.f32 %v2093_v46, %v2092_v35 }
 0x8e9   :  { %v1769_v12 = vsel %vm895_vm12, %v1765_v18, 0.0  ;;  %v1872_v1 = vadd.f32 %v1871_v32, %v1870_v59  ;;  %v1884_v3 = vrot.slane %v1883_v34, 1  ;;  %v1860_v59 = vpack.c.bf16 %v1853_v8, %v1852_v55 }
 0x8ea   :  { %1770 = vadd.xlane.f32.xlu1 %v1769_v12  ;;  %v2105_v12 = vrot.slane %v2104_v61, 1  ;;  %v2095_v20 = vrot.slane %v2094_v14, 1 }
 0x8eb   :  { %v1874_v62 = vmul.f32 0.0625, %v1872_v1  ;;  %v1885_v18 = vadd.f32 %v1884_v3, %v1883_v34  ;;  %v3999_v34 = vld [vmem:[%s4269_s20] sm:$0x7f]  ;;  %2954 = vmatpush3.bf16.msra.mxu0 %v1860_v59  ;;  %v1854_v1 = vld [vmem:[%s4268_s19 + $0x10] sm:$0xff] }
 0x8ec   :  { %v2106_v21 = vadd.f32 %v2105_v12, %v2104_v61  ;;  %v2096_v29 = vadd.f32 %v2095_v20, %v2094_v14  ;;  %v2358_v61 = vld [vmem:[%s4294_s6 + $0x10] sm:$0xff]  ;;  %2955 = vmatprep.subr.bf16.mxu0 %v3170_v13  ;;  %v2072_v20 = vld [vmem:[%s4270_s21] sm:$0xff] }
 0x8ed   :  { %v1886_v39 = vmul.f32 0.0625, %v1885_v18  ;;  %v1887_v42 = vmul.f32 %v1874_v62, %v1874_v62 }
 0x8ee   :  { %v2098_v19 = vmul.f32 0.125, %v2096_v29 }
 0x8ef   :  { %v1888_v52 = vsub.f32 %v1886_v39, %v1887_v42 }
 0x8f0   :  { %v2108_v38 = vmul.f32 %v2098_v19, %v2098_v19 }
 0x8f1   :  { %v1889_v26 = vmax.f32 %v1888_v52, 0.0 }
 0x8f3   :  { %v1890_v33 = vadd.f32 1e-05, %v1889_v26 }
 0x975   :  { %v1768_v17 = vpop.xlane.xlu0 %1767 }
 0x976   :  { %v1776_v10 = vadd.f32 %v2729_v25, %v1768_v17 }
 0x977   :  { %v1771_v40 = vpop.xlane.xlu1 %1770 }
 0x978   :  { %v2730_v36 = vmul.f32 -1.442695, %v1776_v10  ;;  %v1777_v45 = vadd.f32 %v2729_v25, %v1771_v40  ;;  %v2107_v25 = vmul.f32 0.125, %v2106_v21  ;;  %v2356_v40 = vld [vmem:[%s4294_s6] sm:$0xff] }
 0x97a   :  { %3088 = vpow2.f32 %v2730_v36  ;;  %v2731_v56 = vmul.f32 -1.442695, %v1777_v45  ;;  %v2109_v24 = vsub.f32 %v2107_v25, %v2108_v38 }
 0x97c   :  { %3090 = vpow2.f32 %v2731_v56  ;;  %v2110_v17 = vmax.f32 %v2109_v24, 0.0 }
 0x97e   :  { %v2111_v10 = vadd.f32 1e-05, %v2110_v17  ;;  %v2178_v17 = vsel %vm265_vm9, %v3874_v6, 0.0 }
 0x984   :  { %v3089_v4 = vpop.eup %3088 }
 0x985   :  { %v1784_v63 = vadd.f32 1.0, %v3089_v4 }
 0x986   :  { %v3091_v23 = vpop.eup %3090 }
 0x987   :  { %3092 = vrcp.f32 %v1784_v63  ;;  %v1785_v28 = vadd.f32 1.0, %v3091_v23  ;;  %v2073_v63 = vld [vmem:[%s4270_s21 + $0x8] sm:$0xff] }
 0x988   :  { %v2084_v21 = vpack.c.bf16 %v2073_v63, %v2072_v20 }
 0x989   :  { %3094 = vrcp.f32 %v1785_v28  ;;  %v2074_v28 = vld [vmem:[%s4270_s21 + $0x10] sm:$0xff] }
 0x98a   :  { %3096 = vrsqrt.f32 %v1890_v33  ;;  %v2075_v33 = vld [vmem:[%s4270_s21 + $0x18] sm:$0xff] }
 0x98b   :  { %3098 = vrsqrt.f32 %v2111_v10  ;;  %v2085_v38 = vpack.c.bf16 %v2075_v33, %v2074_v28  ;;  %v2186_v10 = vmul.f32 %v3874_v6, %v3874_v6 }
 0x991   :  { %v3093_v44 = vpop.eup %3092 }
 0x992   :  { %1792 = vperm.xlu0 %3041, %v3093_v44   ;;  %v2179_v44 = vrot.slane %v2178_v17, 4 }
 0x993   :  { %v3095_v41 = vpop.eup %3094 }
 0x994   :  { %v3097_v35 = vpop.eup %3096  ;;  %1797 = vperm.xlu1 %3040, %v3095_v41   ;;  %v2187_v41 = vsel %vm265_vm9, %v2186_v10, 0.0  ;;  %v2077_v10 = vld [vmem:[%s4270_s21 + $0x28] sm:$0xff] }
 0x995   :  { %v1892_v36 = vmul.f32 %v3097_v35, %v3722_v53  ;;  %v3099_v32 = vpop.eup %3098  ;;  %v2180_v35 = vadd.f32 %v2179_v44, %v2178_v17  ;;  %v2076_v17 = vld [vmem:[%s4270_s21 + $0x20] sm:$0xff] }
 0x996   :  { %v2113_v18 = vmul.f32 %v3099_v32, %v3999_v34 }
 0x997   :  { %v1899_v45 = vmul.f32 %v1892_v36, %v1874_v62  ;;  %v1896_v27 = vrot.slane %v1892_v36, %v3485_v58  ;;  %v2181_v36 = vrot.slane %v2180_v35, 2 }
 0x998   :  { %2361 = vperm.xlu1 %3040, %v2356_v40   ;;  %v2119_v4 = vmul.f32 %v2113_v18, %v2098_v19  ;;  %v2117_v26 = vrot.slane %v2113_v18, %v3485_v58 }
 0x999   :  { %v1901_v56 = vrot.slane %v1899_v45, 7  ;;  %v1897_v3 = vmul.f32 %v3958_v16, %v1896_v27  ;;  %v1898_v14 = vmul.f32 %v3965_v60, %v1896_v27 }
 0x99a   :  { %v2121_v23 = vrot.slane %v2119_v4, 7  ;;  %v2118_v19 = vmul.f32 %v3951_v50, %v2117_v26  ;;  %v1857_v26 = vld [vmem:[%s4268_s19 + $0x28] sm:$0xff] }
 0x99b   :  { %v1903_v46 = vsub.f32 %v3722_v53, %v1901_v56  ;;  %v1855_v53 = vld [vmem:[%s4268_s19 + $0x18] sm:$0xff] }
 0x99c   :  { %2364 = vperm.xlu1 %3040, %v2357_v54   ;;  %v1861_v12 = vpack.c.bf16 %v1855_v53, %v1854_v1  ;;  %v2123_v29 = vsub.f32 %v3999_v34, %v2121_v23 }
 0x99d   :  { %v1907_v62 = vrot.slane %v1903_v46, %v3498_v11 }
 0x99e   :  { %2956 = vmatpush3.bf16.msra.mxu0 %v1861_v12  ;;  %v2127_v25 = vrot.slane %v2123_v29, %v3498_v11 }
 0x99f   :  { %v1908_v39 = vadd.f32 %v1907_v62, %v1897_v3  ;;  %v1909_v42 = vadd.f32 %v1907_v62, %v1898_v14  ;;  %2969 = vmatprep.subr.bf16.mxu0 %v3170_v13  ;;  %v1342_v14 = vld [vmem:[%s4263_s14] sm:$0x3] }
 0x9a0   :  { %2367 = vperm.xlu1 %3040, %v2358_v61   ;;  %v1386_v62 = vrot.slane %v1342_v14, %v3498_v11 }
 0x9a1   :  { %v1910_v52 = vpack.c.bf16 %v1909_v42, %v1908_v39 }
 0x9a2   :  { %vm1387_vm7 = vcmp.eq.s32.totalorder %v3466_v48, %v1386_v62 }
 0x9a3   :  { %2958 = vmatmul.mubr.msk.bf16.vlgmr.msra.gmra.mrb[36].mxu0 %vm265_vm9, %v1910_v52  ;;  %v1388_v20 = vsel %vm1387_vm7, 1.0, %v3170_v13 }
 0x9a4   :  { %3042 = vset.pattern.permute.xlu1 %v3168_v2  ;;  %2970 = vmatpush3.bf16.msra.mxu0 %v2084_v21  ;;  %v2128_v2 = vadd.f32 %v2127_v25, %v2118_v19  ;;  %v1856_v21 = vld [vmem:[%s4268_s19 + $0x20] sm:$0xff]  ;;  %v1389_v33 = vpack.c.bf16 %v1388_v20, %v1388_v20  ;;  %v1858_v19 = vld [vmem:[%s4268_s19 + $0x30] sm:$0xff]  ;;  %v1859_v25 = vld [vmem:[%s4268_s19 + $0x38] sm:$0xff] }
 0x9a5   :  { %2378 = vperm.xlu1 %3042, %v2356_v40   ;;  %2971 = vmatprep.subr.bf16.mxu0 %v3170_v13  ;;  %v2188_v40 = vrot.slane %v2187_v41, 4  ;;  %v2081_v20 = vld [vmem:[%s4270_s21 + $0x48] sm:$0xff] }
 0x9a6   :  { %2973 = vmatprep.mubr.msk.bf16.mxu0 %vm3171_vm10, %v3170_v13  ;;  %v2129_v24 = vpack.c.bf16 %v2128_v2, %v2128_v2  ;;  %v1863_v2 = vpack.c.bf16 %v1859_v25, %v1858_v19 }
 0x9a7   :  { %v2189_v45 = vadd.f32 %v2188_v40, %v2187_v41 }
 0x9a8   :  { %2972 = vmatpush3.bf16.msra.mxu0 %v2085_v38 }
 0x9a9   :  { %2381 = vperm.xlu1 %3042, %v2357_v54   ;;  %2985 = vmatprep.subr.bf16.mxu0 %v3170_v13  ;;  %v2182_v54 = vadd.f32 %v2181_v36, %v2180_v35  ;;  %v2190_v55 = vrot.slane %v2189_v45, 2  ;;  %v2086_v35 = vpack.c.bf16 %v2077_v10, %v2076_v17  ;;  %v2078_v36 = vld [vmem:[%s4270_s21 + $0x30] sm:$0xff] }
 0x9ab   :  { %2974 = vmatmul.mubr.msk.bf16.vlgmr.msra.gmra.mrb[40].mxu0 %vm265_vm9, %v2129_v24  ;;  %v2183_v8 = vrot.slane %v2182_v54, 1  ;;  %v2191_v56 = vadd.f32 %v2190_v55, %v2189_v45  ;;  %v2079_v45 = vld [vmem:[%s4270_s21 + $0x38] sm:$0xff] }
 0x9ac   :  { %2989 = vmatprep.mubr.msk.bf16.mxu0 %vm3171_vm10, %v3170_v13 }
 0x9ad   :  { %2384 = vperm.xlu1 %3042, %v2358_v61   ;;  %v2184_v59 = vadd.f32 %v2183_v8, %v2182_v54  ;;  %v2192_v27 = vrot.slane %v2191_v56, 1  ;;  %v4091_v54 = vld [vmem:[%s4303_s27] sm:$0xff]  ;;  %v2087_v8 = vpack.c.bf16 %v2079_v45, %v2078_v36 }
 0x9af   :  { %v2193_v46 = vadd.f32 %v2192_v27, %v2191_v56 }
 0x9b1   :  { %3043 = vset.pattern.permute.xlu1 %v3169_v7  ;;  %v2185_v7 = vmul.f32 0.125, %v2184_v59  ;;  %v2194_v32 = vmul.f32 0.125, %v2193_v46 }
 0x9b3   :  { %v2195_v61 = vmul.f32 %v2185_v7, %v2185_v7 }
 0x9b5   :  { %v2196_v1 = vsub.f32 %v2194_v32, %v2195_v61 }
 0x9b7   :  { %v2197_v53 = vmax.f32 %v2196_v1, 0.0 }
 0x9b9   :  { %v2198_v3 = vadd.f32 1e-05, %v2197_v53 }
 0x9bb   :  { %3100 = vrsqrt.f32 %v2198_v3 }
 0x9c5   :  { %v3101_v18 = vpop.eup %3100 }
 0x9c6   :  { %v2200_v39 = vmul.f32 %v3101_v18, %v3999_v34 }
 0x9c8   :  { %v2206_v63 = vmul.f32 %v2200_v39, %v2185_v7  ;;  %v2204_v44 = vrot.slane %v2200_v39, %v3472_v51  ;;  %v4096_v51 = vld [vmem:[%s4303_s27 + $0x8] sm:$0xff] }
 0x9c9   :  { %v4109_v59 = vpack.c.bf16 %v4096_v51, %v4091_v54 }
 0xa11   :  { %v1793_v12 = vpop.permute.xlu0 %1792 }
 0xa12   :  { %v1800_v4 = vmul.f32 %v1793_v12, %v3940_v47  ;;  %v1862_v47 = vpack.c.bf16 %v1857_v26, %v1856_v21  ;;  %v2083_v21 = vld [vmem:[%s4270_s21 + $0x58] sm:$0xff] }
 0xa13   :  { %v1798_v42 = vpop.permute.xlu1 %1797 }
 0xa14   :  { %v1801_v52 = vmul.f32 %v1798_v42, %v3942_v0  ;;  %v2208_v0 = vrot.slane %v2206_v63, 7 }
 0xa16   :  { %v1802_v23 = vpack.c.bf16 %v1801_v52, %v1800_v4  ;;  %v2210_v24 = vsub.f32 %v3999_v34, %v2208_v0  ;;  %v3119_v0 = vld [vmem:[%s4267_s18] sm:$0x1f] }
 0xa17   :  { %v2362_v29 = vpop.permute.xlu1 %2361  ;;  %v1958_v19 = vrot.slane %v3119_v0, %v3469_v49  ;;  %v2563_v0 = vld [vmem:[%s4271_s22] sm:$0x3] }
 0xa18   :  { %v1809_v28 = vsel %vm1807_vm8, %v1802_v23, 0  ;;  %v2214_v40 = vrot.slane %v2210_v24, %v3482_v57  ;;  %v2205_v57 = vmul.f32 %v2204_v44, %v3874_v6  ;;  %vm2369_vm14 = vcmp.eq.s32.totalorder %v3332_v9, %v2362_v29  ;;  %v2082_v23 = vld [vmem:[%s4270_s21 + $0x50] sm:$0xff] }
 0xa19   :  { %2948 = vmatpush3.bf16.msra.mxu1 %v1809_v28  ;;  %v2089_v26 = vpack.c.bf16 %v2083_v21, %v2082_v23 }
 0xa1a   :  { %2961 = vmatprep.subr.bf16.mxu1 %v3170_v13  ;;  %v2215_v56 = vadd.f32 %v2214_v40, %v2205_v57 }
 0xa1b   :  { %v2365_v38 = vpop.permute.xlu1 %2364 }
 0xa1c   :  { %2950 = vmatmul.mubr.msk.bf16.vlgmr.msra.gmra.mrb[32].mxu1 %vm1803_vm11, %v1389_v33  ;;  %vm2370_vm12 = vcmp.eq.s32.totalorder %v3332_v9, %v2365_v38  ;;  %v2216_v31 = vpack.c.bf16 %v2215_v56, %v2215_v56  ;;  %v2176_v56 = vrot.slane %v3999_v34, %v3517_v43 }
 0xa1d   :  { %2962 = vmatpush3.bf16.msra.mxu1 %v1862_v47  ;;  %2965 = vmatprep.mubr.msk.bf16.mxu1 %vm3171_vm10, %v3170_v13  ;;  %v2373_v30 = vsel %vm2370_vm12, 1.0, %v3170_v13 }
 0xa1e   :  { %2963 = vmatprep.subr.bf16.mxu1 %v3170_v13 }
 0xa1f   :  { %v2368_v41 = vpop.permute.xlu1 %2367 }
 0xa20   :  { %vm2371_vm4 = vcmp.eq.s32.totalorder %v3332_v9, %v2368_v41 }
 0xa21   :  { %2964 = vmatpush3.bf16.msra.mxu1 %v1863_v2  ;;  %v2374_v32 = vsel %vm2371_vm4, 1.0, %v3170_v13 }
 0xa22   :  { %2977 = vmatprep.subr.bf16.mxu1 %v3170_v13  ;;  %v2376_v53 = vpack.c.bf16 %v2374_v32, %v2374_v32 }
 0xa24   :  { %2966 = vmatmul.mubr.msk.bf16.vlgmr.msra.gmra.mrb[36].mxu1 %vm265_vm9, %v2006_v15  ;;  %v2379_v55 = vpop.permute.xlu1 %2378  ;;  %v2372_v15 = vsel %vm2369_vm14, 1.0, %v3170_v13 }
 0xa25   :  { %2978 = vmatpush3.bf16.msra.mxu1 %v2086_v35  ;;  %2981 = vmatprep.mubr.msk.bf16.mxu1 %vm3171_vm10, %v3170_v13  ;;  %v2375_v27 = vpack.c.bf16 %v2373_v30, %v2372_v15  ;;  %vm2386_vm15 = vcmp.eq.s32.totalorder %v3332_v9, %v2379_v55 }
 0xa26   :  { %2979 = vmatprep.subr.bf16.mxu1 %v3170_v13  ;;  %v2389_v7 = vsel %vm2386_vm15, 1.0, %v3170_v13 }
 0xa28   :  { %v2382_v6 = vpop.permute.xlu1 %2381 }
 0xa29   :  { %2980 = vmatpush3.bf16.msra.mxu1 %v2087_v8  ;;  %vm2387_vm2 = vcmp.eq.s32.totalorder %v3332_v9, %v2382_v6 }
 0xa2a   :  { %2993 = vmatprep.subr.bf16.mxu1 %v4109_v59  ;;  %v2390_v46 = vsel %vm2387_vm2, 1.0, %v3170_v13 }
 0xa2b   :  { %v4125_v61 = vpack.c.bf16 %v2390_v46, %v2389_v7 }
 0xa2c   :  { %2982 = vmatmul.mubr.msk.bf16.vlgmr.msra.gmra.mrb[40].mxu1 %vm265_vm9, %v2216_v31  ;;  %v2385_v1 = vpop.permute.xlu1 %2384 }
 0xa2d   :  { %2994 = vmatpush3.bf16.msra.mxu1 %v4109_v59  ;;  %2995 = vmatprep.mubr.msk.bf16.mxu1 %vm156_vm3, %v2375_v27  ;;  %vm2388_vm5 = vcmp.eq.s32.totalorder %v3332_v9, %v2385_v1 }
 0xa2e   :  { %3005 = vmatprep.subr.bf16.mxu1 %v3667_v22  ;;  %v2391_v3 = vsel %vm2388_vm5, 1.0, %v3170_v13 }
 0xa2f   :  { %v4133_v14 = vpack.c.bf16 %v2391_v3, %v2391_v3 }
 0xa34   :  { %2996 = vmatmul.mubr.msk.bf16.vlgmr.msra.gmra.mrb[44].mxu1 %vm156_vm3, %v2376_v53 }
 0xa35   :  { %3006 = vmatpush3.bf16.msra.mxu1 %v3667_v22  ;;  %3007 = vmatprep.mubr.msk.bf16.mxu1 %vm156_vm3, %v4125_v61  ;;  %v2080_v22 = vld [vmem:[%s4270_s21 + $0x40] sm:$0xff] }
 0xa36   :  { %v2088_v63 = vpack.c.bf16 %v2081_v20, %v2080_v22 }
 0xa38   :  { %2986 = vmatpush3.bf16.msra.mxu0 %v2088_v63 }
 0xa39   :  { %2987 = vmatprep.subr.bf16.mxu0 %v3170_v13 }
 0xa3c   :  { %3008 = vmatmul.mubr.msk.bf16.vlgmr.msra.gmra.mrb[48].mxu1 %vm156_vm3, %v4133_v14  ;;  %2988 = vmatpush3.bf16.msra.mxu0 %v2089_v26 }
 0xa3d   :  { %2999 = vmatprep.subr.bf16.mxu0 %v4109_v59 }
 0xa76   :  { %v1948_v62 = vpop.f32.mrb[36].mxu0 }
 0xa77   :  { %v2959_v18 = vpop.f32.mrb[37].mxu0  ;;  %v1959_v44 = vadd.f32 %v1958_v19, %v1948_v62 }
 0xa78   :  { %v1951_v12 = vpop.f32.mrb[38].mxu0 }
 0xa79   :  { %v2960_v39 = vpop.f32.mrb[39].mxu0  ;;  %v1960_v40 = vadd.f32 %v1958_v19, %v1951_v12 }
 0xa7e   :  { %v2167_v42 = vpop.f32.mrb[40].mxu0 }
 0xa7f   :  { %v2975_v9 = vpop.f32.mrb[41].mxu0  ;;  %v2177_v3 = vadd.f32 %v2176_v56, %v2167_v42 }
 0xa80   :  { %v2170_v4 = vpop.f32.mrb[42].mxu0 }
 0xa81   :  { %v2976_v52 = vpop.f32.mrb[43].mxu0 }
 0xaef   :  { %v4151_v29 = vpop.f32.mrb[32].mxu1 }
 0xaf0   :  { %v2261_v28 = vsel %vm265_vm9, %v4151_v29, 0.0  ;;  %v2269_v33 = vmul.f32 %v4151_v29, %v4151_v29  ;;  %v2951_v47 = vpop.f32.mrb[33].mxu1 }
 0xaf1   :  { %v2262_v25 = vrot.slane %v2261_v28, 4  ;;  %v1848_v38 = vpop.f32.mrb[34].mxu1 }
 0xaf2   :  { %v2270_v2 = vsel %vm265_vm9, %v2269_v33, 0.0  ;;  %v2952_v24 = vpop.f32.mrb[35].mxu1 }
 0xaf3   :  { %v2263_v17 = vadd.f32 %v2262_v25, %v2261_v28  ;;  %v2271_v10 = vrot.slane %v2270_v2, 4  ;;  %v2567_v25 = vrot.slane %v2563_v0, %v3485_v58 }
 0xaf5   :  { %v2264_v41 = vrot.slane %v2263_v17, 2  ;;  %v2272_v35 = vadd.f32 %v2271_v10, %v2270_v2 }
 0xaf7   :  { %v2265_v36 = vadd.f32 %v2264_v41, %v2263_v17  ;;  %v2273_v45 = vrot.slane %v2272_v35, 2  ;;  %v2044_v57 = vpop.f32.mrb[36].mxu1 }
 0xaf8   :  { %v2051_v55 = vadd.f32 %v2044_v57, %v1959_v44  ;;  %v2967_v8 = vpop.f32.mrb[37].mxu1 }
 0xaf9   :  { %v2266_v30 = vrot.slane %v2265_v36, 1  ;;  %v2274_v31 = vadd.f32 %v2273_v45, %v2272_v35  ;;  %v2047_v15 = vpop.f32.mrb[38].mxu1 }
 0xafa   :  { %v2053_v6 = vadd.f32 %v3958_v16, %v2051_v55  ;;  %v2052_v27 = vadd.f32 %v2047_v15, %v1960_v40  ;;  %v2968_v7 = vpop.f32.mrb[39].mxu1 }
 0xafb   :  { %v2267_v46 = vadd.f32 %v2266_v30, %v2265_v36  ;;  %v2275_v32 = vrot.slane %v2274_v31, 1 }
 0xafc   :  { %v2735_v1 = vmul.f32 -1.442695, %v2053_v6  ;;  %v2054_v53 = vadd.f32 %v3965_v60, %v2052_v27 }
 0xafd   :  { %v2268_v62 = vmul.f32 0.125, %v2267_v46  ;;  %v2276_v18 = vadd.f32 %v2275_v32, %v2274_v31 }
 0xafe   :  { %3102 = vpow2.f32 %v2735_v1  ;;  %v2736_v12 = vmul.f32 -1.442695, %v2054_v53 }
 0xaff   :  { %v2277_v39 = vmul.f32 0.125, %v2276_v18  ;;  %v2278_v9 = vmul.f32 %v2268_v62, %v2268_v62  ;;  %v2254_v43 = vpop.f32.mrb[40].mxu1 }
 0xb00   :  { %3104 = vpow2.f32 %v2736_v12  ;;  %v4166_v4 = vadd.f32 %v2254_v43, %v2177_v3  ;;  %v2983_v52 = vpop.f32.mrb[41].mxu1 }
 0xb01   :  { %v2279_v16 = vsub.f32 %v2277_v39, %v2278_v9  ;;  %v2257_v22 = vpop.f32.mrb[42].mxu1 }
 0xb02   :  { %v2984_v20 = vpop.f32.mrb[43].mxu1 }
 0xb03   :  { %v2280_v63 = vmax.f32 %v2279_v16, 0.0 }
 0xb05   :  { %v2281_v23 = vadd.f32 1e-05, %v2280_v63 }
 0xb07   :  { %3106 = vrsqrt.f32 %v2281_v23  ;;  %v4168_v21 = vpop.f32.mrb[44].mxu1 }
 0xb08   :  { %v3103_v60 = vpop.eup %3102  ;;  %v4170_v42 = vpop.f32.mrb[45].mxu1 }
 0xb09   :  { %v2061_v26 = vadd.f32 1.0, %v3103_v60  ;;  %v2998_v28 = vpop.f32.mrb[46].mxu1 }
 0xb0a   :  { %v3105_v33 = vpop.eup %3104  ;;  %v4172_v47 = vpop.f32.mrb[47].mxu1 }
 0xb0b   :  { %3108 = vrcp.f32 %v2061_v26  ;;  %v2062_v19 = vadd.f32 1.0, %v3105_v33 }
 0xb0d   :  { %3110 = vrcp.f32 %v2062_v19 }
 0xb0f   :  { %v3009_v38 = vpop.f32.mrb[48].mxu1 }
 0xb10   :  { %v2549_v2 = vpop.f32.mrb[49].mxu1  ;;  %v2570_v35 = vmul.f32 %v3009_v38, %v2567_v25 }
 0xb11   :  { %v3107_v24 = vpop.eup %3106  ;;  %v2568_v17 = vmul.f32 %v2567_v25, %v2549_v2  ;;  %v3010_v10 = vpop.f32.mrb[50].mxu1 }
 0xb12   :  { %v2283_v44 = vmul.f32 %v3107_v24, %v3999_v34  ;;  %v2552_v41 = vpop.f32.mrb[51].mxu1  ;;  %v2577_v15 = vsel %vm265_vm9, %v2570_v35, 0.0 }
 0xb13   :  { %v2569_v40 = vmul.f32 %v2567_v25, %v2552_v41  ;;  %v2571_v36 = vsel %vm265_vm9, %v2568_v17, 0.0 }
 0xb14   :  { %v2289_v45 = vmul.f32 %v2283_v44, %v2268_v62  ;;  %2572 = vadd.xlane.f32.xlu0 %v2571_v36  ;;  %v2287_v8 = vrot.slane %v2283_v44, %v3469_v49 }
 0xb15   :  { %v3109_v57 = vpop.eup %3108  ;;  %v2574_v55 = vsel %vm265_vm9, %v2569_v40, 0.0 }
 0xb16   :  { %v2291_v56 = vrot.slane %v2289_v45, 7  ;;  %v2067_v30 = vmul.f32 %v3109_v57, %v2053_v6  ;;  %2575 = vadd.xlane.f32.xlu1 %v2574_v55  ;;  %v2288_v46 = vmul.f32 %v2287_v8, %v4151_v29 }
 0xb17   :  { %v3111_v31 = vpop.eup %3110 }
 0xb18   :  { %v2293_v27 = vsub.f32 %v3999_v34, %v2291_v56  ;;  %2069 = vst.msk [vmem:[#allocation2] sm:$0xff] %vm265_vm9, %v2067_v30  ;;  %v2068_v7 = vmul.f32 %v3111_v31, %v2054_v53  ;;  %2578 = vadd.xlane.f32.xlu0 %v2577_v15 }
 0xb1a   :  { %v2297_v32 = vrot.slane %v2293_v27, %v3478_v5  ;;  %2070 = vst.msk [vmem:[#allocation2 + $0x8] sm:$0xff] %vm265_vm9, %v2068_v7  ;;  %v2583_v5 = vrot.slane %v2563_v0, %v3498_v11 }
 0xb1c   :  { %v2298_v1 = vadd.f32 %v2297_v32, %v2288_v46 }
 0xb1e   :  { %v2299_v49 = vpack.c.bf16 %v2298_v1, %v2298_v1 }
 0xb20   :  { %2990 = vmatmul.mubr.msk.bf16.vlgmr.msra.gmra.mrb[44].mxu0 %vm265_vm9, %v2299_v49 }
 0xb21   :  { %3001 = vmatprep.mubr.msk.bf16.mxu0 %vm156_vm3, %v4125_v61  ;;  %3000 = vmatpush3.bf16.msra.mxu0 %v4109_v59 }
 0xb22   :  { %3011 = vmatprep.subr.bf16.mxu0 %v3170_v13 }
 0xb28   :  { %3002 = vmatmul.mubr.msk.bf16.vlgmr.msra.gmra.mrb[48].mxu0 %vm156_vm3, %v4133_v14 }
 0xb29   :  { %3015 = vmatprep.mubr.msk.bf16.mxu0 %vm3171_vm10, %v3170_v13 }
 0xba1   :  { %v2573_v34 = vpop.xlane.xlu0 %2572 }
 0xba2   :  { %v2584_v29 = vadd.f32 %v2583_v5, %v2573_v34 }
 0xba3   :  { %v2576_v6 = vpop.xlane.xlu1 %2575 }
 0xba4   :  { %v2585_v53 = vadd.f32 %v2583_v5, %v2576_v6  ;;  %2589 = vperm.xlu0 %3041, %v2584_v29  }
 0xba5   :  { %v2579_v3 = vpop.xlane.xlu0 %2578 }
 0xba6   :  { %2594 = vperm.xlu1 %3043, %v2585_v53   ;;  %v2586_v61 = vadd.f32 %v2583_v5, %v2579_v3 }
 0xbaa   :  { %2599 = vperm.xlu1 %3043, %v2586_v61  }
 0xbf3   :  { %v2337_v59 = vpop.f32.mrb[44].mxu0 }
 0xbf4   :  { %v2343_v62 = vadd.f32 %v2337_v59, %v4166_v4  ;;  %v2991_v18 = vpop.f32.mrb[45].mxu0 }
 0xbf5   :  { %v2340_v12 = vpop.f32.mrb[46].mxu0 }
 0xbf6   :  { %v2344_v14 = vadd.f32 %v3951_v50, %v2343_v62  ;;  %v2992_v39 = vpop.f32.mrb[47].mxu0  ;;  %v2359_v50 = vld [vmem:[%s4300_s5] sm:$0x3]  ;;  %s3172_s5 = smov [#allocation2]  }
 0xbf7   :  { %s2665_s4 = sshll.u32 %s3172_s5, 4  ;;  %s2666_s4 = int_to_ptr.vmem [resolvable:$true] %s2665_s4 }
 0xbf8   :  { %v2740_v9 = vmul.f32 -1.442695, %v2344_v14  ;;  %s3120_s0 = scalar_lea.vmem %s2666_s4, 256  ;;  %p3125_p1 = scmp.lt.s32.totalorder %s2666_s4, %s2666_s4 }
 0xbf9   :  { %p3121_p0 = scmp.ne.s32.totalorder %s2666_s4, %s3120_s0  ;;  %p3126_p2 = scmp.lt.s32.totalorder %s3120_s0, %s3120_s0 }
 0xbfa   :  { %3112 = vpow2.f32 %v2740_v9 }
 0xbfb   :  { %v3003_v11 = vpop.f32.mrb[48].mxu0  ;;  %p3127_p3 = por %p3126_p2, %p3125_p1 }
 0xbfc   :  { %v2513_v43 = vsub.f32 %v4168_v21, %v3003_v11  ;;  %v2497_v52 = vpop.f32.mrb[49].mxu0  ;;  %v2397_v21 = vrot.slane %v2359_v50, %v3485_v58 }
 0xbfd   :  { %v2511_v16 = vsub.f32 %v4170_v42, %v2497_v52  ;;  %v3004_v22 = vpop.f32.mrb[50].mxu0  ;;  %p3128_p4 = pnand %p3127_p3, %p3121_p0 }
 0xbfe   :  { %v2500_v20 = vpop.f32.mrb[51].mxu0  ;;  %vm2398_vm3 = vcmp.eq.s32.totalorder %v3466_v48, %v2397_v21  ;;  %vm2399_vm10 = vcmp.eq.s32.totalorder %v3554_v37, %v2397_v21 }
 0xbff   :  { %v2512_v63 = vsub.f32 %v4172_v47, %v2500_v20  ;;  %v2400_v38 = vsel %vm2398_vm3, 1.0, %v3170_v13  ;;  %v2401_v2 = vsel %vm2399_vm10, 1.0, %v3170_v13 }
 0xc00   :  { %v2402_v17 = vpack.c.bf16 %v2401_v2, %v2400_v38 }
 0xc04   :  { %v3113_v23 = vpop.eup %3112 }
 0xc05   :  { %v2348_v60 = vadd.f32 1.0, %v3113_v23 }
 0xc07   :  { %3114 = vrcp.f32 %v2348_v60 }
 0xc11   :  { %v3115_v4 = vpop.eup %3114 }
 0xc12   :  { %v2351_v26 = vmul.f32 %v3115_v4, %v2344_v14 }
 0xc14   :  { %2352 = vst.msk [vmem:[#allocation4] sm:$0xff] %vm265_vm9, %v2351_v26 }
 0xc23   :  { %v2590_v28 = vpop.permute.xlu0 %2589 }
 0xc24   :  { %v2602_v42 = vmul.f32 %v2590_v28, %v2511_v16 }
 0xc25   :  { %v2595_v33 = vpop.permute.xlu1 %2594 }
 0xc26   :  { %v2603_v0 = vmul.f32 %v2595_v33, %v2512_v63 }
 0xc28   :  { %v2605_v19 = vpack.c.bf16 %v2603_v0, %v2602_v42 }
 0xc29   :  { %v2600_v47 = vpop.permute.xlu1 %2599 }
 0xc2a   :  { %v2604_v25 = vmul.f32 %v2600_v47, %v2513_v43  ;;  %3012 = vmatpush3.bf16.msra.mxu0 %v2605_v19 }
 0xc2b   :  { %3013 = vmatprep.subr.bf16.mxu0 %v3170_v13 }
 0xc2c   :  { %v2606_v24 = vpack.c.bf16 %v2604_v25, %v2604_v25 }
 0xc2e   :  { %v2611_v58 = vsel %vm671_vm13, %v2606_v24, 0 }
 0xc2f   :  { %3014 = vmatpush3.bf16.msra.mxu0 %v2611_v58 }
 0xc32   :  { %3016 = vmatmul.mubr.msk.bf16.vlgmr.msra.gmra.mrb[52].mxu0 %vm667_vm0, %v2402_v17 }
 0xc33   :  { %3131 = shalt.err (!%p3128_p4)
}
 0xc34   :  { %s3132_s20 = scalar_lea.hbm %s4272_s23, 256 }
 0xc35   :  { %p3133_p5 = scmp.ne.s32.totalorder %s4272_s23, %s3132_s20  ;;  %p3136_p6 = scmp.lt.u32.totalorder %s3132_s20, %s4272_s23 }
 0xc37   :  { %p3138_p7 = pnand %p3136_p6, %p3133_p5 }
 0xc39   :  { %3141 = shalt.err (!%p3138_p7)
}
 0xc3a   :  { %s3174_s30 = smov 128   ;;  %s3175_s16 = smov 8  }
 0xc3b   :  { %2671 = dma.vmem_to_hbm [thread:$0]  %s2666_s4, 256, %s4272_s23, [#allocation3], %s3174_s30, %s3174_s30, %s3175_s16  }
 0xc3c   :  { %s3142_s13 = scalar_lea.vmem %s2679_s11, 128  ;;  %p3147_p9 = scmp.lt.s32.totalorder %s2679_s11, %s2679_s11 }
 0xc3d   :  { %p3143_p8 = scmp.ne.s32.totalorder %s2679_s11, %s3142_s13  ;;  %p3148_p10 = scmp.lt.s32.totalorder %s3142_s13, %s3142_s13 }
 0xc3f   :  { %p3149_p11 = por %p3148_p10, %p3147_p9 }
 0xc41   :  { %p3150_p12 = pnand %p3149_p11, %p3143_p8 }
 0xc43   :  { %3153 = shalt.err (!%p3150_p12)
}
 0xc44   :  { %s3154_s10 = scalar_lea.hbm %s4273_s24, 128 }
 0xc45   :  { %p3155_p13 = scmp.ne.s32.totalorder %s4273_s24, %s3154_s10  ;;  %p3158_p0 = scmp.lt.u32.totalorder %s3154_s10, %s4273_s24 }
 0xc47   :  { %p3160_p1 = pnand %p3158_p0, %p3155_p13 }
 0xc49   :  { %3163 = shalt.err (!%p3160_p1)
}
 0xc4a   :  { %2681 = dma.vmem_to_hbm [thread:$0]  %s2679_s11, 128, %s4273_s24, [#allocation5]  }
 0xd05   :  { %v2647_v13 = vpop.f32.mrb[52].mxu0 }
 0xd06   :  { %v2654_v48 = vmul.f32 0.1, %v2647_v13  ;;  %v3017_v37 = vpop.f32.mrb[53].mxu0 }
 0xd07   :  { %v2650_v10 = vpop.f32.mrb[54].mxu0 }
 0xd08   :  { %v2656_v44 = vadd.f32 %v2654_v48, %v4091_v54  ;;  %v2655_v41 = vmul.f32 0.1, %v2650_v10  ;;  %v3018_v35 = vpop.f32.mrb[55].mxu0 }
 0xd0a   :  { %2658 = vst.msk [vmem:[%s4274_s25] sm:$0xff] %vm834_vm1, %v2656_v44  ;;  %v2657_v40 = vadd.f32 %v2655_v41, %v4096_v51 }
 0xd0c   :  { %2659 = vst.msk [vmem:[%s4274_s25 + $0x8] sm:$0xff] %vm834_vm1, %v2657_v40 }
 0xd0d   :  { %3164 = dma.done.wait [#allocation3], 256  }
 0xd0e   :  { %3165 = vsyncadd [#allocation3], 4294967040 }
 0xd0f   :  { %3166 = dma.done.wait [#allocation5], 128  }
 0xd10   :  { %3167 = vsyncadd [#allocation5], 4294967168 }
 0xd11   :  { %2692 = vsyncpa [#allocation3], 1 }
 0xd12   :  { %2693 = vsyncpa [#allocation5], 1 }

</bundles_post_ra>
